<compile_context>
chip_gen: v7x
topology: tpu7x:2x2x1
jax: 0.10.0
libtpu: 0.0.40
codegen_flags: <defaults>
</compile_context>

<pallas_src>
import functools

import jax
import jax.numpy as jnp
from jax.experimental import pallas as pl
from jax.experimental.pallas import tpu as pltpu

_VMEM_LIMIT = 32 * 1024 * 1024          # explicit scoped-VMEM budget per call


def _row_tile(m, cap=1024):
    """Row tile: multiple of 8, capped at `cap`, and chosen so the 1-D grid has
    >= 2 steps (keeps both v7x TensorCores busy).  Full M when M is tiny."""
    if m <= 8:
        return m
    half = ((m + 1) // 2 + 7) // 8 * 8
    return min(cap, half)


def _pack_stats(s1, s2):
    """Pack two (1, F) row vectors into one (2, F) value -> single store."""
    f = s1.shape[-1]
    row = jax.lax.broadcasted_iota(jnp.int32, (2, f), 0)
    return jnp.where(row == 0,
                     jnp.broadcast_to(s1, (2, f)),
                     jnp.broadcast_to(s2, (2, f)))


# --------------------------------------------------------------- kernel 1
# Fused: 2x2x2 stride-2 max-pool (values + flat argmax indices) + 2x2x2
# stride-2 projection conv as ONE K=8*C_in matmul + partial BN1 stats.
def _pool_conv1_kernel(xw_ref, base_ref, w_ref, pool_ref, idx_ref, y1_ref,
                       st_ref, *, C, H, W, M):
    tm = xw_ref.shape[0]
    x = xw_ref[...]                                     # (tm, 8*C) f32
    base = base_ref[...]                                # (tm, 1)  int32

    # --- max-pool over the 8 packed taps (first max wins ties).
    best_v = x[:, 0:C]
    best_i = jnp.broadcast_to(base, (tm, C))
    for k in range(1, 8):
        dz, dy, dx = k // 4, (k // 2) % 2, k % 2
        off = (dz * H + dy) * W + dx
        v = x[:, k * C:(k + 1) * C]
        take = v > best_v
        best_v = jnp.where(take, v, best_v)
        best_i = jnp.where(take, base + off, best_i)
    pool_ref[...] = best_v
    idx_ref[...] = best_i

    # --- projection conv: one matmul with K = 8*C (bf16 operands, f32 acc).
    acc = jnp.dot(x.astype(jnp.bfloat16), w_ref[...],
                  preferred_element_type=jnp.float32)   # (tm, F1)
    y1_ref[...] = acc.astype(y1_ref.dtype)

    # --- partial BN1 statistics (ragged tail rows masked), single store.
    rows = pl.program_id(0) * tm + jax.lax.broadcasted_iota(jnp.int32, (tm, 1), 0)
    ym = jnp.where(rows < M, acc, 0.0)
    st_ref[0] = _pack_stats(jnp.sum(ym, axis=0, keepdims=True),
                            jnp.sum(ym * ym, axis=0, keepdims=True))


def fused_pool_conv1(xw, base_idx, w1k, C, H, W):
    M = xw.shape[0]
    F1 = w1k.shape[1]
    tm = _row_tile(M)
    G = pl.cdiv(M, tm)
    kern = functools.partial(_pool_conv1_kernel, C=C, H=H, W=W, M=M)
    return pl.pallas_call(
        kern,
        out_shape=(jax.ShapeDtypeStruct((M, C), jnp.float32),
                   jax.ShapeDtypeStruct((M, C), jnp.int32),
                   jax.ShapeDtypeStruct((M, F1), jnp.bfloat16),
                   jax.ShapeDtypeStruct((G, 2, F1), jnp.float32)),
        grid=(G,),
        in_specs=[pl.BlockSpec((tm, 8 * C), lambda i: (i, 0)),
                  pl.BlockSpec((tm, 1), lambda i: (i, 0)),
                  pl.BlockSpec((8 * C, F1), lambda i: (0, 0))],
        out_specs=(pl.BlockSpec((tm, C), lambda i: (i, 0)),
                   pl.BlockSpec((tm, C), lambda i: (i, 0)),
                   pl.BlockSpec((tm, F1), lambda i: (i, 0)),
                   pl.BlockSpec((1, 2, F1), lambda i: (i, 0, 0))),
        compiler_params=pltpu.CompilerParams(
            dimension_semantics=("parallel",),
            vmem_limit_bytes=_VMEM_LIMIT),
    )(xw, base_idx, w1k)


# --------------------------------------------------------------- kernel 2
# Fused: BN1 affine + ReLU + implicit 1-voxel zero pad + 3x3x3/stride-1 conv
# (in-VMEM im2col -> one K=27*F1 batched matmul) + partial BN2 stats.
# The depth halo comes from three depth-clamped views of the UNPADDED y1;
# out-of-range planes and the spatial border are realised as zeros in VMEM.
# TODO(synk): each depth plane is still DMA'd ~3x; a rolling-window manual DMA
# (pl.ANY + make_async_copy) would cut conv2 input traffic further.
def _conv2_kernel(p0_ref, p1_ref, p2_ref, s1_ref, b1_ref, w_ref,
                  y2_ref, st_ref, pad_ref, col_ref, *, Do):
    do = pl.program_id(1)
    Ho, Wo, F1 = p0_ref.shape[2], p0_ref.shape[3], p0_ref.shape[4]
    F2 = w_ref.shape[1]
    K = w_ref.shape[0]                                  # 27 * F1

    scale = s1_ref[...]                                 # (1, F1)
    shift = b1_ref[...]

    # BN1 affine + ReLU on the 3 depth planes; zeros for pad / OOB depth.
    pad_ref[...] = jnp.zeros(pad_ref.shape, pad_ref.dtype)
    for kd, pref in enumerate((p0_ref, p1_ref, p2_ref)):
        src = do + kd - 1
        act = jnp.maximum(pref[0, 0].astype(jnp.float32) * scale + shift, 0.0)
        act = jnp.where(jnp.logical_and(src >= 0, src < Do), act, 0.0)
        pad_ref[kd, 1:1 + Ho, 1:1 + Wo, :] = act

    # In-VMEM im2col of the 27 taps (no 27x HBM traffic, no per-tap matmul).
    for t in range(27):
        kd, kh, kw = t // 9, (t // 3) % 3, t % 3
        col_ref[:, :, t * F1:(t + 1) * F1] = pad_ref[kd, kh:kh + Ho, kw:kw + Wo, :]

    col = col_ref[...].astype(jnp.bfloat16)                         # (Ho, Wo, K)
    wb = jnp.broadcast_to(w_ref[...][None, :, :], (Ho, K, F2))      # hoisted once
    acc = jnp.einsum("hwk,hkf->hwf", col, wb,
                     preferred_element_type=jnp.float32)            # (Ho, Wo, F2)

    y2_ref[0, 0] = acc

    r1 = jnp.sum(acc, axis=0)                                       # (Wo, F2)
    r2 = jnp.sum(acc * acc, axis=0)
    st_ref[0, 0] = _pack_stats(jnp.sum(r1, axis=0, keepdims=True),
                               jnp.sum(r2, axis=0, keepdims=True))


def fused_conv2(y1v, scale1, shift1, w2m):
    N, Do, Ho, Wo, F1 = y1v.shape
    K, F2 = w2m.shape
    Hp, Wp = Ho + 2, Wo + 2

    def plane_map(kd):
        def m(n, do):
            return (n, jnp.maximum(jnp.minimum(do + kd - 1, Do - 1), 0), 0, 0, 0)
        return m

    kern = functools.partial(_conv2_kernel, Do=Do)
    return pl.pallas_call(
        kern,
        out_shape=(jax.ShapeDtypeStruct((N, Do, Ho, Wo, F2), jnp.float32),
                   jax.ShapeDtypeStruct((N, Do, 2, F2), jnp.float32)),
        grid=(N, Do),
        in_specs=[pl.BlockSpec((1, 1, Ho, Wo, F1), plane_map(0)),
                  pl.BlockSpec((1, 1, Ho, Wo, F1), plane_map(1)),
                  pl.BlockSpec((1, 1, Ho, Wo, F1), plane_map(2)),
                  pl.BlockSpec((1, F1), lambda n, do: (0, 0)),
                  pl.BlockSpec((1, F1), lambda n, do: (0, 0)),
                  pl.BlockSpec((K, F2), lambda n, do: (0, 0))],
        out_specs=(pl.BlockSpec((1, 1, Ho, Wo, F2),
                                lambda n, do: (n, do, 0, 0, 0)),
                   pl.BlockSpec((1, 1, 2, F2), lambda n, do: (n, do, 0, 0))),
        scratch_shapes=[pltpu.VMEM((3, Hp, Wp, F1), jnp.float32),
                        pltpu.VMEM((Ho, Wo, K), jnp.float32)],
        compiler_params=pltpu.CompilerParams(
            dimension_semantics=("parallel", "parallel"),
            vmem_limit_bytes=_VMEM_LIMIT),
    )(y1v, y1v, y1v, scale1, shift1, w2m)


# --------------------------------------------------------------- kernel 3
# Fused: BN2 affine + ReLU + 1x1x1 expansion matmul + partial BN3 stats.
def _bn_relu_matmul_kernel(y_ref, s_ref, b_ref, w_ref, o_ref, st_ref, *, M):
    tm = y_ref.shape[0]
    a = jnp.maximum(y_ref[...] * s_ref[...] + b_ref[...], 0.0)
    out = jnp.dot(a.astype(jnp.bfloat16), w_ref[...],
                  preferred_element_type=jnp.float32)
    o_ref[...] = out

    rows = pl.program_id(0) * tm + jax.lax.broadcasted_iota(jnp.int32, (tm, 1), 0)
    ym = jnp.where(rows < M, out, 0.0)
    st_ref[0] = _pack_stats(jnp.sum(ym, axis=0, keepdims=True),
                            jnp.sum(ym * ym, axis=0, keepdims=True))


def fused_bn_relu_matmul(y2, scale, shift, w3m):
    M, F2 = y2.shape
    C_out = w3m.shape[1]
    tm = _row_tile(M)
    G = pl.cdiv(M, tm)
    kern = functools.partial(_bn_relu_matmul_kernel, M=M)
    return pl.pallas_call(
        kern,
        out_shape=(jax.ShapeDtypeStruct((M, C_out), jnp.float32),
                   jax.ShapeDtypeStruct((G, 2, C_out), jnp.float32)),
        grid=(G,),
        in_specs=[pl.BlockSpec((tm, F2), lambda i: (i, 0)),
                  pl.BlockSpec((1, F2), lambda i: (0, 0)),
                  pl.BlockSpec((1, F2), lambda i: (0, 0)),
                  pl.BlockSpec((F2, C_out), lambda i: (0, 0))],
        out_specs=(pl.BlockSpec((tm, C_out), lambda i: (i, 0)),
                   pl.BlockSpec((1, 2, C_out), lambda i: (i, 0, 0))),
        compiler_params=pltpu.CompilerParams(
            dimension_semantics=("parallel",),
            vmem_limit_bytes=_VMEM_LIMIT),
    )(y2, scale, shift, w3m)


# --------------------------------------------------------------- kernel 4
# Fused tail: BN3 affine + ReLU, zero-extend the pooled main branch to
# out_channels in-register, residual add and final ReLU -> ONE full-width store.
def _merge_kernel(y_ref, pool_ref, s_ref, b_ref, o_ref, *, C_in):
    ext = jnp.maximum(y_ref[...] * s_ref[...] + b_ref[...], 0.0)
    tm, C_out = ext.shape
    main = pool_ref[...]
    if C_out > C_in:
        main = jnp.concatenate(
            [main, jnp.zeros((tm, C_out - C_in), main.dtype)], axis=-1)
    # ext >= 0 after the BN3 ReLU, so a single full-width max is exact for the
    # zero-padded channels as well.
    o_ref[...] = jnp.maximum(ext + main, 0.0)


def fused_merge(y3, pooled, scale, shift):
    M, C_out = y3.shape
    C_in = pooled.shape[1]
    tm = _row_tile(M)
    G = pl.cdiv(M, tm)
    kern = functools.partial(_merge_kernel, C_in=C_in)
    return pl.pallas_call(
        kern,
        out_shape=jax.ShapeDtypeStruct((M, C_out), jnp.float32),
        grid=(G,),
        in_specs=[pl.BlockSpec((tm, C_out), lambda i: (i, 0)),
                  pl.BlockSpec((tm, C_in), lambda i: (i, 0)),
                  pl.BlockSpec((1, C_out), lambda i: (0, 0)),
                  pl.BlockSpec((1, C_out), lambda i: (0, 0))],
        out_specs=pl.BlockSpec((tm, C_out), lambda i: (i, 0)),
        compiler_params=pltpu.CompilerParams(
            dimension_semantics=("parallel",),
            vmem_limit_bytes=_VMEM_LIMIT),
    )(y3, pooled, scale, shift)


# ------------------------------------------------------------ host glue

def _bn_affine(partial_stats, count, gamma, beta, eps):
    s = jnp.sum(partial_stats, axis=0)                  # (2, F)
    mean = s[0] / count
    var = jnp.maximum(s[1] / count - mean * mean, 0.0)  # clamp (E[x^2]-m^2 >= 0)
    scale = gamma * jax.lax.rsqrt(var + eps)
    shift = beta - mean * scale
    return (scale.reshape(1, -1).astype(jnp.float32),
            shift.reshape(1, -1).astype(jnp.float32))


def init_params(key, in_channels, out_channels, internal_ratio=4):
    assert 1 < internal_ratio <= in_channels
    internal = in_channels // internal_ratio
    k1, k2, k3 = jax.random.split(key, 3)

    def conv_w(k, co, ci, ks):
        fan_in = ci * ks ** 3
        bound = (1.0 / fan_in) ** 0.5
        return jax.random.uniform(k, (co, ci, ks, ks, ks), jnp.float32,
                                  -bound, bound)

    return dict(
        w1=conv_w(k1, internal, in_channels, 2),        # projection 2x2x2 s2
        w2=conv_w(k2, internal, internal, 3),           # regular 3x3x3 p1
        w3=conv_w(k3, out_channels, internal, 1),       # expansion 1x1x1
        gamma1=jnp.ones((internal,), jnp.float32),
        beta1=jnp.zeros((internal,), jnp.float32),
        gamma2=jnp.ones((internal,), jnp.float32),
        beta2=jnp.zeros((internal,), jnp.float32),
        gamma3=jnp.ones((out_channels,), jnp.float32),
        beta3=jnp.zeros((out_channels,), jnp.float32),
    )


def downsampling_bottleneck(x_ncdhw, params, out_channels, eps=1e-5):
    x = x_ncdhw.astype(jnp.float32)
    N, C_in, D, H, W = x.shape
    Do, Ho, Wo = D // 2, H // 2, W // 2
    M = N * Do * Ho * Wo
    F1 = params["w1"].shape[0]
    F2 = params["w2"].shape[0]
    C_out = out_channels

    # Window-major, tap-packed copy of the input: row = (n, do, ho, wo),
    # column = k*C_in + c with k = dz*4 + dy*2 + dx.  Feeds BOTH the max-pool
    # (static lane slices) and the projection conv (one K = 8*C_in matmul).
    xw = (x.reshape(N, C_in, Do, 2, Ho, 2, Wo, 2)
            .transpose(0, 2, 4, 6, 3, 5, 7, 1)
            .reshape(M, 8 * C_in))

    # Flat (d*H*W + h*W + w) index of each pooling window's origin.
    do_i = jnp.arange(Do, dtype=jnp.int32)[:, None, None]
    ho_i = jnp.arange(Ho, dtype=jnp.int32)[None, :, None]
    wo_i = jnp.arange(Wo, dtype=jnp.int32)[None, None, :]
    base = (2 * do_i * H + 2 * ho_i) * W + 2 * wo_i
    base_idx = jnp.broadcast_to(base[None], (N, Do, Ho, Wo)).reshape(M, 1)

    w1k = (params["w1"].transpose(2, 3, 4, 1, 0)
             .reshape(8 * C_in, F1).astype(jnp.bfloat16))

    # main branch + projection conv + partial BN1 stats (one fused kernel)
    pooled, indices, y1, st1 = fused_pool_conv1(xw, base_idx, w1k, C_in, H, W)
    scale1, shift1 = _bn_affine(st1, M, params["gamma1"], params["beta1"], eps)

    # 3x3x3 conv with fused BN1 affine + ReLU + implicit zero-pad, plus
    # partial BN2 stats (no padded activation slab in HBM).
    w2m = (params["w2"].transpose(2, 3, 4, 1, 0)
             .reshape(27 * F1, F2).astype(jnp.bfloat16))
    y2, st2 = fused_conv2(y1.reshape(N, Do, Ho, Wo, F1), scale1, shift1, w2m)
    scale2, shift2 = _bn_affine(st2.reshape(-1, 2, F2), M,
                                params["gamma2"], params["beta2"], eps)

    # BN2 affine + ReLU + 1x1x1 expansion + partial BN3 stats (fused)
    w3m = params["w3"].reshape(C_out, F2).transpose(1, 0).astype(jnp.bfloat16)
    y3, st3 = fused_bn_relu_matmul(y2.reshape(M, F2), scale2, shift2, w3m)
    scale3, shift3 = _bn_affine(st3, M, params["gamma3"], params["beta3"], eps)

    # BN3 affine + ReLU + zero-extend main + residual add + final ReLU (fused)
    # ext_regul: Dropout3d(p=0) is the identity.
    # TODO(synk): dropout_prob > 0 (training-mode channel dropout) not implemented.
    out_flat = fused_merge(y3, pooled, scale3, shift3)

    # NCDHW outputs to match the PyTorch module's layout.
    out = out_flat.reshape(N, Do, Ho, Wo, C_out).transpose(0, 4, 1, 2, 3)
    idx = indices.reshape(N, Do, Ho, Wo, C_in).transpose(0, 4, 1, 2, 3)
    return out, idx


# ----------------------------------- main ------------------------------------

if __name__ == "__main__":
    key = jax.random.PRNGKey(0)
    kx, kp = jax.random.split(key)

    N, C_in, D, H, W = 2, 8, 8, 8, 8
    C_out = 16

    x = jax.random.normal(kx, (N, C_in, D, H, W), jnp.float32)
    params = init_params(kp, C_in, C_out, internal_ratio=4)

    fwd = jax.jit(lambda xx, pp: downsampling_bottleneck(xx, pp, C_out))
    out, idx = fwd(x, params)
    jax.block_until_ready((out, idx))

    Do, Ho, Wo = D // 2, H // 2, W // 2
    assert out.shape == (N, C_out, Do, Ho, Wo)
    assert idx.shape == (N, C_in, Do, Ho, Wo)
    assert bool(jnp.all(out >= 0.0))
    assert bool(jnp.all((idx >= 0) & (idx < D * H * W)))

    # Max-pool self-check: gathering x at the returned flat indices must
    # reproduce the 2x2x2 window maxima exactly (pool path stays f32 exact).
    ref_pool = x.reshape(N, C_in, Do, 2, Ho, 2, Wo, 2).max(axis=(3, 5, 7))
    gathered = jnp.take_along_axis(
        x.reshape(N, C_in, D * H * W),
        idx.reshape(N, C_in, Do * Ho * Wo).astype(jnp.int32), axis=2,
    ).reshape(N, C_in, Do, Ho, Wo)
    assert bool(jnp.all(gathered == ref_pool))

    print("KERNEL_OK")
</pallas_src>

<mosaic_0001>
module attributes {stable_mosaic.version = 11 : i64} {
  func.func @_pool_conv1_kernel(%arg0: i32, %arg1: memref<64x64xf32, #tpu.memory_space<vmem>>, %arg2: memref<64x1xi32, #tpu.memory_space<vmem>>, %arg3: memref<64x2xbf16, #tpu.memory_space<vmem>>, %arg4: memref<64x8xf32, #tpu.memory_space<vmem>>, %arg5: memref<64x8xi32, #tpu.memory_space<vmem>>, %arg6: memref<64x2xbf16, #tpu.memory_space<vmem>>, %arg7: memref<1x2x2xf32, #tpu.memory_space<vmem>>) attributes {dimension_semantics = [#tpu.dimension_semantics<parallel>], iteration_bounds = array<i64: 2>, scalar_prefetch = 0 : i64, scratch_operands = 0 : i64, tpu.core_type = #tpu.core_type<tc>, window_params = [{transform_indices = @transform_0, window_bounds = array<i64: 64, 64>}, {transform_indices = @transform_1, window_bounds = array<i64: 64, 1>}, {pipeline_mode = #tpu.pipeline_mode<synchronous>, transform_indices = @transform_2, window_bounds = array<i64: 64, 2>}, {transform_indices = @transform_3, window_bounds = array<i64: 64, 8>}, {transform_indices = @transform_4, window_bounds = array<i64: 64, 8>}, {transform_indices = @transform_5, window_bounds = array<i64: 64, 2>}, {transform_indices = @transform_6, window_bounds = array<i64: 1, 2, 2>}]} {
    %c0 = arith.constant 0 : index
    %c0_0 = arith.constant 0 : index
    %0 = vector.load %arg1[%c0, %c0_0] : memref<64x64xf32, #tpu.memory_space<vmem>>, vector<64x64xf32>
    %c0_1 = arith.constant 0 : index
    %c0_2 = arith.constant 0 : index
    %1 = vector.load %arg2[%c0_1, %c0_2] : memref<64x1xi32, #tpu.memory_space<vmem>>, vector<64x1xi32>
    %2 = vector.extract_strided_slice %0 {offsets = [0, 0], sizes = [64, 8], strides = [1, 1]} : vector<64x64xf32> to vector<64x8xf32>
    %3 = vector.shape_cast %1 : vector<64x1xi32> to vector<64x1xi32>
    %4 = vector.broadcast %3 : vector<64x1xi32> to vector<64x8xi32>
    %5 = vector.extract_strided_slice %0 {offsets = [0, 8], sizes = [64, 8], strides = [1, 1]} : vector<64x64xf32> to vector<64x8xf32>
    %6 = arith.cmpf ogt, %5, %2 : vector<64x8xf32>
    %7 = arith.select %6, %5, %2 : vector<64x8xi1>, vector<64x8xf32>
    %c1_i32 = arith.constant 1 : i32
    %8 = vector.broadcast %c1_i32 : i32 to vector<64x1xi32>
    %9 = arith.addi %1, %8 : vector<64x1xi32>
    %10 = vector.shape_cast %9 : vector<64x1xi32> to vector<64x1xi32>
    %11 = vector.broadcast %10 : vector<64x1xi32> to vector<64x8xi32>
    %12 = arith.select %6, %11, %4 : vector<64x8xi1>, vector<64x8xi32>
    %13 = vector.extract_strided_slice %0 {offsets = [0, 16], sizes = [64, 8], strides = [1, 1]} : vector<64x64xf32> to vector<64x8xf32>
    %14 = arith.cmpf ogt, %13, %7 : vector<64x8xf32>
    %15 = arith.select %14, %13, %7 : vector<64x8xi1>, vector<64x8xf32>
    %c8_i32 = arith.constant 8 : i32
    %16 = vector.broadcast %c8_i32 : i32 to vector<64x1xi32>
    %17 = arith.addi %1, %16 : vector<64x1xi32>
    %18 = vector.shape_cast %17 : vector<64x1xi32> to vector<64x1xi32>
    %19 = vector.broadcast %18 : vector<64x1xi32> to vector<64x8xi32>
    %20 = arith.select %14, %19, %12 : vector<64x8xi1>, vector<64x8xi32>
    %21 = vector.extract_strided_slice %0 {offsets = [0, 24], sizes = [64, 8], strides = [1, 1]} : vector<64x64xf32> to vector<64x8xf32>
    %22 = arith.cmpf ogt, %21, %15 : vector<64x8xf32>
    %23 = arith.select %22, %21, %15 : vector<64x8xi1>, vector<64x8xf32>
    %c9_i32 = arith.constant 9 : i32
    %24 = vector.broadcast %c9_i32 : i32 to vector<64x1xi32>
    %25 = arith.addi %1, %24 : vector<64x1xi32>
    %26 = vector.shape_cast %25 : vector<64x1xi32> to vector<64x1xi32>
    %27 = vector.broadcast %26 : vector<64x1xi32> to vector<64x8xi32>
    %28 = arith.select %22, %27, %20 : vector<64x8xi1>, vector<64x8xi32>
    %29 = vector.extract_strided_slice %0 {offsets = [0, 32], sizes = [64, 8], strides = [1, 1]} : vector<64x64xf32> to vector<64x8xf32>
    %30 = arith.cmpf ogt, %29, %23 : vector<64x8xf32>
    %31 = arith.select %30, %29, %23 : vector<64x8xi1>, vector<64x8xf32>
    %c64_i32 = arith.constant 64 : i32
    %32 = vector.broadcast %c64_i32 : i32 to vector<64x1xi32>
    %33 = arith.addi %1, %32 : vector<64x1xi32>
    %34 = vector.shape_cast %33 : vector<64x1xi32> to vector<64x1xi32>
    %35 = vector.broadcast %34 : vector<64x1xi32> to vector<64x8xi32>
    %36 = arith.select %30, %35, %28 : vector<64x8xi1>, vector<64x8xi32>
    %37 = vector.extract_strided_slice %0 {offsets = [0, 40], sizes = [64, 8], strides = [1, 1]} : vector<64x64xf32> to vector<64x8xf32>
    %38 = arith.cmpf ogt, %37, %31 : vector<64x8xf32>
    %39 = arith.select %38, %37, %31 : vector<64x8xi1>, vector<64x8xf32>
    %c65_i32 = arith.constant 65 : i32
    %40 = vector.broadcast %c65_i32 : i32 to vector<64x1xi32>
    %41 = arith.addi %1, %40 : vector<64x1xi32>
    %42 = vector.shape_cast %41 : vector<64x1xi32> to vector<64x1xi32>
    %43 = vector.broadcast %42 : vector<64x1xi32> to vector<64x8xi32>
    %44 = arith.select %38, %43, %36 : vector<64x8xi1>, vector<64x8xi32>
    %45 = vector.extract_strided_slice %0 {offsets = [0, 48], sizes = [64, 8], strides = [1, 1]} : vector<64x64xf32> to vector<64x8xf32>
    %46 = arith.cmpf ogt, %45, %39 : vector<64x8xf32>
    %47 = arith.select %46, %45, %39 : vector<64x8xi1>, vector<64x8xf32>
    %c72_i32 = arith.constant 72 : i32
    %48 = vector.broadcast %c72_i32 : i32 to vector<64x1xi32>
    %49 = arith.addi %1, %48 : vector<64x1xi32>
    %50 = vector.shape_cast %49 : vector<64x1xi32> to vector<64x1xi32>
    %51 = vector.broadcast %50 : vector<64x1xi32> to vector<64x8xi32>
    %52 = arith.select %46, %51, %44 : vector<64x8xi1>, vector<64x8xi32>
    %53 = vector.extract_strided_slice %0 {offsets = [0, 56], sizes = [64, 8], strides = [1, 1]} : vector<64x64xf32> to vector<64x8xf32>
    %54 = arith.cmpf ogt, %53, %47 : vector<64x8xf32>
    %55 = arith.select %54, %53, %47 : vector<64x8xi1>, vector<64x8xf32>
    %c73_i32 = arith.constant 73 : i32
    %56 = vector.broadcast %c73_i32 : i32 to vector<64x1xi32>
    %57 = arith.addi %1, %56 : vector<64x1xi32>
    %58 = vector.shape_cast %57 : vector<64x1xi32> to vector<64x1xi32>
    %59 = vector.broadcast %58 : vector<64x1xi32> to vector<64x8xi32>
    %60 = arith.select %54, %59, %52 : vector<64x8xi1>, vector<64x8xi32>
    %c0_3 = arith.constant 0 : index
    %c0_4 = arith.constant 0 : index
    %61 = vector.load %arg4[%c0_3, %c0_4] : memref<64x8xf32, #tpu.memory_space<vmem>>, vector<64x8xf32>
    tpu.vector_store %arg4[%c0_3, %c0_4], %55 {strides = array<i32>} : memref<64x8xf32, #tpu.memory_space<vmem>>, vector<64x8xf32>,
    %c0_5 = arith.constant 0 : index
    %c0_6 = arith.constant 0 : index
    %62 = vector.load %arg5[%c0_5, %c0_6] : memref<64x8xi32, #tpu.memory_space<vmem>>, vector<64x8xi32>
    tpu.vector_store %arg5[%c0_5, %c0_6], %60 {strides = array<i32>} : memref<64x8xi32, #tpu.memory_space<vmem>>, vector<64x8xi32>,
    %63 = arith.truncf %0 : vector<64x64xf32> to vector<64x64xbf16>
    %c0_7 = arith.constant 0 : index
    %c0_8 = arith.constant 0 : index
    %64 = vector.load %arg3[%c0_7, %c0_8] : memref<64x2xbf16, #tpu.memory_space<vmem>>, vector<64x2xbf16>
    %cst = arith.constant dense<0.000000e+00> : vector<64x2xf32>
    %65 = tpu.matmul %63, %64, %cst {dimension_numbers = #tpu.dot_dimension_numbers<[1], [0], [0], [1], [0, 0, 1, 1], [], []>} : vector<64x64xbf16>, vector<64x2xbf16>, vector<64x2xf32> -> vector<64x2xf32>
    %66 = arith.truncf %65 : vector<64x2xf32> to vector<64x2xbf16>
    %c0_9 = arith.constant 0 : index
    %c0_10 = arith.constant 0 : index
    %67 = vector.load %arg6[%c0_9, %c0_10] : memref<64x2xbf16, #tpu.memory_space<vmem>>, vector<64x2xbf16>
    tpu.vector_store %arg6[%c0_9, %c0_10], %66 {strides = array<i32>} : memref<64x2xbf16, #tpu.memory_space<vmem>>, vector<64x2xbf16>,
    %c64_i32_11 = arith.constant 64 : i32
    %68 = arith.muli %arg0, %c64_i32_11 : i32
    %69 = tpu.iota {dimensions = array<i32: 0>} : vector<64x1xi32>
    %70 = vector.broadcast %68 : i32 to vector<64x1xi32>
    %71 = arith.addi %70, %69 : vector<64x1xi32>
    %c128_i32 = arith.constant 128 : i32
    %72 = vector.broadcast %c128_i32 : i32 to vector<64x1xi32>
    %73 = arith.cmpi slt, %71, %72 : vector<64x1xi32>
    %cst_12 = arith.constant 0.000000e+00 : f32
    %74 = vector.shape_cast %73 : vector<64x1xi1> to vector<64x1xi1>
    %75 = vector.broadcast %74 : vector<64x1xi1> to vector<64x2xi1>
    %76 = vector.broadcast %cst_12 : f32 to vector<64x2xf32>
    %77 = arith.select %75, %65, %76 : vector<64x2xi1>, vector<64x2xf32>
    %cst_13 = arith.constant dense<0.000000e+00> : vector<2xf32>
    %78 = vector.multi_reduction <add>, %77, %cst_13 [0] : vector<64x2xf32> to vector<2xf32>
    %79 = vector.shape_cast %78 : vector<2xf32> to vector<1x2xf32>
    %80 = arith.mulf %77, %77 : vector<64x2xf32>
    %cst_14 = arith.constant dense<0.000000e+00> : vector<2xf32>
    %81 = vector.multi_reduction <add>, %80, %cst_14 [0] : vector<64x2xf32> to vector<2xf32>
    %82 = vector.shape_cast %81 : vector<2xf32> to vector<1x2xf32>
    %83 = tpu.iota {dimensions = array<i32: 0>} : vector<2x2xi32>
    %c0_i32 = arith.constant 0 : i32
    %84 = vector.broadcast %c0_i32 : i32 to vector<2x2xi32>
    %85 = arith.cmpi eq, %83, %84 : vector<2x2xi32>
    %86 = vector.shape_cast %79 : vector<1x2xf32> to vector<1x2xf32>
    %87 = vector.broadcast %86 : vector<1x2xf32> to vector<2x2xf32>
    %88 = vector.shape_cast %82 : vector<1x2xf32> to vector<1x2xf32>
    %89 = vector.broadcast %88 : vector<1x2xf32> to vector<2x2xf32>
    %90 = arith.select %85, %87, %89 : vector<2x2xi1>, vector<2x2xf32>
    %c0_15 = arith.constant 0 : index
    %c0_16 = arith.constant 0 : index
    %c0_17 = arith.constant 0 : index
    %91 = vector.load %arg7[%c0_15, %c0_16, %c0_17] : memref<1x2x2xf32, #tpu.memory_space<vmem>>, vector<1x2x2xf32>
    %92 = vector.shape_cast %91 : vector<1x2x2xf32> to vector<2x2xf32>
    %93 = vector.shape_cast %90 : vector<2x2xf32> to vector<1x2x2xf32>
    tpu.vector_store %arg7[%c0_15, %c0_16, %c0_17], %93 {strides = array<i32>} : memref<1x2x2xf32, #tpu.memory_space<vmem>>, vector<1x2x2xf32>,
    return
  }
  func.func @transform_0(%arg0: i32) -> (i32, i32) {
    %c0_i32 = arith.constant 0 : i32
    %c0_i32_0 = arith.constant 0 : i32
    return %arg0, %c0_i32 : i32, i32
  }
  func.func @transform_1(%arg0: i32) -> (i32, i32) {
    %c0_i32 = arith.constant 0 : i32
    %c0_i32_0 = arith.constant 0 : i32
    return %arg0, %c0_i32 : i32, i32
  }
  func.func @transform_2(%arg0: i32) -> (i32, i32) {
    %c0_i32 = arith.constant 0 : i32
    %c0_i32_0 = arith.constant 0 : i32
    %c0_i32_1 = arith.constant 0 : i32
    return %c0_i32, %c0_i32_0 : i32, i32
  }
  func.func @transform_3(%arg0: i32) -> (i32, i32) {
    %c0_i32 = arith.constant 0 : i32
    %c0_i32_0 = arith.constant 0 : i32
    return %arg0, %c0_i32 : i32, i32
  }
  func.func @transform_4(%arg0: i32) -> (i32, i32) {
    %c0_i32 = arith.constant 0 : i32
    %c0_i32_0 = arith.constant 0 : i32
    return %arg0, %c0_i32 : i32, i32
  }
  func.func @transform_5(%arg0: i32) -> (i32, i32) {
    %c0_i32 = arith.constant 0 : i32
    %c0_i32_0 = arith.constant 0 : i32
    return %arg0, %c0_i32 : i32, i32
  }
  func.func @transform_6(%arg0: i32) -> (i32, i32, i32) {
    %c0_i32 = arith.constant 0 : i32
    %c0_i32_0 = arith.constant 0 : i32
    %c0_i32_1 = arith.constant 0 : i32
    return %arg0, %c0_i32, %c0_i32_0 : i32, i32, i32
  }
}

module attributes {stable_mosaic.version = 11 : i64} {
  func.func @_conv2_kernel(%arg0: i32, %arg1: i32, %arg2: memref<1x1x4x4x2xbf16, #tpu.memory_space<vmem>>, %arg3: memref<1x1x4x4x2xbf16, #tpu.memory_space<vmem>>, %arg4: memref<1x1x4x4x2xbf16, #tpu.memory_space<vmem>>, %arg5: memref<1x2xf32, #tpu.memory_space<vmem>>, %arg6: memref<1x2xf32, #tpu.memory_space<vmem>>, %arg7: memref<54x2xbf16, #tpu.memory_space<vmem>>, %arg8: memref<1x1x4x4x2xf32, #tpu.memory_space<vmem>>, %arg9: memref<1x1x2x2xf32, #tpu.memory_space<vmem>>, %arg10: memref<3x6x6x2xf32, #tpu.memory_space<vmem>>, %arg11: memref<4x4x54xf32, #tpu.memory_space<vmem>>) attributes {dimension_semantics = [#tpu.dimension_semantics<parallel>, #tpu.dimension_semantics<parallel>], iteration_bounds = array<i64: 2, 4>, scalar_prefetch = 0 : i64, scratch_operands = 2 : i64, tpu.core_type = #tpu.core_type<tc>, window_params = [{transform_indices = @transform_0, window_bounds = array<i64: 1, 1, 4, 4, 2>}, {transform_indices = @transform_1, window_bounds = array<i64: 1, 1, 4, 4, 2>}, {transform_indices = @transform_2, window_bounds = array<i64: 1, 1, 4, 4, 2>}, {pipeline_mode = #tpu.pipeline_mode<synchronous>, transform_indices = @transform_3, window_bounds = array<i64: 1, 2>}, {pipeline_mode = #tpu.pipeline_mode<synchronous>, transform_indices = @transform_4, window_bounds = array<i64: 1, 2>}, {pipeline_mode = #tpu.pipeline_mode<synchronous>, transform_indices = @transform_5, window_bounds = array<i64: 54, 2>}, {transform_indices = @transform_6, window_bounds = array<i64: 1, 1, 4, 4, 2>}, {transform_indices = @transform_7, window_bounds = array<i64: 1, 1, 2, 2>}]} {
    %c0 = arith.constant 0 : index
    %c0_0 = arith.constant 0 : index
    %0 = vector.load %arg5[%c0, %c0_0] : memref<1x2xf32, #tpu.memory_space<vmem>>, vector<1x2xf32>
    %c0_1 = arith.constant 0 : index
    %c0_2 = arith.constant 0 : index
    %1 = vector.load %arg6[%c0_1, %c0_2] : memref<1x2xf32, #tpu.memory_space<vmem>>, vector<1x2xf32>
    %cst = arith.constant 0.000000e+00 : f32
    %2 = vector.broadcast %cst : f32 to vector<3x6x6x2xf32>
    %c0_3 = arith.constant 0 : index
    %c0_4 = arith.constant 0 : index
    %c0_5 = arith.constant 0 : index
    %c0_6 = arith.constant 0 : index
    %3 = vector.load %arg10[%c0_3, %c0_4, %c0_5, %c0_6] : memref<3x6x6x2xf32, #tpu.memory_space<vmem>>, vector<3x6x6x2xf32>
    tpu.vector_store %arg10[%c0_3, %c0_4, %c0_5, %c0_6], %2 {strides = array<i32>} : memref<3x6x6x2xf32, #tpu.memory_space<vmem>>, vector<3x6x6x2xf32>,
    %c0_i32 = arith.constant 0 : i32
    %4 = arith.addi %arg1, %c0_i32 : i32
    %c1_i32 = arith.constant 1 : i32
    %5 = arith.subi %4, %c1_i32 : i32
    %c0_7 = arith.constant 0 : index
    %c0_8 = arith.constant 0 : index
    %c0_9 = arith.constant 0 : index
    %c0_10 = arith.constant 0 : index
    %c0_11 = arith.constant 0 : index
    %6 = vector.load %arg2[%c0_7, %c0_8, %c0_9, %c0_10, %c0_11] : memref<1x1x4x4x2xbf16, #tpu.memory_space<vmem>>, vector<1x1x4x4x2xbf16>
    %7 = vector.shape_cast %6 : vector<1x1x4x4x2xbf16> to vector<4x4x2xbf16>
    %8 = arith.extf %7 : vector<4x4x2xbf16> to vector<4x4x2xf32>
    %9 = vector.shape_cast %0 : vector<1x2xf32> to vector<1x1x2xf32>
    %10 = vector.broadcast %9 : vector<1x1x2xf32> to vector<4x4x2xf32>
    %11 = arith.mulf %8, %10 : vector<4x4x2xf32>
    %12 = vector.shape_cast %1 : vector<1x2xf32> to vector<1x1x2xf32>
    %13 = vector.broadcast %12 : vector<1x1x2xf32> to vector<4x4x2xf32>
    %14 = arith.addf %11, %13 : vector<4x4x2xf32>
    %cst_12 = arith.constant 0.000000e+00 : f32
    %15 = vector.broadcast %cst_12 : f32 to vector<4x4x2xf32>
    %16 = arith.maximumf %14, %15 : vector<4x4x2xf32>
    %c0_i32_13 = arith.constant 0 : i32
    %17 = arith.cmpi sge, %5, %c0_i32_13 : i32
    %c4_i32 = arith.constant 4 : i32
    %18 = arith.cmpi slt, %5, %c4_i32 : i32
    %19 = arith.andi %17, %18 : i1
    %cst_14 = arith.constant 0.000000e+00 : f32
    %20 = vector.broadcast %cst_14 : f32 to vector<4x4x2xf32>
    %21 = arith.select %19, %16, %20 : vector<4x4x2xf32>
    %c0_15 = arith.constant 0 : index
    %c1 = arith.constant 1 : index
    %c1_16 = arith.constant 1 : index
    %c0_17 = arith.constant 0 : index
    %22 = vector.load %arg10[%c0_15, %c1, %c1_16, %c0_17] : memref<3x6x6x2xf32, #tpu.memory_space<vmem>>, vector<1x4x4x2xf32>
    %23 = vector.shape_cast %22 : vector<1x4x4x2xf32> to vector<4x4x2xf32>
    %24 = vector.shape_cast %21 : vector<4x4x2xf32> to vector<1x4x4x2xf32>
    tpu.vector_store %arg10[%c0_15, %c1, %c1_16, %c0_17], %24 {strides = array<i32>} : memref<3x6x6x2xf32, #tpu.memory_space<vmem>>, vector<1x4x4x2xf32>,
    %c1_i32_18 = arith.constant 1 : i32
    %25 = arith.addi %arg1, %c1_i32_18 : i32
    %c1_i32_19 = arith.constant 1 : i32
    %26 = arith.subi %25, %c1_i32_19 : i32
    %c0_20 = arith.constant 0 : index
    %c0_21 = arith.constant 0 : index
    %c0_22 = arith.constant 0 : index
    %c0_23 = arith.constant 0 : index
    %c0_24 = arith.constant 0 : index
    %27 = vector.load %arg3[%c0_20, %c0_21, %c0_22, %c0_23, %c0_24] : memref<1x1x4x4x2xbf16, #tpu.memory_space<vmem>>, vector<1x1x4x4x2xbf16>
    %28 = vector.shape_cast %27 : vector<1x1x4x4x2xbf16> to vector<4x4x2xbf16>
    %29 = arith.extf %28 : vector<4x4x2xbf16> to vector<4x4x2xf32>
    %30 = vector.shape_cast %0 : vector<1x2xf32> to vector<1x1x2xf32>
    %31 = vector.broadcast %30 : vector<1x1x2xf32> to vector<4x4x2xf32>
    %32 = arith.mulf %29, %31 : vector<4x4x2xf32>
    %33 = vector.shape_cast %1 : vector<1x2xf32> to vector<1x1x2xf32>
    %34 = vector.broadcast %33 : vector<1x1x2xf32> to vector<4x4x2xf32>
    %35 = arith.addf %32, %34 : vector<4x4x2xf32>
    %cst_25 = arith.constant 0.000000e+00 : f32
    %36 = vector.broadcast %cst_25 : f32 to vector<4x4x2xf32>
    %37 = arith.maximumf %35, %36 : vector<4x4x2xf32>
    %c0_i32_26 = arith.constant 0 : i32
    %38 = arith.cmpi sge, %26, %c0_i32_26 : i32
    %c4_i32_27 = arith.constant 4 : i32
    %39 = arith.cmpi slt, %26, %c4_i32_27 : i32
    %40 = arith.andi %38, %39 : i1
    %cst_28 = arith.constant 0.000000e+00 : f32
    %41 = vector.broadcast %cst_28 : f32 to vector<4x4x2xf32>
    %42 = arith.select %40, %37, %41 : vector<4x4x2xf32>
    %c1_29 = arith.constant 1 : index
    %c1_30 = arith.constant 1 : index
    %c1_31 = arith.constant 1 : index
    %c0_32 = arith.constant 0 : index
    %43 = vector.load %arg10[%c1_29, %c1_30, %c1_31, %c0_32] : memref<3x6x6x2xf32, #tpu.memory_space<vmem>>, vector<1x4x4x2xf32>
    %44 = vector.shape_cast %43 : vector<1x4x4x2xf32> to vector<4x4x2xf32>
    %45 = vector.shape_cast %42 : vector<4x4x2xf32> to vector<1x4x4x2xf32>
    tpu.vector_store %arg10[%c1_29, %c1_30, %c1_31, %c0_32], %45 {strides = array<i32>} : memref<3x6x6x2xf32, #tpu.memory_space<vmem>>, vector<1x4x4x2xf32>,
    %c2_i32 = arith.constant 2 : i32
    %46 = arith.addi %arg1, %c2_i32 : i32
    %c1_i32_33 = arith.constant 1 : i32
    %47 = arith.subi %46, %c1_i32_33 : i32
    %c0_34 = arith.constant 0 : index
    %c0_35 = arith.constant 0 : index
    %c0_36 = arith.constant 0 : index
    %c0_37 = arith.constant 0 : index
    %c0_38 = arith.constant 0 : index
    %48 = vector.load %arg4[%c0_34, %c0_35, %c0_36, %c0_37, %c0_38] : memref<1x1x4x4x2xbf16, #tpu.memory_space<vmem>>, vector<1x1x4x4x2xbf16>
    %49 = vector.shape_cast %48 : vector<1x1x4x4x2xbf16> to vector<4x4x2xbf16>
    %50 = arith.extf %49 : vector<4x4x2xbf16> to vector<4x4x2xf32>
    %51 = vector.shape_cast %0 : vector<1x2xf32> to vector<1x1x2xf32>
    %52 = vector.broadcast %51 : vector<1x1x2xf32> to vector<4x4x2xf32>
    %53 = arith.mulf %50, %52 : vector<4x4x2xf32>
    %54 = vector.shape_cast %1 : vector<1x2xf32> to vector<1x1x2xf32>
    %55 = vector.broadcast %54 : vector<1x1x2xf32> to vector<4x4x2xf32>
    %56 = arith.addf %53, %55 : vector<4x4x2xf32>
    %cst_39 = arith.constant 0.000000e+00 : f32
    %57 = vector.broadcast %cst_39 : f32 to vector<4x4x2xf32>
    %58 = arith.maximumf %56, %57 : vector<4x4x2xf32>
    %c0_i32_40 = arith.constant 0 : i32
    %59 = arith.cmpi sge, %47, %c0_i32_40 : i32
    %c4_i32_41 = arith.constant 4 : i32
    %60 = arith.cmpi slt, %47, %c4_i32_41 : i32
    %61 = arith.andi %59, %60 : i1
    %cst_42 = arith.constant 0.000000e+00 : f32
    %62 = vector.broadcast %cst_42 : f32 to vector<4x4x2xf32>
    %63 = arith.select %61, %58, %62 : vector<4x4x2xf32>
    %c2 = arith.constant 2 : index
    %c1_43 = arith.constant 1 : index
    %c1_44 = arith.constant 1 : index
    %c0_45 = arith.constant 0 : index
    %64 = vector.load %arg10[%c2, %c1_43, %c1_44, %c0_45] : memref<3x6x6x2xf32, #tpu.memory_space<vmem>>, vector<1x4x4x2xf32>
    %65 = vector.shape_cast %64 : vector<1x4x4x2xf32> to vector<4x4x2xf32>
    %66 = vector.shape_cast %63 : vector<4x4x2xf32> to vector<1x4x4x2xf32>
    tpu.vector_store %arg10[%c2, %c1_43, %c1_44, %c0_45], %66 {strides = array<i32>} : memref<3x6x6x2xf32, #tpu.memory_space<vmem>>, vector<1x4x4x2xf32>,
    %c0_46 = arith.constant 0 : index
    %c0_47 = arith.constant 0 : index
    %c0_48 = arith.constant 0 : index
    %c0_49 = arith.constant 0 : index
    %67 = vector.load %arg10[%c0_46, %c0_47, %c0_48, %c0_49] : memref<3x6x6x2xf32, #tpu.memory_space<vmem>>, vector<1x4x4x2xf32>
    %68 = vector.shape_cast %67 : vector<1x4x4x2xf32> to vector<4x4x2xf32>
    %c0_50 = arith.constant 0 : index
    %c0_51 = arith.constant 0 : index
    %c0_52 = arith.constant 0 : index
    %69 = vector.load %arg11[%c0_50, %c0_51, %c0_52] : memref<4x4x54xf32, #tpu.memory_space<vmem>>, vector<4x4x2xf32>
    tpu.vector_store %arg11[%c0_50, %c0_51, %c0_52], %68 {strides = array<i32>} : memref<4x4x54xf32, #tpu.memory_space<vmem>>, vector<4x4x2xf32>,
    %c0_53 = arith.constant 0 : index
    %c0_54 = arith.constant 0 : index
    %c1_55 = arith.constant 1 : index
    %c0_56 = arith.constant 0 : index
    %70 = vector.load %arg10[%c0_53, %c0_54, %c1_55, %c0_56] : memref<3x6x6x2xf32, #tpu.memory_space<vmem>>, vector<1x4x4x2xf32>
    %71 = vector.shape_cast %70 : vector<1x4x4x2xf32> to vector<4x4x2xf32>
    %c0_57 = arith.constant 0 : index
    %c0_58 = arith.constant 0 : index
    %c2_59 = arith.constant 2 : index
    %72 = vector.load %arg11[%c0_57, %c0_58, %c2_59] : memref<4x4x54xf32, #tpu.memory_space<vmem>>, vector<4x4x2xf32>
    tpu.vector_store %arg11[%c0_57, %c0_58, %c2_59], %71 {strides = array<i32>} : memref<4x4x54xf32, #tpu.memory_space<vmem>>, vector<4x4x2xf32>,
    %c0_60 = arith.constant 0 : index
    %c0_61 = arith.constant 0 : index
    %c2_62 = arith.constant 2 : index
    %c0_63 = arith.constant 0 : index
    %73 = vector.load %arg10[%c0_60, %c0_61, %c2_62, %c0_63] : memref<3x6x6x2xf32, #tpu.memory_space<vmem>>, vector<1x4x4x2xf32>
    %74 = vector.shape_cast %73 : vector<1x4x4x2xf32> to vector<4x4x2xf32>
    %c0_64 = arith.constant 0 : index
    %c0_65 = arith.constant 0 : index
    %c4 = arith.constant 4 : index
    %75 = vector.load %arg11[%c0_64, %c0_65, %c4] : memref<4x4x54xf32, #tpu.memory_space<vmem>>, vector<4x4x2xf32>
    tpu.vector_store %arg11[%c0_64, %c0_65, %c4], %74 {strides = array<i32>} : memref<4x4x54xf32, #tpu.memory_space<vmem>>, vector<4x4x2xf32>,
    %c0_66 = arith.constant 0 : index
    %c1_67 = arith.constant 1 : index
    %c0_68 = arith.constant 0 : index
    %c0_69 = arith.constant 0 : index
    %76 = vector.load %arg10[%c0_66, %c1_67, %c0_68, %c0_69] : memref<3x6x6x2xf32, #tpu.memory_space<vmem>>, vector<1x4x4x2xf32>
    %77 = vector.shape_cast %76 : vector<1x4x4x2xf32> to vector<4x4x2xf32>
    %c0_70 = arith.constant 0 : index
    %c0_71 = arith.constant 0 : index
    %c6 = arith.constant 6 : index
    %78 = vector.load %arg11[%c0_70, %c0_71, %c6] : memref<4x4x54xf32, #tpu.memory_space<vmem>>, vector<4x4x2xf32>
    tpu.vector_store %arg11[%c0_70, %c0_71, %c6], %77 {strides = array<i32>} : memref<4x4x54xf32, #tpu.memory_space<vmem>>, vector<4x4x2xf32>,
    %c0_72 = arith.constant 0 : index
    %c1_73 = arith.constant 1 : index
    %c1_74 = arith.constant 1 : index
    %c0_75 = arith.constant 0 : index
    %79 = vector.load %arg10[%c0_72, %c1_73, %c1_74, %c0_75] : memref<3x6x6x2xf32, #tpu.memory_space<vmem>>, vector<1x4x4x2xf32>
    %80 = vector.shape_cast %79 : vector<1x4x4x2xf32> to vector<4x4x2xf32>
    %c0_76 = arith.constant 0 : index
    %c0_77 = arith.constant 0 : index
    %c8 = arith.constant 8 : index
    %81 = vector.load %arg11[%c0_76, %c0_77, %c8] : memref<4x4x54xf32, #tpu.memory_space<vmem>>, vector<4x4x2xf32>
    tpu.vector_store %arg11[%c0_76, %c0_77, %c8], %80 {strides = array<i32>} : memref<4x4x54xf32, #tpu.memory_space<vmem>>, vector<4x4x2xf32>,
    %c0_78 = arith.constant 0 : index
    %c1_79 = arith.constant 1 : index
    %c2_80 = arith.constant 2 : index
    %c0_81 = arith.constant 0 : index
    %82 = vector.load %arg10[%c0_78, %c1_79, %c2_80, %c0_81] : memref<3x6x6x2xf32, #tpu.memory_space<vmem>>, vector<1x4x4x2xf32>
    %83 = vector.shape_cast %82 : vector<1x4x4x2xf32> to vector<4x4x2xf32>
    %c0_82 = arith.constant 0 : index
    %c0_83 = arith.constant 0 : index
    %c10 = arith.constant 10 : index
    %84 = vector.load %arg11[%c0_82, %c0_83, %c10] : memref<4x4x54xf32, #tpu.memory_space<vmem>>, vector<4x4x2xf32>
    tpu.vector_store %arg11[%c0_82, %c0_83, %c10], %83 {strides = array<i32>} : memref<4x4x54xf32, #tpu.memory_space<vmem>>, vector<4x4x2xf32>,
    %c0_84 = arith.constant 0 : index
    %c2_85 = arith.constant 2 : index
    %c0_86 = arith.constant 0 : index
    %c0_87 = arith.constant 0 : index
    %85 = vector.load %arg10[%c0_84, %c2_85, %c0_86, %c0_87] : memref<3x6x6x2xf32, #tpu.memory_space<vmem>>, vector<1x4x4x2xf32>
    %86 = vector.shape_cast %85 : vector<1x4x4x2xf32> to vector<4x4x2xf32>
    %c0_88 = arith.constant 0 : index
    %c0_89 = arith.constant 0 : index
    %c12 = arith.constant 12 : index
    %87 = vector.load %arg11[%c0_88, %c0_89, %c12] : memref<4x4x54xf32, #tpu.memory_space<vmem>>, vector<4x4x2xf32>
    tpu.vector_store %arg11[%c0_88, %c0_89, %c12], %86 {strides = array<i32>} : memref<4x4x54xf32, #tpu.memory_space<vmem>>, vector<4x4x2xf32>,
    %c0_90 = arith.constant 0 : index
    %c2_91 = arith.constant 2 : index
    %c1_92 = arith.constant 1 : index
    %c0_93 = arith.constant 0 : index
    %88 = vector.load %arg10[%c0_90, %c2_91, %c1_92, %c0_93] : memref<3x6x6x2xf32, #tpu.memory_space<vmem>>, vector<1x4x4x2xf32>
    %89 = vector.shape_cast %88 : vector<1x4x4x2xf32> to vector<4x4x2xf32>
    %c0_94 = arith.constant 0 : index
    %c0_95 = arith.constant 0 : index
    %c14 = arith.constant 14 : index
    %90 = vector.load %arg11[%c0_94, %c0_95, %c14] : memref<4x4x54xf32, #tpu.memory_space<vmem>>, vector<4x4x2xf32>
    tpu.vector_store %arg11[%c0_94, %c0_95, %c14], %89 {strides = array<i32>} : memref<4x4x54xf32, #tpu.memory_space<vmem>>, vector<4x4x2xf32>,
    %c0_96 = arith.constant 0 : index
    %c2_97 = arith.constant 2 : index
    %c2_98 = arith.constant 2 : index
    %c0_99 = arith.constant 0 : index
    %91 = vector.load %arg10[%c0_96, %c2_97, %c2_98, %c0_99] : memref<3x6x6x2xf32, #tpu.memory_space<vmem>>, vector<1x4x4x2xf32>
    %92 = vector.shape_cast %91 : vector<1x4x4x2xf32> to vector<4x4x2xf32>
    %c0_100 = arith.constant 0 : index
    %c0_101 = arith.constant 0 : index
    %c16 = arith.constant 16 : index
    %93 = vector.load %arg11[%c0_100, %c0_101, %c16] : memref<4x4x54xf32, #tpu.memory_space<vmem>>, vector<4x4x2xf32>
    tpu.vector_store %arg11[%c0_100, %c0_101, %c16], %92 {strides = array<i32>} : memref<4x4x54xf32, #tpu.memory_space<vmem>>, vector<4x4x2xf32>,
    %c1_102 = arith.constant 1 : index
    %c0_103 = arith.constant 0 : index
    %c0_104 = arith.constant 0 : index
    %c0_105 = arith.constant 0 : index
    %94 = vector.load %arg10[%c1_102, %c0_103, %c0_104, %c0_105] : memref<3x6x6x2xf32, #tpu.memory_space<vmem>>, vector<1x4x4x2xf32>
    %95 = vector.shape_cast %94 : vector<1x4x4x2xf32> to vector<4x4x2xf32>
    %c0_106 = arith.constant 0 : index
    %c0_107 = arith.constant 0 : index
    %c18 = arith.constant 18 : index
    %96 = vector.load %arg11[%c0_106, %c0_107, %c18] : memref<4x4x54xf32, #tpu.memory_space<vmem>>, vector<4x4x2xf32>
    tpu.vector_store %arg11[%c0_106, %c0_107, %c18], %95 {strides = array<i32>} : memref<4x4x54xf32, #tpu.memory_space<vmem>>, vector<4x4x2xf32>,
    %c1_108 = arith.constant 1 : index
    %c0_109 = arith.constant 0 : index
    %c1_110 = arith.constant 1 : index
    %c0_111 = arith.constant 0 : index
    %97 = vector.load %arg10[%c1_108, %c0_109, %c1_110, %c0_111] : memref<3x6x6x2xf32, #tpu.memory_space<vmem>>, vector<1x4x4x2xf32>
    %98 = vector.shape_cast %97 : vector<1x4x4x2xf32> to vector<4x4x2xf32>
    %c0_112 = arith.constant 0 : index
    %c0_113 = arith.constant 0 : index
    %c20 = arith.constant 20 : index
    %99 = vector.load %arg11[%c0_112, %c0_113, %c20] : memref<4x4x54xf32, #tpu.memory_space<vmem>>, vector<4x4x2xf32>
    tpu.vector_store %arg11[%c0_112, %c0_113, %c20], %98 {strides = array<i32>} : memref<4x4x54xf32, #tpu.memory_space<vmem>>, vector<4x4x2xf32>,
    %c1_114 = arith.constant 1 : index
    %c0_115 = arith.constant 0 : index
    %c2_116 = arith.constant 2 : index
    %c0_117 = arith.constant 0 : index
    %100 = vector.load %arg10[%c1_114, %c0_115, %c2_116, %c0_117] : memref<3x6x6x2xf32, #tpu.memory_space<vmem>>, vector<1x4x4x2xf32>
    %101 = vector.shape_cast %100 : vector<1x4x4x2xf32> to vector<4x4x2xf32>
    %c0_118 = arith.constant 0 : index
    %c0_119 = arith.constant 0 : index
    %c22 = arith.constant 22 : index
    %102 = vector.load %arg11[%c0_118, %c0_119, %c22] : memref<4x4x54xf32, #tpu.memory_space<vmem>>, vector<4x4x2xf32>
    tpu.vector_store %arg11[%c0_118, %c0_119, %c22], %101 {strides = array<i32>} : memref<4x4x54xf32, #tpu.memory_space<vmem>>, vector<4x4x2xf32>,
    %c1_120 = arith.constant 1 : index
    %c1_121 = arith.constant 1 : index
    %c0_122 = arith.constant 0 : index
    %c0_123 = arith.constant 0 : index
    %103 = vector.load %arg10[%c1_120, %c1_121, %c0_122, %c0_123] : memref<3x6x6x2xf32, #tpu.memory_space<vmem>>, vector<1x4x4x2xf32>
    %104 = vector.shape_cast %103 : vector<1x4x4x2xf32> to vector<4x4x2xf32>
    %c0_124 = arith.constant 0 : index
    %c0_125 = arith.constant 0 : index
    %c24 = arith.constant 24 : index
    %105 = vector.load %arg11[%c0_124, %c0_125, %c24] : memref<4x4x54xf32, #tpu.memory_space<vmem>>, vector<4x4x2xf32>
    tpu.vector_store %arg11[%c0_124, %c0_125, %c24], %104 {strides = array<i32>} : memref<4x4x54xf32, #tpu.memory_space<vmem>>, vector<4x4x2xf32>,
    %c1_126 = arith.constant 1 : index
    %c1_127 = arith.constant 1 : index
    %c1_128 = arith.constant 1 : index
    %c0_129 = arith.constant 0 : index
    %106 = vector.load %arg10[%c1_126, %c1_127, %c1_128, %c0_129] : memref<3x6x6x2xf32, #tpu.memory_space<vmem>>, vector<1x4x4x2xf32>
    %107 = vector.shape_cast %106 : vector<1x4x4x2xf32> to vector<4x4x2xf32>
    %c0_130 = arith.constant 0 : index
    %c0_131 = arith.constant 0 : index
    %c26 = arith.constant 26 : index
    %108 = vector.load %arg11[%c0_130, %c0_131, %c26] : memref<4x4x54xf32, #tpu.memory_space<vmem>>, vector<4x4x2xf32>
    tpu.vector_store %arg11[%c0_130, %c0_131, %c26], %107 {strides = array<i32>} : memref<4x4x54xf32, #tpu.memory_space<vmem>>, vector<4x4x2xf32>,
    %c1_132 = arith.constant 1 : index
    %c1_133 = arith.constant 1 : index
    %c2_134 = arith.constant 2 : index
    %c0_135 = arith.constant 0 : index
    %109 = vector.load %arg10[%c1_132, %c1_133, %c2_134, %c0_135] : memref<3x6x6x2xf32, #tpu.memory_space<vmem>>, vector<1x4x4x2xf32>
    %110 = vector.shape_cast %109 : vector<1x4x4x2xf32> to vector<4x4x2xf32>
    %c0_136 = arith.constant 0 : index
    %c0_137 = arith.constant 0 : index
    %c28 = arith.constant 28 : index
    %111 = vector.load %arg11[%c0_136, %c0_137, %c28] : memref<4x4x54xf32, #tpu.memory_space<vmem>>, vector<4x4x2xf32>
    tpu.vector_store %arg11[%c0_136, %c0_137, %c28], %110 {strides = array<i32>} : memref<4x4x54xf32, #tpu.memory_space<vmem>>, vector<4x4x2xf32>,
    %c1_138 = arith.constant 1 : index
    %c2_139 = arith.constant 2 : index
    %c0_140 = arith.constant 0 : index
    %c0_141 = arith.constant 0 : index
    %112 = vector.load %arg10[%c1_138, %c2_139, %c0_140, %c0_141] : memref<3x6x6x2xf32, #tpu.memory_space<vmem>>, vector<1x4x4x2xf32>
    %113 = vector.shape_cast %112 : vector<1x4x4x2xf32> to vector<4x4x2xf32>
    %c0_142 = arith.constant 0 : index
    %c0_143 = arith.constant 0 : index
    %c30 = arith.constant 30 : index
    %114 = vector.load %arg11[%c0_142, %c0_143, %c30] : memref<4x4x54xf32, #tpu.memory_space<vmem>>, vector<4x4x2xf32>
    tpu.vector_store %arg11[%c0_142, %c0_143, %c30], %113 {strides = array<i32>} : memref<4x4x54xf32, #tpu.memory_space<vmem>>, vector<4x4x2xf32>,
    %c1_144 = arith.constant 1 : index
    %c2_145 = arith.constant 2 : index
    %c1_146 = arith.constant 1 : index
    %c0_147 = arith.constant 0 : index
    %115 = vector.load %arg10[%c1_144, %c2_145, %c1_146, %c0_147] : memref<3x6x6x2xf32, #tpu.memory_space<vmem>>, vector<1x4x4x2xf32>
    %116 = vector.shape_cast %115 : vector<1x4x4x2xf32> to vector<4x4x2xf32>
    %c0_148 = arith.constant 0 : index
    %c0_149 = arith.constant 0 : index
    %c32 = arith.constant 32 : index
    %117 = vector.load %arg11[%c0_148, %c0_149, %c32] : memref<4x4x54xf32, #tpu.memory_space<vmem>>, vector<4x4x2xf32>
    tpu.vector_store %arg11[%c0_148, %c0_149, %c32], %116 {strides = array<i32>} : memref<4x4x54xf32, #tpu.memory_space<vmem>>, vector<4x4x2xf32>,
    %c1_150 = arith.constant 1 : index
    %c2_151 = arith.constant 2 : index
    %c2_152 = arith.constant 2 : index
    %c0_153 = arith.constant 0 : index
    %118 = vector.load %arg10[%c1_150, %c2_151, %c2_152, %c0_153] : memref<3x6x6x2xf32, #tpu.memory_space<vmem>>, vector<1x4x4x2xf32>
    %119 = vector.shape_cast %118 : vector<1x4x4x2xf32> to vector<4x4x2xf32>
    %c0_154 = arith.constant 0 : index
    %c0_155 = arith.constant 0 : index
    %c34 = arith.constant 34 : index
    %120 = vector.load %arg11[%c0_154, %c0_155, %c34] : memref<4x4x54xf32, #tpu.memory_space<vmem>>, vector<4x4x2xf32>
    tpu.vector_store %arg11[%c0_154, %c0_155, %c34], %119 {strides = array<i32>} : memref<4x4x54xf32, #tpu.memory_space<vmem>>, vector<4x4x2xf32>,
    %c2_156 = arith.constant 2 : index
    %c0_157 = arith.constant 0 : index
    %c0_158 = arith.constant 0 : index
    %c0_159 = arith.constant 0 : index
    %121 = vector.load %arg10[%c2_156, %c0_157, %c0_158, %c0_159] : memref<3x6x6x2xf32, #tpu.memory_space<vmem>>, vector<1x4x4x2xf32>
    %122 = vector.shape_cast %121 : vector<1x4x4x2xf32> to vector<4x4x2xf32>
    %c0_160 = arith.constant 0 : index
    %c0_161 = arith.constant 0 : index
    %c36 = arith.constant 36 : index
    %123 = vector.load %arg11[%c0_160, %c0_161, %c36] : memref<4x4x54xf32, #tpu.memory_space<vmem>>, vector<4x4x2xf32>
    tpu.vector_store %arg11[%c0_160, %c0_161, %c36], %122 {strides = array<i32>} : memref<4x4x54xf32, #tpu.memory_space<vmem>>, vector<4x4x2xf32>,
    %c2_162 = arith.constant 2 : index
    %c0_163 = arith.constant 0 : index
    %c1_164 = arith.constant 1 : index
    %c0_165 = arith.constant 0 : index
    %124 = vector.load %arg10[%c2_162, %c0_163, %c1_164, %c0_165] : memref<3x6x6x2xf32, #tpu.memory_space<vmem>>, vector<1x4x4x2xf32>
    %125 = vector.shape_cast %124 : vector<1x4x4x2xf32> to vector<4x4x2xf32>
    %c0_166 = arith.constant 0 : index
    %c0_167 = arith.constant 0 : index
    %c38 = arith.constant 38 : index
    %126 = vector.load %arg11[%c0_166, %c0_167, %c38] : memref<4x4x54xf32, #tpu.memory_space<vmem>>, vector<4x4x2xf32>
    tpu.vector_store %arg11[%c0_166, %c0_167, %c38], %125 {strides = array<i32>} : memref<4x4x54xf32, #tpu.memory_space<vmem>>, vector<4x4x2xf32>,
    %c2_168 = arith.constant 2 : index
    %c0_169 = arith.constant 0 : index
    %c2_170 = arith.constant 2 : index
    %c0_171 = arith.constant 0 : index
    %127 = vector.load %arg10[%c2_168, %c0_169, %c2_170, %c0_171] : memref<3x6x6x2xf32, #tpu.memory_space<vmem>>, vector<1x4x4x2xf32>
    %128 = vector.shape_cast %127 : vector<1x4x4x2xf32> to vector<4x4x2xf32>
    %c0_172 = arith.constant 0 : index
    %c0_173 = arith.constant 0 : index
    %c40 = arith.constant 40 : index
    %129 = vector.load %arg11[%c0_172, %c0_173, %c40] : memref<4x4x54xf32, #tpu.memory_space<vmem>>, vector<4x4x2xf32>
    tpu.vector_store %arg11[%c0_172, %c0_173, %c40], %128 {strides = array<i32>} : memref<4x4x54xf32, #tpu.memory_space<vmem>>, vector<4x4x2xf32>,
    %c2_174 = arith.constant 2 : index
    %c1_175 = arith.constant 1 : index
    %c0_176 = arith.constant 0 : index
    %c0_177 = arith.constant 0 : index
    %130 = vector.load %arg10[%c2_174, %c1_175, %c0_176, %c0_177] : memref<3x6x6x2xf32, #tpu.memory_space<vmem>>, vector<1x4x4x2xf32>
    %131 = vector.shape_cast %130 : vector<1x4x4x2xf32> to vector<4x4x2xf32>
    %c0_178 = arith.constant 0 : index
    %c0_179 = arith.constant 0 : index
    %c42 = arith.constant 42 : index
    %132 = vector.load %arg11[%c0_178, %c0_179, %c42] : memref<4x4x54xf32, #tpu.memory_space<vmem>>, vector<4x4x2xf32>
    tpu.vector_store %arg11[%c0_178, %c0_179, %c42], %131 {strides = array<i32>} : memref<4x4x54xf32, #tpu.memory_space<vmem>>, vector<4x4x2xf32>,
    %c2_180 = arith.constant 2 : index
    %c1_181 = arith.constant 1 : index
    %c1_182 = arith.constant 1 : index
    %c0_183 = arith.constant 0 : index
    %133 = vector.load %arg10[%c2_180, %c1_181, %c1_182, %c0_183] : memref<3x6x6x2xf32, #tpu.memory_space<vmem>>, vector<1x4x4x2xf32>
    %134 = vector.shape_cast %133 : vector<1x4x4x2xf32> to vector<4x4x2xf32>
    %c0_184 = arith.constant 0 : index
    %c0_185 = arith.constant 0 : index
    %c44 = arith.constant 44 : index
    %135 = vector.load %arg11[%c0_184, %c0_185, %c44] : memref<4x4x54xf32, #tpu.memory_space<vmem>>, vector<4x4x2xf32>
    tpu.vector_store %arg11[%c0_184, %c0_185, %c44], %134 {strides = array<i32>} : memref<4x4x54xf32, #tpu.memory_space<vmem>>, vector<4x4x2xf32>,
    %c2_186 = arith.constant 2 : index
    %c1_187 = arith.constant 1 : index
    %c2_188 = arith.constant 2 : index
    %c0_189 = arith.constant 0 : index
    %136 = vector.load %arg10[%c2_186, %c1_187, %c2_188, %c0_189] : memref<3x6x6x2xf32, #tpu.memory_space<vmem>>, vector<1x4x4x2xf32>
    %137 = vector.shape_cast %136 : vector<1x4x4x2xf32> to vector<4x4x2xf32>
    %c0_190 = arith.constant 0 : index
    %c0_191 = arith.constant 0 : index
    %c46 = arith.constant 46 : index
    %138 = vector.load %arg11[%c0_190, %c0_191, %c46] : memref<4x4x54xf32, #tpu.memory_space<vmem>>, vector<4x4x2xf32>
    tpu.vector_store %arg11[%c0_190, %c0_191, %c46], %137 {strides = array<i32>} : memref<4x4x54xf32, #tpu.memory_space<vmem>>, vector<4x4x2xf32>,
    %c2_192 = arith.constant 2 : index
    %c2_193 = arith.constant 2 : index
    %c0_194 = arith.constant 0 : index
    %c0_195 = arith.constant 0 : index
    %139 = vector.load %arg10[%c2_192, %c2_193, %c0_194, %c0_195] : memref<3x6x6x2xf32, #tpu.memory_space<vmem>>, vector<1x4x4x2xf32>
    %140 = vector.shape_cast %139 : vector<1x4x4x2xf32> to vector<4x4x2xf32>
    %c0_196 = arith.constant 0 : index
    %c0_197 = arith.constant 0 : index
    %c48 = arith.constant 48 : index
    %141 = vector.load %arg11[%c0_196, %c0_197, %c48] : memref<4x4x54xf32, #tpu.memory_space<vmem>>, vector<4x4x2xf32>
    tpu.vector_store %arg11[%c0_196, %c0_197, %c48], %140 {strides = array<i32>} : memref<4x4x54xf32, #tpu.memory_space<vmem>>, vector<4x4x2xf32>,
    %c2_198 = arith.constant 2 : index
    %c2_199 = arith.constant 2 : index
    %c1_200 = arith.constant 1 : index
    %c0_201 = arith.constant 0 : index
    %142 = vector.load %arg10[%c2_198, %c2_199, %c1_200, %c0_201] : memref<3x6x6x2xf32, #tpu.memory_space<vmem>>, vector<1x4x4x2xf32>
    %143 = vector.shape_cast %142 : vector<1x4x4x2xf32> to vector<4x4x2xf32>
    %c0_202 = arith.constant 0 : index
    %c0_203 = arith.constant 0 : index
    %c50 = arith.constant 50 : index
    %144 = vector.load %arg11[%c0_202, %c0_203, %c50] : memref<4x4x54xf32, #tpu.memory_space<vmem>>, vector<4x4x2xf32>
    tpu.vector_store %arg11[%c0_202, %c0_203, %c50], %143 {strides = array<i32>} : memref<4x4x54xf32, #tpu.memory_space<vmem>>, vector<4x4x2xf32>,
    %c2_204 = arith.constant 2 : index
    %c2_205 = arith.constant 2 : index
    %c2_206 = arith.constant 2 : index
    %c0_207 = arith.constant 0 : index
    %145 = vector.load %arg10[%c2_204, %c2_205, %c2_206, %c0_207] : memref<3x6x6x2xf32, #tpu.memory_space<vmem>>, vector<1x4x4x2xf32>
    %146 = vector.shape_cast %145 : vector<1x4x4x2xf32> to vector<4x4x2xf32>
    %c0_208 = arith.constant 0 : index
    %c0_209 = arith.constant 0 : index
    %c52 = arith.constant 52 : index
    %147 = vector.load %arg11[%c0_208, %c0_209, %c52] : memref<4x4x54xf32, #tpu.memory_space<vmem>>, vector<4x4x2xf32>
    tpu.vector_store %arg11[%c0_208, %c0_209, %c52], %146 {strides = array<i32>} : memref<4x4x54xf32, #tpu.memory_space<vmem>>, vector<4x4x2xf32>,
    %c0_210 = arith.constant 0 : index
    %c0_211 = arith.constant 0 : index
    %c0_212 = arith.constant 0 : index
    %148 = vector.load %arg11[%c0_210, %c0_211, %c0_212] : memref<4x4x54xf32, #tpu.memory_space<vmem>>, vector<4x4x54xf32>
    %149 = arith.truncf %148 : vector<4x4x54xf32> to vector<4x4x54xbf16>
    %c0_213 = arith.constant 0 : index
    %c0_214 = arith.constant 0 : index
    %150 = vector.load %arg7[%c0_213, %c0_214] : memref<54x2xbf16, #tpu.memory_space<vmem>>, vector<54x2xbf16>
    %151 = vector.shape_cast %150 : vector<54x2xbf16> to vector<1x54x2xbf16>
    %152 = vector.shape_cast %151 : vector<1x54x2xbf16> to vector<1x54x2xbf16>
    %153 = vector.broadcast %152 : vector<1x54x2xbf16> to vector<4x54x2xbf16>
    "tpu.trace_start"() <{level = 10 : i32, message = "hwk,hkf->hwf"}> : () -> ()
    %cst_215 = arith.constant dense<0.000000e+00> : vector<4x4x2xf32>
    %154 = tpu.matmul %149, %153, %cst_215 {dimension_numbers = #tpu.dot_dimension_numbers<[2], [1], [1], [2], [0, 0, 0, 1, 1, 2], [0], [0]>} : vector<4x4x54xbf16>, vector<4x54x2xbf16>, vector<4x4x2xf32> -> vector<4x4x2xf32>
    "tpu.trace_stop"() : () -> ()
    %c0_216 = arith.constant 0 : index
    %c0_217 = arith.constant 0 : index
    %c0_218 = arith.constant 0 : index
    %c0_219 = arith.constant 0 : index
    %c0_220 = arith.constant 0 : index
    %155 = vector.load %arg8[%c0_216, %c0_217, %c0_218, %c0_219, %c0_220] : memref<1x1x4x4x2xf32, #tpu.memory_space<vmem>>, vector<1x1x4x4x2xf32>
    %156 = vector.shape_cast %155 : vector<1x1x4x4x2xf32> to vector<4x4x2xf32>
    %157 = vector.shape_cast %154 : vector<4x4x2xf32> to vector<1x1x4x4x2xf32>
    tpu.vector_store %arg8[%c0_216, %c0_217, %c0_218, %c0_219, %c0_220], %157 {strides = array<i32>} : memref<1x1x4x4x2xf32, #tpu.memory_space<vmem>>, vector<1x1x4x4x2xf32>,
    %cst_221 = arith.constant dense<0.000000e+00> : vector<4x2xf32>
    %158 = vector.multi_reduction <add>, %154, %cst_221 [0] : vector<4x4x2xf32> to vector<4x2xf32>
    %159 = arith.mulf %154, %154 : vector<4x4x2xf32>
    %cst_222 = arith.constant dense<0.000000e+00> : vector<4x2xf32>
    %160 = vector.multi_reduction <add>, %159, %cst_222 [0] : vector<4x4x2xf32> to vector<4x2xf32>
    %cst_223 = arith.constant dense<0.000000e+00> : vector<2xf32>
    %161 = vector.multi_reduction <add>, %158, %cst_223 [0] : vector<4x2xf32> to vector<2xf32>
    %162 = vector.shape_cast %161 : vector<2xf32> to vector<1x2xf32>
    %cst_224 = arith.constant dense<0.000000e+00> : vector<2xf32>
    %163 = vector.multi_reduction <add>, %160, %cst_224 [0] : vector<4x2xf32> to vector<2xf32>
    %164 = vector.shape_cast %163 : vector<2xf32> to vector<1x2xf32>
    %165 = tpu.iota {dimensions = array<i32: 0>} : vector<2x2xi32>
    %c0_i32_225 = arith.constant 0 : i32
    %166 = vector.broadcast %c0_i32_225 : i32 to vector<2x2xi32>
    %167 = arith.cmpi eq, %165, %166 : vector<2x2xi32>
    %168 = vector.shape_cast %162 : vector<1x2xf32> to vector<1x2xf32>
    %169 = vector.broadcast %168 : vector<1x2xf32> to vector<2x2xf32>
    %170 = vector.shape_cast %164 : vector<1x2xf32> to vector<1x2xf32>
    %171 = vector.broadcast %170 : vector<1x2xf32> to vector<2x2xf32>
    %172 = arith.select %167, %169, %171 : vector<2x2xi1>, vector<2x2xf32>
    %c0_226 = arith.constant 0 : index
    %c0_227 = arith.constant 0 : index
    %c0_228 = arith.constant 0 : index
    %c0_229 = arith.constant 0 : index
    %173 = vector.load %arg9[%c0_226, %c0_227, %c0_228, %c0_229] : memref<1x1x2x2xf32, #tpu.memory_space<vmem>>, vector<1x1x2x2xf32>
    %174 = vector.shape_cast %173 : vector<1x1x2x2xf32> to vector<2x2xf32>
    %175 = vector.shape_cast %172 : vector<2x2xf32> to vector<1x1x2x2xf32>
    tpu.vector_store %arg9[%c0_226, %c0_227, %c0_228, %c0_229], %175 {strides = array<i32>} : memref<1x1x2x2xf32, #tpu.memory_space<vmem>>, vector<1x1x2x2xf32>,
    return
  }
  func.func @transform_0(%arg0: i32, %arg1: i32) -> (i32, i32, i32, i32, i32) {
    %c0_i32 = arith.constant 0 : i32
    %0 = arith.addi %arg1, %c0_i32 : i32
    %c1_i32 = arith.constant 1 : i32
    %1 = arith.subi %0, %c1_i32 : i32
    %c3_i32 = arith.constant 3 : i32
    %2 = arith.minsi %1, %c3_i32 : i32
    %c0_i32_0 = arith.constant 0 : i32
    %3 = arith.maxsi %2, %c0_i32_0 : i32
    %c0_i32_1 = arith.constant 0 : i32
    %c0_i32_2 = arith.constant 0 : i32
    %c0_i32_3 = arith.constant 0 : i32
    %c0_i32_4 = arith.constant 0 : i32
    return %arg0, %3, %c0_i32_1, %c0_i32_2, %c0_i32_3 : i32, i32, i32, i32, i32
  }
  func.func @transform_1(%arg0: i32, %arg1: i32) -> (i32, i32, i32, i32, i32) {
    %c1_i32 = arith.constant 1 : i32
    %0 = arith.addi %arg1, %c1_i32 : i32
    %c1_i32_0 = arith.constant 1 : i32
    %1 = arith.subi %0, %c1_i32_0 : i32
    %c3_i32 = arith.constant 3 : i32
    %2 = arith.minsi %1, %c3_i32 : i32
    %c0_i32 = arith.constant 0 : i32
    %3 = arith.maxsi %2, %c0_i32 : i32
    %c0_i32_1 = arith.constant 0 : i32
    %c0_i32_2 = arith.constant 0 : i32
    %c0_i32_3 = arith.constant 0 : i32
    %c0_i32_4 = arith.constant 0 : i32
    return %arg0, %3, %c0_i32_1, %c0_i32_2, %c0_i32_3 : i32, i32, i32, i32, i32
  }
  func.func @transform_2(%arg0: i32, %arg1: i32) -> (i32, i32, i32, i32, i32) {
    %c2_i32 = arith.constant 2 : i32
    %0 = arith.addi %arg1, %c2_i32 : i32
    %c1_i32 = arith.constant 1 : i32
    %1 = arith.subi %0, %c1_i32 : i32
    %c3_i32 = arith.constant 3 : i32
    %2 = arith.minsi %1, %c3_i32 : i32
    %c0_i32 = arith.constant 0 : i32
    %3 = arith.maxsi %2, %c0_i32 : i32
    %c0_i32_0 = arith.constant 0 : i32
    %c0_i32_1 = arith.constant 0 : i32
    %c0_i32_2 = arith.constant 0 : i32
    %c0_i32_3 = arith.constant 0 : i32
    return %arg0, %3, %c0_i32_0, %c0_i32_1, %c0_i32_2 : i32, i32, i32, i32, i32
  }
  func.func @transform_3(%arg0: i32, %arg1: i32) -> (i32, i32) {
    %c0_i32 = arith.constant 0 : i32
    %c0_i32_0 = arith.constant 0 : i32
    %c0_i32_1 = arith.constant 0 : i32
    return %c0_i32, %c0_i32_0 : i32, i32
  }
  func.func @transform_4(%arg0: i32, %arg1: i32) -> (i32, i32) {
    %c0_i32 = arith.constant 0 : i32
    %c0_i32_0 = arith.constant 0 : i32
    %c0_i32_1 = arith.constant 0 : i32
    return %c0_i32, %c0_i32_0 : i32, i32
  }
  func.func @transform_5(%arg0: i32, %arg1: i32) -> (i32, i32) {
    %c0_i32 = arith.constant 0 : i32
    %c0_i32_0 = arith.constant 0 : i32
    %c0_i32_1 = arith.constant 0 : i32
    return %c0_i32, %c0_i32_0 : i32, i32
  }
  func.func @transform_6(%arg0: i32, %arg1: i32) -> (i32, i32, i32, i32, i32) {
    %c0_i32 = arith.constant 0 : i32
    %c0_i32_0 = arith.constant 0 : i32
    %c0_i32_1 = arith.constant 0 : i32
    %c0_i32_2 = arith.constant 0 : i32
    return %arg0, %arg1, %c0_i32, %c0_i32_0, %c0_i32_1 : i32, i32, i32, i32, i32
  }
  func.func @transform_7(%arg0: i32, %arg1: i32) -> (i32, i32, i32, i32) {
    %c0_i32 = arith.constant 0 : i32
    %c0_i32_0 = arith.constant 0 : i32
    %c0_i32_1 = arith.constant 0 : i32
    return %arg0, %arg1, %c0_i32, %c0_i32_0 : i32, i32, i32, i32
  }
}

module attributes {stable_mosaic.version = 11 : i64} {
  func.func @_bn_relu_matmul_kernel(%arg0: i32, %arg1: memref<64x2xf32, #tpu.memory_space<vmem>>, %arg2: memref<1x2xf32, #tpu.memory_space<vmem>>, %arg3: memref<1x2xf32, #tpu.memory_space<vmem>>, %arg4: memref<2x16xbf16, #tpu.memory_space<vmem>>, %arg5: memref<64x16xf32, #tpu.memory_space<vmem>>, %arg6: memref<1x2x16xf32, #tpu.memory_space<vmem>>) attributes {dimension_semantics = [#tpu.dimension_semantics<parallel>], iteration_bounds = array<i64: 2>, scalar_prefetch = 0 : i64, scratch_operands = 0 : i64, tpu.core_type = #tpu.core_type<tc>, window_params = [{transform_indices = @transform_0, window_bounds = array<i64: 64, 2>}, {pipeline_mode = #tpu.pipeline_mode<synchronous>, transform_indices = @transform_1, window_bounds = array<i64: 1, 2>}, {pipeline_mode = #tpu.pipeline_mode<synchronous>, transform_indices = @transform_2, window_bounds = array<i64: 1, 2>}, {pipeline_mode = #tpu.pipeline_mode<synchronous>, transform_indices = @transform_3, window_bounds = array<i64: 2, 16>}, {transform_indices = @transform_4, window_bounds = array<i64: 64, 16>}, {transform_indices = @transform_5, window_bounds = array<i64: 1, 2, 16>}]} {
    %c0 = arith.constant 0 : index
    %c0_0 = arith.constant 0 : index
    %0 = vector.load %arg1[%c0, %c0_0] : memref<64x2xf32, #tpu.memory_space<vmem>>, vector<64x2xf32>
    %c0_1 = arith.constant 0 : index
    %c0_2 = arith.constant 0 : index
    %1 = vector.load %arg2[%c0_1, %c0_2] : memref<1x2xf32, #tpu.memory_space<vmem>>, vector<1x2xf32>
    %2 = vector.broadcast %1 : vector<1x2xf32> to vector<64x2xf32>
    %3 = arith.mulf %0, %2 : vector<64x2xf32>
    %c0_3 = arith.constant 0 : index
    %c0_4 = arith.constant 0 : index
    %4 = vector.load %arg3[%c0_3, %c0_4] : memref<1x2xf32, #tpu.memory_space<vmem>>, vector<1x2xf32>
    %5 = vector.broadcast %4 : vector<1x2xf32> to vector<64x2xf32>
    %6 = arith.addf %3, %5 : vector<64x2xf32>
    %cst = arith.constant 0.000000e+00 : f32
    %7 = vector.broadcast %cst : f32 to vector<64x2xf32>
    %8 = arith.maximumf %6, %7 : vector<64x2xf32>
    %9 = arith.truncf %8 : vector<64x2xf32> to vector<64x2xbf16>
    %c0_5 = arith.constant 0 : index
    %c0_6 = arith.constant 0 : index
    %10 = vector.load %arg4[%c0_5, %c0_6] : memref<2x16xbf16, #tpu.memory_space<vmem>>, vector<2x16xbf16>
    %cst_7 = arith.constant dense<0.000000e+00> : vector<64x16xf32>
    %11 = tpu.matmul %9, %10, %cst_7 {dimension_numbers = #tpu.dot_dimension_numbers<[1], [0], [0], [1], [0, 0, 1, 1], [], []>} : vector<64x2xbf16>, vector<2x16xbf16>, vector<64x16xf32> -> vector<64x16xf32>
    %c0_8 = arith.constant 0 : index
    %c0_9 = arith.constant 0 : index
    %12 = vector.load %arg5[%c0_8, %c0_9] : memref<64x16xf32, #tpu.memory_space<vmem>>, vector<64x16xf32>
    tpu.vector_store %arg5[%c0_8, %c0_9], %11 {strides = array<i32>} : memref<64x16xf32, #tpu.memory_space<vmem>>, vector<64x16xf32>,
    %c64_i32 = arith.constant 64 : i32
    %13 = arith.muli %arg0, %c64_i32 : i32
    %14 = tpu.iota {dimensions = array<i32: 0>} : vector<64x1xi32>
    %15 = vector.broadcast %13 : i32 to vector<64x1xi32>
    %16 = arith.addi %15, %14 : vector<64x1xi32>
    %c128_i32 = arith.constant 128 : i32
    %17 = vector.broadcast %c128_i32 : i32 to vector<64x1xi32>
    %18 = arith.cmpi slt, %16, %17 : vector<64x1xi32>
    %cst_10 = arith.constant 0.000000e+00 : f32
    %19 = vector.shape_cast %18 : vector<64x1xi1> to vector<64x1xi1>
    %20 = vector.broadcast %19 : vector<64x1xi1> to vector<64x16xi1>
    %21 = vector.broadcast %cst_10 : f32 to vector<64x16xf32>
    %22 = arith.select %20, %11, %21 : vector<64x16xi1>, vector<64x16xf32>
    %cst_11 = arith.constant dense<0.000000e+00> : vector<16xf32>
    %23 = vector.multi_reduction <add>, %22, %cst_11 [0] : vector<64x16xf32> to vector<16xf32>
    %24 = vector.shape_cast %23 : vector<16xf32> to vector<1x16xf32>
    %25 = arith.mulf %22, %22 : vector<64x16xf32>
    %cst_12 = arith.constant dense<0.000000e+00> : vector<16xf32>
    %26 = vector.multi_reduction <add>, %25, %cst_12 [0] : vector<64x16xf32> to vector<16xf32>
    %27 = vector.shape_cast %26 : vector<16xf32> to vector<1x16xf32>
    %28 = tpu.iota {dimensions = array<i32: 0>} : vector<2x16xi32>
    %c0_i32 = arith.constant 0 : i32
    %29 = vector.broadcast %c0_i32 : i32 to vector<2x16xi32>
    %30 = arith.cmpi eq, %28, %29 : vector<2x16xi32>
    %31 = vector.shape_cast %24 : vector<1x16xf32> to vector<1x16xf32>
    %32 = vector.broadcast %31 : vector<1x16xf32> to vector<2x16xf32>
    %33 = vector.shape_cast %27 : vector<1x16xf32> to vector<1x16xf32>
    %34 = vector.broadcast %33 : vector<1x16xf32> to vector<2x16xf32>
    %35 = arith.select %30, %32, %34 : vector<2x16xi1>, vector<2x16xf32>
    %c0_13 = arith.constant 0 : index
    %c0_14 = arith.constant 0 : index
    %c0_15 = arith.constant 0 : index
    %36 = vector.load %arg6[%c0_13, %c0_14, %c0_15] : memref<1x2x16xf32, #tpu.memory_space<vmem>>, vector<1x2x16xf32>
    %37 = vector.shape_cast %36 : vector<1x2x16xf32> to vector<2x16xf32>
    %38 = vector.shape_cast %35 : vector<2x16xf32> to vector<1x2x16xf32>
    tpu.vector_store %arg6[%c0_13, %c0_14, %c0_15], %38 {strides = array<i32>} : memref<1x2x16xf32, #tpu.memory_space<vmem>>, vector<1x2x16xf32>,
    return
  }
  func.func @transform_0(%arg0: i32) -> (i32, i32) {
    %c0_i32 = arith.constant 0 : i32
    %c0_i32_0 = arith.constant 0 : i32
    return %arg0, %c0_i32 : i32, i32
  }
  func.func @transform_1(%arg0: i32) -> (i32, i32) {
    %c0_i32 = arith.constant 0 : i32
    %c0_i32_0 = arith.constant 0 : i32
    %c0_i32_1 = arith.constant 0 : i32
    return %c0_i32, %c0_i32_0 : i32, i32
  }
  func.func @transform_2(%arg0: i32) -> (i32, i32) {
    %c0_i32 = arith.constant 0 : i32
    %c0_i32_0 = arith.constant 0 : i32
    %c0_i32_1 = arith.constant 0 : i32
    return %c0_i32, %c0_i32_0 : i32, i32
  }
  func.func @transform_3(%arg0: i32) -> (i32, i32) {
    %c0_i32 = arith.constant 0 : i32
    %c0_i32_0 = arith.constant 0 : i32
    %c0_i32_1 = arith.constant 0 : i32
    return %c0_i32, %c0_i32_0 : i32, i32
  }
  func.func @transform_4(%arg0: i32) -> (i32, i32) {
    %c0_i32 = arith.constant 0 : i32
    %c0_i32_0 = arith.constant 0 : i32
    return %arg0, %c0_i32 : i32, i32
  }
  func.func @transform_5(%arg0: i32) -> (i32, i32, i32) {
    %c0_i32 = arith.constant 0 : i32
    %c0_i32_0 = arith.constant 0 : i32
    %c0_i32_1 = arith.constant 0 : i32
    return %arg0, %c0_i32, %c0_i32_0 : i32, i32, i32
  }
}

module attributes {stable_mosaic.version = 11 : i64} {
  func.func @_merge_kernel(%arg0: i32, %arg1: memref<64x16xf32, #tpu.memory_space<vmem>>, %arg2: memref<64x8xf32, #tpu.memory_space<vmem>>, %arg3: memref<1x16xf32, #tpu.memory_space<vmem>>, %arg4: memref<1x16xf32, #tpu.memory_space<vmem>>, %arg5: memref<64x16xf32, #tpu.memory_space<vmem>>) attributes {dimension_semantics = [#tpu.dimension_semantics<parallel>], iteration_bounds = array<i64: 2>, scalar_prefetch = 0 : i64, scratch_operands = 0 : i64, tpu.core_type = #tpu.core_type<tc>, window_params = [{transform_indices = @transform_0, window_bounds = array<i64: 64, 16>}, {transform_indices = @transform_1, window_bounds = array<i64: 64, 8>}, {pipeline_mode = #tpu.pipeline_mode<synchronous>, transform_indices = @transform_2, window_bounds = array<i64: 1, 16>}, {pipeline_mode = #tpu.pipeline_mode<synchronous>, transform_indices = @transform_3, window_bounds = array<i64: 1, 16>}, {transform_indices = @transform_4, window_bounds = array<i64: 64, 16>}]} {
    %c0 = arith.constant 0 : index
    %c0_0 = arith.constant 0 : index
    %0 = vector.load %arg1[%c0, %c0_0] : memref<64x16xf32, #tpu.memory_space<vmem>>, vector<64x16xf32>
    %c0_1 = arith.constant 0 : index
    %c0_2 = arith.constant 0 : index
    %1 = vector.load %arg3[%c0_1, %c0_2] : memref<1x16xf32, #tpu.memory_space<vmem>>, vector<1x16xf32>
    %2 = vector.broadcast %1 : vector<1x16xf32> to vector<64x16xf32>
    %3 = arith.mulf %0, %2 : vector<64x16xf32>
    %c0_3 = arith.constant 0 : index
    %c0_4 = arith.constant 0 : index
    %4 = vector.load %arg4[%c0_3, %c0_4] : memref<1x16xf32, #tpu.memory_space<vmem>>, vector<1x16xf32>
    %5 = vector.broadcast %4 : vector<1x16xf32> to vector<64x16xf32>
    %6 = arith.addf %3, %5 : vector<64x16xf32>
    %cst = arith.constant 0.000000e+00 : f32
    %7 = vector.broadcast %cst : f32 to vector<64x16xf32>
    %8 = arith.maximumf %6, %7 : vector<64x16xf32>
    %c0_5 = arith.constant 0 : index
    %c0_6 = arith.constant 0 : index
    %9 = vector.load %arg2[%c0_5, %c0_6] : memref<64x8xf32, #tpu.memory_space<vmem>>, vector<64x8xf32>
    %cst_7 = arith.constant 0.000000e+00 : f32
    %10 = vector.broadcast %cst_7 : f32 to vector<64x8xf32>
    %11 = tpu.concatenate %9, %10 in 1 : vector<64x8xf32>, vector<64x8xf32> -> vector<64x16xf32>
    %12 = arith.addf %8, %11 : vector<64x16xf32>
    %cst_8 = arith.constant 0.000000e+00 : f32
    %13 = vector.broadcast %cst_8 : f32 to vector<64x16xf32>
    %14 = arith.maximumf %12, %13 : vector<64x16xf32>
    %c0_9 = arith.constant 0 : index
    %c0_10 = arith.constant 0 : index
    %15 = vector.load %arg5[%c0_9, %c0_10] : memref<64x16xf32, #tpu.memory_space<vmem>>, vector<64x16xf32>
    tpu.vector_store %arg5[%c0_9, %c0_10], %14 {strides = array<i32>} : memref<64x16xf32, #tpu.memory_space<vmem>>, vector<64x16xf32>,
    return
  }
  func.func @transform_0(%arg0: i32) -> (i32, i32) {
    %c0_i32 = arith.constant 0 : i32
    %c0_i32_0 = arith.constant 0 : i32
    return %arg0, %c0_i32 : i32, i32
  }
  func.func @transform_1(%arg0: i32) -> (i32, i32) {
    %c0_i32 = arith.constant 0 : i32
    %c0_i32_0 = arith.constant 0 : i32
    return %arg0, %c0_i32 : i32, i32
  }
  func.func @transform_2(%arg0: i32) -> (i32, i32) {
    %c0_i32 = arith.constant 0 : i32
    %c0_i32_0 = arith.constant 0 : i32
    %c0_i32_1 = arith.constant 0 : i32
    return %c0_i32, %c0_i32_0 : i32, i32
  }
  func.func @transform_3(%arg0: i32) -> (i32, i32) {
    %c0_i32 = arith.constant 0 : i32
    %c0_i32_0 = arith.constant 0 : i32
    %c0_i32_1 = arith.constant 0 : i32
    return %c0_i32, %c0_i32_0 : i32, i32
  }
  func.func @transform_4(%arg0: i32) -> (i32, i32) {
    %c0_i32 = arith.constant 0 : i32
    %c0_i32_0 = arith.constant 0 : i32
    return %arg0, %c0_i32 : i32, i32
  }
}

</mosaic_0001>

<bundles_post_ra>
// kernel: _lambda_.4
= control target key start
LH: loop header
LB: loop body
LE: loop exit
PB: predicated region body
PF: predicated region fallthrough
CT: control target
= control target key end

     0   :  { %12 = vsyncpa [#allocation3], 0  ;;  %s2617_s0 = inlined_call_operand.vmem [shape: f32[128,64], index: 0, kind: input, shape index: {}]   ;;  %s2618_s1 = inlined_call_operand.vmem [shape: s32[128,1], index: 1, kind: input, shape index: {}]   ;;  %s2619_s2 = inlined_call_operand.vmem [shape: bf16[64,2], index: 2, kind: input, shape index: {}]   ;;  %s2620_s3 = inlined_call_operand.vmem [shape: f32[128,8], index: 3, kind: output, shape index: {0}]   ;;  %s2621_s4 = inlined_call_operand.hbm [shape: s32[128,8], index: 4, kind: output, shape index: {1}]   ;;  %s2622_s5 = inlined_call_operand.vmem [shape: bf16[128,2], index: 5, kind: output, shape index: {2}]   ;;  %s2623_s6 = inlined_call_operand.vmem [shape: f32[2,2,2], index: 6, kind: output, shape index: {3}]  }
   0x1   :  { %14 = vsyncpa [#allocation3 + $0x1], 0  ;;  %s1816_s21 = smov 0   ;;  %s1818_s22 = smov 0  }
   0x2   :  { %s1820_s23 = smov 0   ;;  %s1822_s24 = smov 0  }
   0x3 LB: > { %s1837_s25 = sadd.s32 4294967295, %s1774_s24   ;;  %s1578_s26 = sadd.s32 4294967294, %s1774_s24   ;;  %s1774_s24 = sphi %s1822_s24, %s2629_s24   ;;  %s1770_s23 = sphi %s1820_s23, %s2628_s23   ;;  %s1766_s22 = sphi %s1818_s22, %s2627_s22   ;;  %s1762_s21 = sphi %s1816_s21, %s2626_s21  }
   0x4   : > { %s1841_s27 = sadd.s32 1, %s1774_s24   ;;  %s126_s28 = sadd.s32 1, %s1770_s23 }
   0x5   : > { %s123_s29 = ssub.s32 %s1774_s24, %s1841_s27  ;;  %p136_p0 = scmp.ne.s32.totalorder %s1770_s23, %s1766_s22 }
   0x6   : > { %p124_p1 = scmp.eq.s32.totalorder %s123_s29, 0  ;;  %p137_p2 = scmp.eq.s32.totalorder %s1837_s25, 1 }
   0x7   : > { %p142_p3 = scmp.ne.s32.totalorder %s1766_s22, %s1762_s21  ;;  %p143_p4 = scmp.eq.s32.totalorder %s1578_s26, 1 }
   0x8   : > { %s1852_s30 = scalar_select %p124_p1, %s1770_s23, %s126_s28  }
   0x9   : > { %p1854_p5 = por %p137_p2, %p136_p0  ;;  %p1858_p6 = por %p143_p4, %p142_p3 }
   0xa   : > { %p1581_p7 = scmp.ge.s32.totalorder %s1774_s24, 1  ;;  %p234_p8 = scmp.lt.s32.totalorder %s1774_s24, 3 }
   0xc   : > { %p235_p9 = pnand %p1581_p7, %p234_p8 }
   0xd   : > { %s1583_s9 = sshll.u32 (!%p235_p9), %s1837_s25, 3  ;;  %v1776_v0 = vmov (!%p235_p9), 0   ;;  %s1777_s17 = smov (!%p235_p9), 8  }
   0xe   : > { %238 = sbr.rel (%p235_p9) target bundleno = 1035 (0x40b), region = 32  ;;  %1699 = vset.pattern.permute.xlu1 (!%p235_p9), %v1776_v0  ;;  %1698 = vset.pattern.permute.xlu0 (!%p235_p9), %v1776_v0  ;;  %p284_p10 = scmp.lt.s32.totalorder (!%p235_p9), %s1583_s9, 15 }
   0xf   : > { %p308_p11 = scmp.lt.s32.totalorder (!%p235_p9), %s1837_s25, 1  ;;  %s1778_s20 = smov (!%p235_p9), 72  }
  0x10   : > { %s1622_s18 = sshll.u32 (!%p235_p9), %s1837_s25, 10  ;;  %s1779_s29 = smov (!%p235_p9), [#allocation2]  }
  0x15   : > { %s2631_s9 = smov (!%p284_p10, %s1583_s9), 15 }
  0x16   : > { %s1868_s10 = sshll.u32 %s2631_s9, 3  ;;  %s1590_s14 = sshll.u32 %s2631_s9, 2 }
  0x17   : > { %s293_s13 = scalar_lea.vmem %s2618_s1, %s1868_s10  ;;  %s1897_s16 = scalar_lea.vmem %s2617_s0, %s1868_s10 }
  0x18   : > { %v1874_v1 = vld [vmem:[%s293_s13 + $0x10] sm:$0xff]  ;;  %v1877_v2 = vld [vmem:[%s293_s13] sm:$0xff]  ;;  %v1879_v3 = vld [vmem:[%s293_s13 + $0x18] sm:$0xff]  ;;  %s2427_s19 = scalar_lea.vmem %s2622_s5, %s1590_s14  ;;  %s2536_s14 = scalar_lea.vmem %s2620_s3, %s1868_s10 }
  0x19   : > { %336 = vperm.xlu1 %1699, %v1874_v1   ;;  %330 = vperm.xlu0 %1698, %v1877_v2   ;;  %v1883_v4 = vld [vmem:[%s293_s13 + $0x8] sm:$0xff]  ;;  %v1889_v6 = vld [vmem:[%s293_s13 + $0x20] sm:$0xff]  ;;  %v1891_v7 = vld [vmem:[%s293_s13 + $0x38] sm:$0xff]  ;;  %v401_v18 = vadd.s32 1, %v1877_v2  ;;  %v404_v19 = vadd.s32 1, %v1879_v3  ;;  %v403_v20 = vadd.s32 1, %v1874_v1 }
  0x1a   : > { %v1885_v5 = vld [vmem:[%s293_s13 + $0x28] sm:$0xff]  ;;  %v1901_v8 = vld [vmem:[%s293_s13 + $0x30] sm:$0xff]  ;;  %v1908_v10 = vld [vmem:[%s1897_s16] sm:$0xff]  ;;  %v402_v17 = vadd.s32 1, %v1883_v4  ;;  %v405_v22 = vadd.s32 1, %v1889_v6  ;;  %v408_v23 = vadd.s32 1, %v1891_v7 }
  0x1b   : > { %v1904_v9 = vld [vmem:[%s1897_s16 + $0x8] sm:$0xff]  ;;  %v1913_v11 = vld [vmem:[%s1897_s16 + $0x18] sm:$0xff]  ;;  %v1918_v12 = vld [vmem:[%s1897_s16 + $0x10] sm:$0xff]  ;;  %v406_v21 = vadd.s32 1, %v1885_v5  ;;  %v407_v24 = vadd.s32 1, %v1901_v8  ;;  %v490_v25 = vadd.s32 8, %v1883_v4 }
  0x1c   : > { %v1923_v13 = vld [vmem:[%s1897_s16 + $0x28] sm:$0xff]  ;;  %v1928_v14 = vld [vmem:[%s1897_s16 + $0x20] sm:$0xff]  ;;  %v1933_v15 = vld [vmem:[%s1897_s16 + $0x38] sm:$0xff]  ;;  %v489_v26 = vadd.s32 8, %v1877_v2  ;;  %v492_v27 = vadd.s32 8, %v1879_v3  ;;  %v491_v28 = vadd.s32 8, %v1874_v1 }
  0x1d   : > { %339 = vperm.xlu1 %1699, %v1879_v3   ;;  %333 = vperm.xlu0 %1698, %v1883_v4   ;;  %v1938_v16 = vld [vmem:[%s1897_s16 + $0x30] sm:$0xff]  ;;  %v494_v29 = vadd.s32 8, %v1885_v5  ;;  %v493_v30 = vadd.s32 8, %v1889_v6  ;;  %v496_v31 = vadd.s32 8, %v1891_v7  ;;  %v495_v32 = vadd.s32 8, %v1901_v8  ;;  %s1608_s13 = sshll.u32 %s1837_s25, 6 }
  0x1e   : > { %s309_s9 = scalar_select %p308_p11, %s1837_s25, 1 }
  0x20   : > { %s1591_s26 = sshll.u32 %s309_s9, 1 }
  0x21   : > { %345 = vperm.xlu1 %1699, %v1885_v5   ;;  %342 = vperm.xlu0 %1698, %v1889_v6   ;;  %s311_s11 = scalar_lea.vmem %s2623_s6, %s1591_s26  ;;  %s2564_s26 = scalar_lea.hbm %s2621_s4, %s1622_s18 }
  0x25   : > { %351 = vperm.xlu1 %1699, %v1891_v7   ;;  %348 = vperm.xlu0 %1698, %v1901_v8  }
  0x29   : > { %363 = vrot.lane.b32.xlu1 %v1904_v9, %s1777_s17  ;;  %361 = vrot.lane.b32.xlu0 %v1908_v10, %s1777_s17 }
  0x2d   : > { %367 = vrot.lane.b32.xlu1 %v1913_v11, %s1777_s17  ;;  %365 = vrot.lane.b32.xlu0 %v1918_v12, %s1777_s17 }
  0x31   : > { %371 = vrot.lane.b32.xlu1 %v1923_v13, %s1777_s17  ;;  %369 = vrot.lane.b32.xlu0 %v1928_v14, %s1777_s17 }
  0x35   : > { %375 = vrot.lane.b32.xlu1 %v1933_v15, %s1777_s17  ;;  %373 = vrot.lane.b32.xlu0 %v1938_v16, %s1777_s17 }
  0x39   : > { %413 = vperm.xlu1 %1699, %v402_v17   ;;  %410 = vperm.xlu0 %1698, %v401_v18  }
  0x3d   : > { %419 = vperm.xlu1 %1699, %v404_v19   ;;  %416 = vperm.xlu0 %1698, %v403_v20  }
  0x41   : > { %425 = vperm.xlu1 %1699, %v406_v21   ;;  %422 = vperm.xlu0 %1698, %v405_v22  }
  0x45   : > { %431 = vperm.xlu1 %1699, %v408_v23   ;;  %428 = vperm.xlu0 %1698, %v407_v24   ;;  %v594_v24 = vadd.s32 9, %v1883_v4 }
  0x49   : > { %501 = vperm.xlu1 %1699, %v490_v25   ;;  %498 = vperm.xlu0 %1698, %v489_v26   ;;  %v593_v26 = vadd.s32 9, %v1877_v2 }
  0x4d   : > { %507 = vperm.xlu1 %1699, %v492_v27   ;;  %504 = vperm.xlu0 %1698, %v491_v28   ;;  %v596_v27 = vadd.s32 9, %v1879_v3  ;;  %v595_v28 = vadd.s32 9, %v1874_v1 }
  0x51   : > { %513 = vperm.xlu1 %1699, %v494_v29   ;;  %510 = vperm.xlu0 %1698, %v493_v30   ;;  %v598_v29 = vadd.s32 9, %v1885_v5  ;;  %v597_v30 = vadd.s32 9, %v1889_v6 }
  0x55   : > { %519 = vperm.xlu1 %1699, %v496_v31   ;;  %516 = vperm.xlu0 %1698, %v495_v32   ;;  %v600_v31 = vadd.s32 9, %v1891_v7  ;;  %v599_v32 = vadd.s32 9, %v1901_v8 }
  0x98   : > { %v337_v33 = vpop.permute.xlu1 %336  ;;  %v331_v34 = vpop.permute.xlu0 %330 }
  0x9c   : > { %v340_v35 = vpop.permute.xlu1 %339  ;;  %v334_v36 = vpop.permute.xlu0 %333 }
  0xa0   : > { %v346_v37 = vpop.permute.xlu1 %345  ;;  %v343_v38 = vpop.permute.xlu0 %342 }
  0xa4   : > { %v352_v39 = vpop.permute.xlu1 %351  ;;  %v349_v40 = vpop.permute.xlu0 %348 }
  0xa8   : > { %v364_v41 = vpop.permute.xlu1 %363  ;;  %v362_v43 = vpop.permute.xlu0 %361 }
  0xa9   : > { %vm386_vm0 = vcmp.gt.f32.partialorder %v1904_v9, %v364_v41  ;;  %vm385_vm1 = vcmp.gt.f32.partialorder %v1908_v10, %v362_v43 }
  0xaa   : > { %v394_v42 = vsel %vm386_vm0, %v1904_v9, %v364_v41  ;;  %v393_v45 = vsel %vm385_vm1, %v1908_v10, %v362_v43 }
  0xab   : > { %451 = vrot.lane.b32.xlu1 %v394_v42, %s1777_s17  ;;  %449 = vrot.lane.b32.xlu0 %v393_v45, %s1777_s17 }
  0xac   : > { %v368_v44 = vpop.permute.xlu1 %367  ;;  %v366_v47 = vpop.permute.xlu0 %365 }
  0xad   : > { %vm388_vm2 = vcmp.gt.f32.partialorder %v1913_v11, %v368_v44  ;;  %vm387_vm3 = vcmp.gt.f32.partialorder %v1918_v12, %v366_v47 }
  0xae   : > { %v396_v46 = vsel %vm388_vm2, %v1913_v11, %v368_v44  ;;  %v395_v49 = vsel %vm387_vm3, %v1918_v12, %v366_v47 }
  0xaf   : > { %455 = vrot.lane.b32.xlu1 %v396_v46, %s1777_s17  ;;  %453 = vrot.lane.b32.xlu0 %v395_v49, %s1777_s17 }
  0xb0   : > { %v372_v48 = vpop.permute.xlu1 %371  ;;  %v370_v51 = vpop.permute.xlu0 %369 }
  0xb1   : > { %vm390_vm4 = vcmp.gt.f32.partialorder %v1923_v13, %v372_v48  ;;  %vm389_vm5 = vcmp.gt.f32.partialorder %v1928_v14, %v370_v51 }
  0xb2   : > { %v398_v50 = vsel %vm390_vm4, %v1923_v13, %v372_v48  ;;  %v397_v53 = vsel %vm389_vm5, %v1928_v14, %v370_v51 }
  0xb3   : > { %459 = vrot.lane.b32.xlu1 %v398_v50, %s1777_s17  ;;  %457 = vrot.lane.b32.xlu0 %v397_v53, %s1777_s17 }
  0xb4   : > { %v376_v52 = vpop.permute.xlu1 %375  ;;  %v374_v55 = vpop.permute.xlu0 %373 }
  0xb5   : > { %vm392_vm6 = vcmp.gt.f32.partialorder %v1933_v15, %v376_v52  ;;  %vm391_vm7 = vcmp.gt.f32.partialorder %v1938_v16, %v374_v55 }
  0xb6   : > { %v400_v54 = vsel %vm392_vm6, %v1933_v15, %v376_v52  ;;  %v399_v57 = vsel %vm391_vm7, %v1938_v16, %v374_v55 }
  0xb7   : > { %463 = vrot.lane.b32.xlu1 %v400_v54, %s1777_s17  ;;  %461 = vrot.lane.b32.xlu0 %v399_v57, %s1777_s17 }
  0xb8   : > { %v414_v56 = vpop.permute.xlu1 %413  ;;  %v411_v59 = vpop.permute.xlu0 %410 }
  0xb9   : > { %v434_v58 = vsel %vm386_vm0, %v414_v56, %v334_v36  ;;  %v433_v60 = vsel %vm385_vm1, %v411_v59, %v331_v34 }
  0xbb   : > { %523 = vrot.lane.b32.xlu1 %v434_v58, %s1777_s17  ;;  %521 = vrot.lane.b32.xlu0 %v433_v60, %s1777_s17 }
  0xbc   : > { %v420_v61 = vpop.permute.xlu1 %419  ;;  %v417_v63 = vpop.permute.xlu0 %416 }
  0xbd   : > { %v436_v62 = vsel %vm388_vm2, %v420_v61, %v340_v35  ;;  %v435_v0 = vsel %vm387_vm3, %v417_v63, %v337_v33 }
  0xbf   : > { %527 = vrot.lane.b32.xlu1 %v436_v62, %s1777_s17  ;;  %525 = vrot.lane.b32.xlu0 %v435_v0, %s1777_s17 }
  0xc0   : > { %v426_v17 = vpop.permute.xlu1 %425  ;;  %v423_v19 = vpop.permute.xlu0 %422 }
  0xc1   : > { %v438_v18 = vsel %vm390_vm4, %v426_v17, %v346_v37  ;;  %v437_v20 = vsel %vm389_vm5, %v423_v19, %v343_v38 }
  0xc3   : > { %531 = vrot.lane.b32.xlu1 %v438_v18, %s1777_s17  ;;  %529 = vrot.lane.b32.xlu0 %v437_v20, %s1777_s17 }
  0xc4   : > { %v432_v21 = vpop.permute.xlu1 %431  ;;  %v429_v23 = vpop.permute.xlu0 %428 }
  0xc5   : > { %v440_v22 = vsel %vm392_vm6, %v432_v21, %v352_v39  ;;  %v439_v25 = vsel %vm391_vm7, %v429_v23, %v349_v40 }
  0xc7   : > { %535 = vrot.lane.b32.xlu1 %v440_v22, %s1777_s17  ;;  %533 = vrot.lane.b32.xlu0 %v439_v25, %s1777_s17 }
  0xc8   : > { %v502_v33 = vpop.permute.xlu1 %501  ;;  %v499_v34 = vpop.permute.xlu0 %498 }
  0xcb   : > { %605 = vperm.xlu1 %1699, %v594_v24   ;;  %602 = vperm.xlu0 %1698, %v593_v26   ;;  %v698_v24 = vadd.s32 64, %v1883_v4  ;;  %v697_v26 = vadd.s32 64, %v1877_v2 }
  0xcc   : > { %v508_v35 = vpop.permute.xlu1 %507  ;;  %v505_v36 = vpop.permute.xlu0 %504 }
  0xcf   : > { %611 = vperm.xlu1 %1699, %v596_v27   ;;  %608 = vperm.xlu0 %1698, %v595_v28   ;;  %v700_v27 = vadd.s32 64, %v1879_v3  ;;  %v699_v28 = vadd.s32 64, %v1874_v1 }
  0xd0   : > { %v514_v37 = vpop.permute.xlu1 %513  ;;  %v511_v38 = vpop.permute.xlu0 %510 }
  0xd3   : > { %617 = vperm.xlu1 %1699, %v598_v29   ;;  %614 = vperm.xlu0 %1698, %v597_v30   ;;  %v702_v29 = vadd.s32 64, %v1885_v5  ;;  %v701_v30 = vadd.s32 64, %v1889_v6 }
  0xd4   : > { %v520_v39 = vpop.permute.xlu1 %519  ;;  %v517_v40 = vpop.permute.xlu0 %516 }
  0xd7   : > { %623 = vperm.xlu1 %1699, %v600_v31   ;;  %620 = vperm.xlu0 %1698, %v599_v32   ;;  %v704_v31 = vadd.s32 64, %v1891_v7  ;;  %v703_v32 = vadd.s32 64, %v1901_v8 }
 0x11d   : > { %v452_v41 = vpop.permute.xlu1 %451  ;;  %v450_v43 = vpop.permute.xlu0 %449 }
 0x11e   : > { %vm474_vm8 = vcmp.gt.f32.partialorder %v1904_v9, %v452_v41  ;;  %vm473_vm9 = vcmp.gt.f32.partialorder %v1908_v10, %v450_v43 }
 0x11f   : > { %v482_v42 = vsel %vm474_vm8, %v1904_v9, %v452_v41  ;;  %v481_v45 = vsel %vm473_vm9, %v1908_v10, %v450_v43 }
 0x120   : > { %555 = vrot.lane.b32.xlu1 %v482_v42, %s1777_s17  ;;  %553 = vrot.lane.b32.xlu0 %v481_v45, %s1777_s17 }
 0x121   : > { %v456_v44 = vpop.permute.xlu1 %455  ;;  %v454_v47 = vpop.permute.xlu0 %453 }
 0x122   : > { %vm476_vm10 = vcmp.gt.f32.partialorder %v1913_v11, %v456_v44  ;;  %vm475_vm11 = vcmp.gt.f32.partialorder %v1918_v12, %v454_v47 }
 0x123   : > { %v484_v46 = vsel %vm476_vm10, %v1913_v11, %v456_v44  ;;  %v483_v49 = vsel %vm475_vm11, %v1918_v12, %v454_v47 }
 0x124   : > { %559 = vrot.lane.b32.xlu1 %v484_v46, %s1777_s17  ;;  %557 = vrot.lane.b32.xlu0 %v483_v49, %s1777_s17 }
 0x125   : > { %v460_v48 = vpop.permute.xlu1 %459  ;;  %v458_v51 = vpop.permute.xlu0 %457 }
 0x126   : > { %vm478_vm12 = vcmp.gt.f32.partialorder %v1923_v13, %v460_v48  ;;  %vm477_vm13 = vcmp.gt.f32.partialorder %v1928_v14, %v458_v51 }
 0x127   : > { %v486_v50 = vsel %vm478_vm12, %v1923_v13, %v460_v48  ;;  %v485_v53 = vsel %vm477_vm13, %v1928_v14, %v458_v51 }
 0x128   : > { %563 = vrot.lane.b32.xlu1 %v486_v50, %s1777_s17  ;;  %561 = vrot.lane.b32.xlu0 %v485_v53, %s1777_s17 }
 0x129   : > { %v464_v52 = vpop.permute.xlu1 %463  ;;  %v462_v55 = vpop.permute.xlu0 %461 }
 0x12a   : > { %vm480_vm14 = vcmp.gt.f32.partialorder %v1933_v15, %v464_v52  ;;  %vm479_vm15 = vcmp.gt.f32.partialorder %v1938_v16, %v462_v55 }
 0x12b   : > { %v488_v54 = vsel %vm480_vm14, %v1933_v15, %v464_v52  ;;  %v487_v57 = vsel %vm479_vm15, %v1938_v16, %v462_v55 }
 0x12c   : > { %567 = vrot.lane.b32.xlu1 %v488_v54, %s1777_s17  ;;  %565 = vrot.lane.b32.xlu0 %v487_v57, %s1777_s17 }
 0x12d   : > { %v524_v56 = vpop.permute.xlu1 %523  ;;  %v522_v59 = vpop.permute.xlu0 %521 }
 0x12e   : > { %v538_v58 = vsel %vm474_vm8, %v502_v33, %v524_v56  ;;  %v537_v60 = vsel %vm473_vm9, %v499_v34, %v522_v59 }
 0x130   : > { %627 = vrot.lane.b32.xlu1 %v538_v58, %s1777_s17  ;;  %625 = vrot.lane.b32.xlu0 %v537_v60, %s1777_s17 }
 0x131   : > { %v528_v61 = vpop.permute.xlu1 %527  ;;  %v526_v63 = vpop.permute.xlu0 %525 }
 0x132   : > { %v540_v62 = vsel %vm476_vm10, %v508_v35, %v528_v61  ;;  %v539_v0 = vsel %vm475_vm11, %v505_v36, %v526_v63 }
 0x134   : > { %631 = vrot.lane.b32.xlu1 %v540_v62, %s1777_s17  ;;  %629 = vrot.lane.b32.xlu0 %v539_v0, %s1777_s17 }
 0x135   : > { %v532_v17 = vpop.permute.xlu1 %531  ;;  %v530_v19 = vpop.permute.xlu0 %529 }
 0x136   : > { %v542_v18 = vsel %vm478_vm12, %v514_v37, %v532_v17  ;;  %v541_v20 = vsel %vm477_vm13, %v511_v38, %v530_v19 }
 0x138   : > { %635 = vrot.lane.b32.xlu1 %v542_v18, %s1777_s17  ;;  %633 = vrot.lane.b32.xlu0 %v541_v20, %s1777_s17 }
 0x139   : > { %v536_v21 = vpop.permute.xlu1 %535  ;;  %v534_v23 = vpop.permute.xlu0 %533 }
 0x13a   : > { %v544_v22 = vsel %vm480_vm14, %v520_v39, %v536_v21  ;;  %v543_v25 = vsel %vm479_vm15, %v517_v40, %v534_v23 }
 0x13c   : > { %639 = vrot.lane.b32.xlu1 %v544_v22, %s1777_s17  ;;  %637 = vrot.lane.b32.xlu0 %v543_v25, %s1777_s17 }
 0x140   : > { %709 = vperm.xlu1 %1699, %v698_v24   ;;  %706 = vperm.xlu0 %1698, %v697_v26   ;;  %v802_v24 = vadd.s32 65, %v1883_v4  ;;  %v801_v26 = vadd.s32 65, %v1877_v2 }
 0x144   : > { %715 = vperm.xlu1 %1699, %v700_v27   ;;  %712 = vperm.xlu0 %1698, %v699_v28   ;;  %v804_v27 = vadd.s32 65, %v1879_v3  ;;  %v803_v28 = vadd.s32 65, %v1874_v1 }
 0x148   : > { %721 = vperm.xlu1 %1699, %v702_v29   ;;  %718 = vperm.xlu0 %1698, %v701_v30   ;;  %v806_v29 = vadd.s32 65, %v1885_v5  ;;  %v805_v30 = vadd.s32 65, %v1889_v6 }
 0x14a   : > { %v606_v33 = vpop.permute.xlu1 %605  ;;  %v603_v34 = vpop.permute.xlu0 %602 }
 0x14c   : > { %727 = vperm.xlu1 %1699, %v704_v31   ;;  %724 = vperm.xlu0 %1698, %v703_v32   ;;  %v808_v31 = vadd.s32 65, %v1891_v7  ;;  %v807_v32 = vadd.s32 65, %v1901_v8 }
 0x14e   : > { %v612_v35 = vpop.permute.xlu1 %611  ;;  %v609_v36 = vpop.permute.xlu0 %608 }
 0x152   : > { %v618_v37 = vpop.permute.xlu1 %617  ;;  %v615_v38 = vpop.permute.xlu0 %614 }
 0x156   : > { %v624_v39 = vpop.permute.xlu1 %623  ;;  %v621_v40 = vpop.permute.xlu0 %620 }
 0x192   : > { %v556_v41 = vpop.permute.xlu1 %555  ;;  %v554_v43 = vpop.permute.xlu0 %553 }
 0x193   : > { %vm578_vm0 = vcmp.gt.f32.partialorder %v1904_v9, %v556_v41  ;;  %vm577_vm1 = vcmp.gt.f32.partialorder %v1908_v10, %v554_v43 }
 0x194   : > { %v586_v42 = vsel %vm578_vm0, %v1904_v9, %v556_v41  ;;  %v585_v45 = vsel %vm577_vm1, %v1908_v10, %v554_v43 }
 0x195   : > { %659 = vrot.lane.b32.xlu1 %v586_v42, %s1777_s17  ;;  %657 = vrot.lane.b32.xlu0 %v585_v45, %s1777_s17 }
 0x196   : > { %v560_v44 = vpop.permute.xlu1 %559  ;;  %v558_v47 = vpop.permute.xlu0 %557 }
 0x197   : > { %vm580_vm2 = vcmp.gt.f32.partialorder %v1913_v11, %v560_v44  ;;  %vm579_vm3 = vcmp.gt.f32.partialorder %v1918_v12, %v558_v47 }
 0x198   : > { %v588_v46 = vsel %vm580_vm2, %v1913_v11, %v560_v44  ;;  %v587_v49 = vsel %vm579_vm3, %v1918_v12, %v558_v47 }
 0x199   : > { %663 = vrot.lane.b32.xlu1 %v588_v46, %s1777_s17  ;;  %661 = vrot.lane.b32.xlu0 %v587_v49, %s1777_s17 }
 0x19a   : > { %v564_v48 = vpop.permute.xlu1 %563  ;;  %v562_v51 = vpop.permute.xlu0 %561 }
 0x19b   : > { %vm582_vm4 = vcmp.gt.f32.partialorder %v1923_v13, %v564_v48  ;;  %vm581_vm5 = vcmp.gt.f32.partialorder %v1928_v14, %v562_v51 }
 0x19c   : > { %v590_v50 = vsel %vm582_vm4, %v1923_v13, %v564_v48  ;;  %v589_v53 = vsel %vm581_vm5, %v1928_v14, %v562_v51 }
 0x19d   : > { %667 = vrot.lane.b32.xlu1 %v590_v50, %s1777_s17  ;;  %665 = vrot.lane.b32.xlu0 %v589_v53, %s1777_s17 }
 0x19e   : > { %v568_v52 = vpop.permute.xlu1 %567  ;;  %v566_v55 = vpop.permute.xlu0 %565 }
 0x19f   : > { %vm584_vm6 = vcmp.gt.f32.partialorder %v1933_v15, %v568_v52  ;;  %vm583_vm7 = vcmp.gt.f32.partialorder %v1938_v16, %v566_v55 }
 0x1a0   : > { %v592_v54 = vsel %vm584_vm6, %v1933_v15, %v568_v52  ;;  %v591_v57 = vsel %vm583_vm7, %v1938_v16, %v566_v55 }
 0x1a1   : > { %671 = vrot.lane.b32.xlu1 %v592_v54, %s1777_s17  ;;  %669 = vrot.lane.b32.xlu0 %v591_v57, %s1777_s17 }
 0x1a2   : > { %v628_v56 = vpop.permute.xlu1 %627  ;;  %v626_v59 = vpop.permute.xlu0 %625 }
 0x1a3   : > { %v642_v58 = vsel %vm578_vm0, %v606_v33, %v628_v56  ;;  %v641_v60 = vsel %vm577_vm1, %v603_v34, %v626_v59  ;;  %vm1166_vm0 = vcmask 523264  }
 0x1a5   : > { %731 = vrot.lane.b32.xlu1 %v642_v58, %s1777_s17  ;;  %729 = vrot.lane.b32.xlu0 %v641_v60, %s1777_s17 }
 0x1a6   : > { %v632_v61 = vpop.permute.xlu1 %631  ;;  %v630_v63 = vpop.permute.xlu0 %629 }
 0x1a7   : > { %v644_v62 = vsel %vm580_vm2, %v612_v35, %v632_v61  ;;  %v643_v0 = vsel %vm579_vm3, %v609_v36, %v630_v63 }
 0x1a9   : > { %735 = vrot.lane.b32.xlu1 %v644_v62, %s1777_s17  ;;  %733 = vrot.lane.b32.xlu0 %v643_v0, %s1777_s17 }
 0x1aa   : > { %v636_v17 = vpop.permute.xlu1 %635  ;;  %v634_v19 = vpop.permute.xlu0 %633 }
 0x1ab   : > { %v646_v18 = vsel %vm582_vm4, %v618_v37, %v636_v17  ;;  %v645_v20 = vsel %vm581_vm5, %v615_v38, %v634_v19 }
 0x1ad   : > { %739 = vrot.lane.b32.xlu1 %v646_v18, %s1777_s17  ;;  %737 = vrot.lane.b32.xlu0 %v645_v20, %s1777_s17 }
 0x1ae   : > { %v640_v21 = vpop.permute.xlu1 %639  ;;  %v638_v23 = vpop.permute.xlu0 %637 }
 0x1af   : > { %v648_v22 = vsel %vm584_vm6, %v624_v39, %v640_v21  ;;  %v647_v25 = vsel %vm583_vm7, %v621_v40, %v638_v23 }
 0x1b1   : > { %743 = vrot.lane.b32.xlu1 %v648_v22, %s1777_s17  ;;  %741 = vrot.lane.b32.xlu0 %v647_v25, %s1777_s17 }
 0x1b5   : > { %813 = vperm.xlu1 %1699, %v802_v24   ;;  %810 = vperm.xlu0 %1698, %v801_v26   ;;  %v906_v24 = vadd.s32 72, %v1883_v4  ;;  %v905_v26 = vadd.s32 72, %v1877_v2 }
 0x1b9   : > { %819 = vperm.xlu1 %1699, %v804_v27   ;;  %816 = vperm.xlu0 %1698, %v803_v28   ;;  %v908_v27 = vadd.s32 72, %v1879_v3  ;;  %v907_v28 = vadd.s32 72, %v1874_v1 }
 0x1bd   : > { %825 = vperm.xlu1 %1699, %v806_v29   ;;  %822 = vperm.xlu0 %1698, %v805_v30   ;;  %v910_v29 = vadd.s32 72, %v1885_v5  ;;  %v909_v30 = vadd.s32 72, %v1889_v6 }
 0x1bf   : > { %v710_v33 = vpop.permute.xlu1 %709  ;;  %v707_v34 = vpop.permute.xlu0 %706 }
 0x1c1   : > { %831 = vperm.xlu1 %1699, %v808_v31   ;;  %828 = vperm.xlu0 %1698, %v807_v32   ;;  %v912_v31 = vadd.s32 72, %v1891_v7  ;;  %v911_v32 = vadd.s32 72, %v1901_v8 }
 0x1c3   : > { %v716_v35 = vpop.permute.xlu1 %715  ;;  %v713_v36 = vpop.permute.xlu0 %712 }
 0x1c7   : > { %v722_v37 = vpop.permute.xlu1 %721  ;;  %v719_v38 = vpop.permute.xlu0 %718 }
 0x1cb   : > { %v728_v39 = vpop.permute.xlu1 %727  ;;  %v725_v40 = vpop.permute.xlu0 %724 }
 0x207   : > { %v660_v41 = vpop.permute.xlu1 %659  ;;  %v658_v43 = vpop.permute.xlu0 %657 }
 0x208   : > { %vm682_vm8 = vcmp.gt.f32.partialorder %v1904_v9, %v660_v41  ;;  %vm681_vm9 = vcmp.gt.f32.partialorder %v1908_v10, %v658_v43 }
 0x209   : > { %v690_v42 = vsel %vm682_vm8, %v1904_v9, %v660_v41  ;;  %v689_v45 = vsel %vm681_vm9, %v1908_v10, %v658_v43  ;;  %v1703_v41 = vld [vmem:[%s2619_s2 + $0x18] sm:$0xff]   ;;  %v1130_v43 = vpack.c.bf16 %v1904_v9, %v1908_v10 }
 0x20a   : > { %763 = vrot.lane.b32.xlu1 %v690_v42, %s1777_s17  ;;  %761 = vrot.lane.b32.xlu0 %v689_v45, %s1777_s17 }
 0x20b   : > { %v664_v44 = vpop.permute.xlu1 %663  ;;  %v662_v47 = vpop.permute.xlu0 %661  ;;  %1639 = vmatprep.mubr.msk.bf16.mxu0 %vm1166_vm0, %v1130_v43 }
 0x20c   : > { %vm684_vm10 = vcmp.gt.f32.partialorder %v1913_v11, %v664_v44  ;;  %vm683_vm11 = vcmp.gt.f32.partialorder %v1918_v12, %v662_v47 }
 0x20d   : > { %v692_v46 = vsel %vm684_vm10, %v1913_v11, %v664_v44  ;;  %v691_v49 = vsel %vm683_vm11, %v1918_v12, %v662_v47  ;;  %v1131_v44 = vpack.c.bf16 %v1913_v11, %v1918_v12 }
 0x20e   : > { %767 = vrot.lane.b32.xlu1 %v692_v46, %s1777_s17  ;;  %765 = vrot.lane.b32.xlu0 %v691_v49, %s1777_s17  ;;  %v1132_v49 = vpack.c.bf16 %v1923_v13, %v1928_v14 }
 0x20f   : > { %v668_v48 = vpop.permute.xlu1 %667  ;;  %v666_v51 = vpop.permute.xlu0 %665 }
 0x210   : > { %vm686_vm12 = vcmp.gt.f32.partialorder %v1923_v13, %v668_v48  ;;  %vm685_vm13 = vcmp.gt.f32.partialorder %v1928_v14, %v666_v51  ;;  %1643 = vmatprep.mubr.msk.bf16.mxu1 %vm1166_vm0, %v1132_v49 }
 0x211   : > { %v694_v50 = vsel %vm686_vm12, %v1923_v13, %v668_v48  ;;  %v693_v53 = vsel %vm685_vm13, %v1928_v14, %v666_v51  ;;  %v1133_v51 = vpack.c.bf16 %v1933_v15, %v1938_v16 }
 0x212   : > { %771 = vrot.lane.b32.xlu1 %v694_v50, %s1777_s17  ;;  %769 = vrot.lane.b32.xlu0 %v693_v53, %s1777_s17 }
 0x213   : > { %v672_v52 = vpop.permute.xlu1 %671  ;;  %v670_v55 = vpop.permute.xlu0 %669 }
 0x214   : > { %vm688_vm14 = vcmp.gt.f32.partialorder %v1933_v15, %v672_v52  ;;  %vm687_vm15 = vcmp.gt.f32.partialorder %v1938_v16, %v670_v55 }
 0x215   : > { %v696_v54 = vsel %vm688_vm14, %v1933_v15, %v672_v52  ;;  %v695_v57 = vsel %vm687_vm15, %v1938_v16, %v670_v55 }
 0x216   : > { %775 = vrot.lane.b32.xlu1 %v696_v54, %s1777_s17  ;;  %773 = vrot.lane.b32.xlu0 %v695_v57, %s1777_s17 }
 0x217   : > { %v732_v56 = vpop.permute.xlu1 %731  ;;  %v730_v59 = vpop.permute.xlu0 %729 }
 0x218   : > { %v746_v58 = vsel %vm682_vm8, %v710_v33, %v732_v56  ;;  %v745_v60 = vsel %vm681_vm9, %v707_v34, %v730_v59  ;;  %v1700_v33 = vld [vmem:[%s2619_s2] sm:$0xff]   ;;  %v1701_v34 = vld [vmem:[%s2619_s2 + $0x8] sm:$0xff]  }
 0x219   : > { %1631 = vmatprep.subr.bf16.mxu0 %v1700_v33  ;;  %1647 = vmatprep.subr.bf16.mxu1 %v1700_v33 }
 0x21a   : > { %835 = vrot.lane.b32.xlu1 %v746_v58, %s1777_s17  ;;  %833 = vrot.lane.b32.xlu0 %v745_v60, %s1777_s17 }
 0x21b   : > { %v736_v61 = vpop.permute.xlu1 %735  ;;  %v734_v63 = vpop.permute.xlu0 %733  ;;  %1632 = vmatpush3.bf16.msra.mxu0 %v1700_v33  ;;  %1651 = vmatpush3.bf16.msra.mxu1 %v1700_v33 }
 0x21c   : > { %v748_v62 = vsel %vm684_vm10, %v716_v35, %v736_v61  ;;  %v747_v0 = vsel %vm683_vm11, %v713_v36, %v734_v63  ;;  %1633 = vmatprep.subr.bf16.mxu0 %v1701_v34  ;;  %v1702_v35 = vld [vmem:[%s2619_s2 + $0x10] sm:$0xff]   ;;  %1648 = vmatprep.subr.bf16.mxu1 %v1701_v34 }
 0x21e   : > { %839 = vrot.lane.b32.xlu1 %v748_v62, %s1777_s17  ;;  %837 = vrot.lane.b32.xlu0 %v747_v0, %s1777_s17 }
 0x21f   : > { %v740_v17 = vpop.permute.xlu1 %739  ;;  %v738_v19 = vpop.permute.xlu0 %737  ;;  %1634 = vmatpush3.bf16.msra.mxu0 %v1701_v34  ;;  %1652 = vmatpush3.bf16.msra.mxu1 %v1701_v34  ;;  %v1009_v34 = vadd.s32 73, %v1877_v2 }
 0x220   : > { %v750_v18 = vsel %vm686_vm12, %v722_v37, %v740_v17  ;;  %v749_v20 = vsel %vm685_vm13, %v719_v38, %v738_v19  ;;  %1635 = vmatprep.subr.bf16.mxu0 %v1702_v35  ;;  %1649 = vmatprep.subr.bf16.mxu1 %v1702_v35 }
 0x222   : > { %843 = vrot.lane.b32.xlu1 %v750_v18, %s1777_s17  ;;  %841 = vrot.lane.b32.xlu0 %v749_v20, %s1777_s17 }
 0x223   : > { %v744_v21 = vpop.permute.xlu1 %743  ;;  %v742_v23 = vpop.permute.xlu0 %741  ;;  %1636 = vmatpush3.bf16.msra.mxu0 %v1702_v35  ;;  %1653 = vmatpush3.bf16.msra.mxu1 %v1702_v35  ;;  %v1012_v35 = vadd.s32 73, %v1879_v3 }
 0x224   : > { %v752_v22 = vsel %vm688_vm14, %v728_v39, %v744_v21  ;;  %v751_v25 = vsel %vm687_vm15, %v725_v40, %v742_v23  ;;  %1637 = vmatprep.subr.bf16.mxu0 %v1703_v41  ;;  %1650 = vmatprep.subr.bf16.mxu1 %v1703_v41 }
 0x226   : > { %847 = vrot.lane.b32.xlu1 %v752_v22, %s1777_s17  ;;  %845 = vrot.lane.b32.xlu0 %v751_v25, %s1777_s17 }
 0x227   : > { %1638 = vmatpush3.bf16.msra.mxu0 %v1703_v41  ;;  %1654 = vmatpush3.bf16.msra.mxu1 %v1703_v41 }
 0x22a   : > { %917 = vperm.xlu1 %1699, %v906_v24   ;;  %914 = vperm.xlu0 %1698, %v905_v26  }
 0x22b   : > { %1640 = vmatmul.mubr.msk.bf16.vlgmr.msra.gmra.mrb[0].mxu0 %vm1166_vm0, %v1131_v44  ;;  %1644 = vmatmul.mubr.msk.bf16.vlgmr.msra.gmra.mrb[0].mxu1 %vm1166_vm0, %v1133_v51 }
 0x22e   : > { %923 = vperm.xlu1 %1699, %v908_v27   ;;  %920 = vperm.xlu0 %1698, %v907_v28  }
 0x232   : > { %929 = vperm.xlu1 %1699, %v910_v29   ;;  %926 = vperm.xlu0 %1698, %v909_v30  }
 0x234   : > { %v814_v36 = vpop.permute.xlu1 %813  ;;  %v811_v37 = vpop.permute.xlu0 %810 }
 0x236   : > { %935 = vperm.xlu1 %1699, %v912_v31   ;;  %932 = vperm.xlu0 %1698, %v911_v32   ;;  %v1010_v32 = vadd.s32 73, %v1883_v4  ;;  %v1016_v4 = vadd.s32 73, %v1891_v7 }
 0x238   : > { %v820_v38 = vpop.permute.xlu1 %819  ;;  %v817_v39 = vpop.permute.xlu0 %816 }
 0x23c   : > { %v2257_v40 = vpop.permute.xlu1 %825  ;;  %v2262_v42 = vpop.permute.xlu0 %822 }
 0x240   : > { %v832_v45 = vpop.permute.xlu1 %831  ;;  %v829_v46 = vpop.permute.xlu0 %828 }
 0x27c   : > { %v764_v47 = vpop.permute.xlu1 %763  ;;  %v762_v50 = vpop.permute.xlu0 %761 }
 0x27d   : > { %vm786_vm1 = vcmp.gt.f32.partialorder %v1904_v9, %v764_v47  ;;  %vm785_vm2 = vcmp.gt.f32.partialorder %v1908_v10, %v762_v50 }
 0x27e   : > { %v794_v48 = vsel %vm786_vm1, %v1904_v9, %v764_v47  ;;  %v793_v53 = vsel %vm785_vm2, %v1908_v10, %v762_v50 }
 0x27f   : > { %867 = vrot.lane.b32.xlu1 %v794_v48, %s1777_s17  ;;  %865 = vrot.lane.b32.xlu0 %v793_v53, %s1777_s17 }
 0x280   : > { %v768_v52 = vpop.permute.xlu1 %767  ;;  %v766_v55 = vpop.permute.xlu0 %765 }
 0x281   : > { %vm788_vm3 = vcmp.gt.f32.partialorder %v1913_v11, %v768_v52  ;;  %vm787_vm4 = vcmp.gt.f32.partialorder %v1918_v12, %v766_v55 }
 0x282   : > { %v796_v54 = vsel %vm788_vm3, %v1913_v11, %v768_v52  ;;  %v795_v57 = vsel %vm787_vm4, %v1918_v12, %v766_v55 }
 0x283   : > { %871 = vrot.lane.b32.xlu1 %v796_v54, %s1777_s17  ;;  %869 = vrot.lane.b32.xlu0 %v795_v57, %s1777_s17 }
 0x284   : > { %v772_v56 = vpop.permute.xlu1 %771  ;;  %v770_v59 = vpop.permute.xlu0 %769 }
 0x285   : > { %vm790_vm5 = vcmp.gt.f32.partialorder %v1923_v13, %v772_v56  ;;  %vm789_vm6 = vcmp.gt.f32.partialorder %v1928_v14, %v770_v59 }
 0x286   : > { %v798_v58 = vsel %vm790_vm5, %v1923_v13, %v772_v56  ;;  %v797_v61 = vsel %vm789_vm6, %v1928_v14, %v770_v59 }
 0x287   : > { %875 = vrot.lane.b32.xlu1 %v798_v58, %s1777_s17  ;;  %873 = vrot.lane.b32.xlu0 %v797_v61, %s1777_s17 }
 0x288   : > { %v776_v60 = vpop.permute.xlu1 %775  ;;  %v774_v63 = vpop.permute.xlu0 %773 }
 0x289   : > { %vm792_vm7 = vcmp.gt.f32.partialorder %v1933_v15, %v776_v60  ;;  %vm791_vm8 = vcmp.gt.f32.partialorder %v1938_v16, %v774_v63 }
 0x28a   : > { %v800_v62 = vsel %vm792_vm7, %v1933_v15, %v776_v60  ;;  %v799_v17 = vsel %vm791_vm8, %v1938_v16, %v774_v63 }
 0x28b   : > { %879 = vrot.lane.b32.xlu1 %v800_v62, %s1777_s17  ;;  %877 = vrot.lane.b32.xlu0 %v799_v17, %s1777_s17 }
 0x28c   : > { %v836_v0 = vpop.permute.xlu1 %835  ;;  %v834_v19 = vpop.permute.xlu0 %833 }
 0x28d   : > { %v850_v18 = vsel %vm786_vm1, %v814_v36, %v836_v0  ;;  %v849_v20 = vsel %vm785_vm2, %v811_v37, %v834_v19  ;;  %v1011_v36 = vadd.s32 73, %v1874_v1  ;;  %v1014_v37 = vadd.s32 73, %v1885_v5 }
 0x28f   : > { %939 = vrot.lane.b32.xlu1 %v850_v18, %s1777_s17  ;;  %937 = vrot.lane.b32.xlu0 %v849_v20, %s1777_s17  ;;  %v1286_v20 = vlaneseq }
 0x290   : > { %v840_v21 = vpop.permute.xlu1 %839  ;;  %v838_v23 = vpop.permute.xlu0 %837 }
 0x291   : > { %v852_v22 = vsel %vm788_vm3, %v820_v38, %v840_v21  ;;  %v851_v24 = vsel %vm787_vm4, %v817_v39, %v838_v23  ;;  %v1013_v38 = vadd.s32 73, %v1889_v6  ;;  %v1015_v39 = vadd.s32 73, %v1901_v8 }
 0x292   : > { %v2414_v21 = vshrl.u32 %v1286_v20, 7  ;;  %vm1276_vm3 = vcmask 11264  }
 0x293   : > { %943 = vrot.lane.b32.xlu1 %v852_v22, %s1777_s17  ;;  %941 = vrot.lane.b32.xlu0 %v851_v24, %s1777_s17  ;;  %v1295_v22 = vstv %s1608_s13 }
 0x294   : > { %v844_v25 = vpop.permute.xlu1 %843  ;;  %v842_v27 = vpop.permute.xlu0 %841  ;;  %v1288_v24 = vadd.s32 8, %v2414_v21 }
 0x295   : > { %v854_v26 = vsel %vm790_vm5, %v2257_v40, %v844_v25  ;;  %v853_v28 = vsel %vm789_vm6, %v2262_v42, %v842_v27  ;;  %v1296_v25 = vadd.s32 %v1295_v22, %v2414_v21  ;;  %v1293_v27 = vadd.s32 48, %v2414_v21 }
 0x296   : > { %vm1336_vm5 = vcmask 15360  }
 0x297   : > { %947 = vrot.lane.b32.xlu1 %v854_v26, %s1777_s17  ;;  %945 = vrot.lane.b32.xlu0 %v853_v28, %s1777_s17  ;;  %vm1304_vm2 = vcmp.lt.s32.totalorder %v1296_v25, 128  ;;  %v1291_v28 = vadd.s32 32, %v2414_v21 }
 0x298   : > { %v848_v29 = vpop.permute.xlu1 %847  ;;  %v846_v31 = vpop.permute.xlu0 %845 }
 0x299   : > { %v856_v30 = vsel %vm792_vm7, %v832_v45, %v848_v29  ;;  %v855_v33 = vsel %vm791_vm8, %v829_v46, %v846_v31 }
 0x29b   : > { %951 = vrot.lane.b32.xlu1 %v856_v30, %s1777_s17  ;;  %949 = vrot.lane.b32.xlu0 %v855_v33, %s1777_s17  ;;  %v1294_v30 = vadd.s32 56, %v2414_v21 }
 0x29f   : > { %1021 = vperm.xlu1 %1699, %v1010_v32   ;;  %1018 = vperm.xlu0 %1698, %v1009_v34   ;;  %v1292_v34 = vadd.s32 40, %v2414_v21 }
 0x2a3   : > { %1027 = vperm.xlu1 %1699, %v1012_v35   ;;  %1024 = vperm.xlu0 %1698, %v1011_v36  }
 0x2a7   : > { %1033 = vperm.xlu1 %1699, %v1014_v37   ;;  %1030 = vperm.xlu0 %1698, %v1013_v38   ;;  %v1302_v38 = vadd.s32 %v1295_v22, %v1293_v27 }
 0x2a9   : > { %v918_v2 = vpop.permute.xlu1 %917  ;;  %v915_v40 = vpop.permute.xlu0 %914  ;;  %vm1310_vm7 = vcmp.lt.s32.totalorder %v1302_v38, 128 }
 0x2ab   : > { %1039 = vperm.xlu1 %1699, %v1016_v4   ;;  %1036 = vperm.xlu0 %1698, %v1015_v39  }
 0x2ad   : > { %v924_v3 = vpop.permute.xlu1 %923  ;;  %v921_v41 = vpop.permute.xlu0 %920 }
 0x2b1   : > { %v930_v42 = vpop.permute.xlu1 %929  ;;  %v927_v1 = vpop.permute.xlu0 %926 }
 0x2b5   : > { %v936_v43 = vpop.permute.xlu1 %935  ;;  %v933_v44 = vpop.permute.xlu0 %932 }
 0x2f1   : > { %v868_v5 = vpop.permute.xlu1 %867  ;;  %v866_v7 = vpop.permute.xlu0 %865 }
 0x2f2   : > { %vm890_vm9 = vcmp.gt.f32.partialorder %v1904_v9, %v868_v5  ;;  %vm889_vm10 = vcmp.gt.f32.partialorder %v1908_v10, %v866_v7 }
 0x2f3   : > { %v898_v6 = vsel %vm890_vm9, %v1904_v9, %v868_v5  ;;  %v897_v45 = vsel %vm889_vm10, %v1908_v10, %v866_v7  ;;  %v1301_v7 = vadd.s32 %v1295_v22, %v1292_v34 }
 0x2f4   : > { %971 = vrot.lane.b32.xlu1 %v898_v6, %s1777_s17  ;;  %969 = vrot.lane.b32.xlu0 %v897_v45, %s1777_s17 }
 0x2f5   : > { %v872_v8 = vpop.permute.xlu1 %871  ;;  %v870_v47 = vpop.permute.xlu0 %869 }
 0x2f6   : > { %vm892_vm11 = vcmp.gt.f32.partialorder %v1913_v11, %v872_v8  ;;  %vm891_vm12 = vcmp.gt.f32.partialorder %v1918_v12, %v870_v47 }
 0x2f7   : > { %v900_v46 = vsel %vm892_vm11, %v1913_v11, %v872_v8  ;;  %v899_v49 = vsel %vm891_vm12, %v1918_v12, %v870_v47 }
 0x2f8   : > { %975 = vrot.lane.b32.xlu1 %v900_v46, %s1777_s17  ;;  %973 = vrot.lane.b32.xlu0 %v899_v49, %s1777_s17 }
 0x2f9   : > { %v876_v48 = vpop.permute.xlu1 %875  ;;  %v874_v51 = vpop.permute.xlu0 %873 }
 0x2fa   : > { %vm894_vm13 = vcmp.gt.f32.partialorder %v1923_v13, %v876_v48  ;;  %vm893_vm14 = vcmp.gt.f32.partialorder %v1928_v14, %v874_v51 }
 0x2fb   : > { %v902_v50 = vsel %vm894_vm13, %v1923_v13, %v876_v48  ;;  %v901_v53 = vsel %vm893_vm14, %v1928_v14, %v874_v51  ;;  %v1289_v14 = vadd.s32 16, %v2414_v21 }
 0x2fc   : > { %979 = vrot.lane.b32.xlu1 %v902_v50, %s1777_s17  ;;  %977 = vrot.lane.b32.xlu0 %v901_v53, %s1777_s17 }
 0x2fd   : > { %v880_v52 = vpop.permute.xlu1 %879  ;;  %v878_v55 = vpop.permute.xlu0 %877  ;;  %v1298_v23 = vadd.s32 %v1295_v22, %v1289_v14 }
 0x2fe   : > { %vm896_vm15 = vcmp.gt.f32.partialorder %v1933_v15, %v880_v52  ;;  %vm895_vm0 = vcmp.gt.f32.partialorder %v1938_v16, %v878_v55  ;;  %v1641_v29 = vpop.f32.mrb[0].mxu0  ;;  %v1645_v53 = vpop.f32.mrb[0].mxu1 }
 0x2ff   : > { %v904_v54 = vsel %vm896_vm15, %v1933_v15, %v880_v52  ;;  %v903_v57 = vsel %vm895_vm0, %v1938_v16, %v878_v55  ;;  %v1290_v15 = vadd.s32 24, %v2414_v21  ;;  %vm1306_vm1 = vcmp.lt.s32.totalorder %v1298_v23, 128  ;;  %v1213_v33 = vpop.f32.mrb[1].mxu0 }
 0x300   : > { %983 = vrot.lane.b32.xlu1 %v904_v54, %s1777_s17  ;;  %981 = vrot.lane.b32.xlu0 %v903_v57, %s1777_s17  ;;  %v1297_v16 = vadd.s32 %v1295_v22, %v1288_v24  ;;  %v1616_v31 = vpack.c.bf16 %v1641_v29, %v1641_v29  ;;  %v1330_v32 = vsel %vm1306_vm1, %v1641_v29, 0.0  ;;  %v1614_v35 = vpack.c.bf16 %v1213_v33, %v1213_v33  ;;  %v1642_v37 = vpop.f32.mrb[2].mxu0  ;;  %v1229_v57 = vpop.f32.mrb[1].mxu1 }
 0x301   : > { %v940_v56 = vpop.permute.xlu1 %939  ;;  %v938_v59 = vpop.permute.xlu0 %937  ;;  %v1299_v26 = vadd.s32 %v1295_v22, %v1290_v15  ;;  %v1328_v36 = vsel %vm1304_vm2, %v1213_v33, 0.0  ;;  %v1617_v39 = vpack.c.bf16 %v1642_v37, %v1642_v37  ;;  %v1340_v5 = vsel %vm1336_vm5, %v1330_v32, 0.0 }
 0x302   : > { %v954_v58 = vsel %vm890_vm9, %v918_v2, %v940_v56  ;;  %v953_v60 = vsel %vm889_vm10, %v915_v40, %v938_v59  ;;  %vm1305_vm6 = vcmp.lt.s32.totalorder %v1297_v16, 128  ;;  %1279 = vst.msk [vmem:[%s2427_s19 + $0x8] sm:$0xf] %vm1276_vm3, %v1616_v31  ;;  %v1358_v4 = vmul.f32 %v1328_v36, %v1328_v36  ;;  %v1216_v40 = vpop.f32.mrb[3].mxu0  ;;  %1277 = vst.msk [vmem:[%s2427_s19] sm:$0xf] %vm1276_vm3, %v1614_v35 }
 0x303   : > { %vm1307_vm4 = vcmp.lt.s32.totalorder %v1299_v26, 128  ;;  %1280 = vst.msk [vmem:[%s2427_s19 + $0xc] sm:$0xf] %vm1276_vm3, %v1617_v39  ;;  %v1329_v6 = vsel %vm1305_vm6, %v1216_v40, 0.0  ;;  %v1620_v56 = vpack.c.bf16 %v1645_v53, %v1645_v53  ;;  %vm1309_vm10 = vcmp.lt.s32.totalorder %v1301_v7, 128 }
 0x304   : > { %1043 = vrot.lane.b32.xlu1 %v954_v58, %s1777_s17  ;;  %1041 = vrot.lane.b32.xlu0 %v953_v60, %s1777_s17  ;;  %v1331_v2 = vsel %vm1307_vm4, %v1642_v37, 0.0  ;;  %v1366_v8 = vsel %vm1336_vm5, %v1358_v4, 0.0  ;;  %v1338_v46 = vsel %vm1336_vm5, %v1329_v6, 0.0  ;;  %v1359_v47 = vmul.f32 %v1329_v6, %v1329_v6 }
 0x305   : > { %v944_v61 = vpop.permute.xlu1 %943  ;;  %v942_v63 = vpop.permute.xlu0 %941  ;;  %v1361_v45 = vmul.f32 %v1331_v2, %v1331_v2  ;;  %v1342_v51 = vsel %vm1336_vm5, %v1331_v2, 0.0  ;;  %v1334_v60 = vsel %vm1310_vm7, %v1645_v53, 0.0  ;;  %1283 = vst.msk [vmem:[%s2427_s19 + $0x18] sm:$0xf] %vm1276_vm3, %v1620_v56 }
 0x306   : > { %v956_v62 = vsel %vm892_vm11, %v924_v3, %v944_v61  ;;  %v955_v9 = vsel %vm891_vm12, %v921_v41, %v942_v63  ;;  %v1300_v3 = vadd.s32 %v1295_v22, %v1291_v28  ;;  %v1367_v52 = vsel %vm1336_vm5, %v1359_v47, 0.0  ;;  %v1646_v63 = vpop.f32.mrb[2].mxu1 }
 0x307   : > { %v1368_v55 = vadd.f32 %v1367_v52, %v1366_v8  ;;  %v1371_v59 = vsel %vm1336_vm5, %v1361_v45, 0.0  ;;  %v1618_v61 = vpack.c.bf16 %v1229_v57, %v1229_v57  ;;  %v1364_v20 = vmul.f32 %v1334_v60, %v1334_v60  ;;  %v1706_v52 = vld [vmem:[%s1897_s16 + $0x18] sm:$0xff] }
 0x308   : > { %1047 = vrot.lane.b32.xlu1 %v956_v62, %s1777_s17  ;;  %1045 = vrot.lane.b32.xlu0 %v955_v9, %s1777_s17  ;;  %vm1308_vm8 = vcmp.lt.s32.totalorder %v1300_v3, 128  ;;  %v1348_v23 = vsel %vm1336_vm5, %v1334_v60, 0.0 }
 0x309   : > { %v948_v0 = vpop.permute.xlu1 %947  ;;  %v946_v10 = vpop.permute.xlu0 %945  ;;  %v1332_v62 = vsel %vm1308_vm8, %v1229_v57, 0.0  ;;  %1281 = vst.msk [vmem:[%s2427_s19 + $0x10] sm:$0xf] %vm1276_vm3, %v1618_v61  ;;  %v1707_v57 = vld [vmem:[%s1897_s16 + $0x10] sm:$0xff] }
 0x30a   : > { %v958_v17 = vsel %vm894_vm13, %v930_v42, %v948_v0  ;;  %v957_v11 = vsel %vm893_vm14, %v927_v1, %v946_v10  ;;  %v1360_v42 = vmul.f32 %v1330_v32, %v1330_v32  ;;  %v1337_v1 = vsel %vm1336_vm5, %v1328_v36, 0.0 }
 0x30b   : > { %v1339_v49 = vadd.f32 %v1338_v46, %v1337_v1  ;;  %v1362_v10 = vmul.f32 %v1332_v62, %v1332_v62  ;;  %v1705_v46 = vld [vmem:[%s1897_s16] sm:$0xff]  ;;  %vm1387_vm14 = vcmp.eq.s32.totalorder %v2414_v21, 0 }
 0x30c   : > { %1051 = vrot.lane.b32.xlu1 %v958_v17, %s1777_s17  ;;  %1049 = vrot.lane.b32.xlu0 %v957_v11, %s1777_s17  ;;  %v1369_v50 = vsel %vm1336_vm5, %v1360_v42, 0.0  ;;  %v1344_v17 = vsel %vm1336_vm5, %v1332_v62, 0.0  ;;  %v1232_v11 = vpop.f32.mrb[3].mxu1  ;;  %v1708_v62 = vld [vmem:[%s1897_s16 + $0x28] sm:$0xff] }
 0x30d   : > { %v952_v18 = vpop.permute.xlu1 %951  ;;  %v950_v12 = vpop.permute.xlu0 %949  ;;  %v1341_v54 = vadd.f32 %v1340_v5, %v1339_v49  ;;  %v1370_v9 = vadd.f32 %v1369_v50, %v1368_v55  ;;  %v1373_v15 = vsel %vm1336_vm5, %v1362_v10, 0.0  ;;  %v1333_v24 = vsel %vm1309_vm10, %v1232_v11, 0.0  ;;  %v1704_v5 = vld [vmem:[%s1897_s16 + $0x8] sm:$0xff] }
 0x30e   : > { %v960_v19 = vsel %vm896_vm15, %v936_v43, %v952_v18  ;;  %v959_v13 = vsel %vm895_vm0, %v933_v44, %v950_v12  ;;  %v1615_v43 = vpack.c.bf16 %v1216_v40, %v1216_v40  ;;  %v1303_v44 = vadd.s32 %v1295_v22, %v1294_v30 }
 0x30f   : > { %v1343_v0 = vadd.f32 %v1342_v51, %v1341_v54  ;;  %v1621_v18 = vpack.c.bf16 %v1646_v63, %v1646_v63  ;;  %v1619_v12 = vpack.c.bf16 %v1232_v11, %v1232_v11  ;;  %v1372_v22 = vadd.f32 %v1371_v59, %v1370_v9 }
 0x310   : > { %1055 = vrot.lane.b32.xlu1 %v960_v19, %s1777_s17  ;;  %1053 = vrot.lane.b32.xlu0 %v959_v13, %s1777_s17  ;;  %1278 = vst.msk [vmem:[%s2427_s19 + $0x4] sm:$0xf] %vm1276_vm3, %v1615_v43  ;;  %vm1311_vm9 = vcmp.lt.s32.totalorder %v1303_v44, 128  ;;  %v1346_v16 = vsel %vm1336_vm5, %v1333_v24, 0.0  ;;  %v1363_v27 = vmul.f32 %v1333_v24, %v1333_v24  ;;  %v1377_v30 = vsel %vm1336_vm5, %v1364_v20, 0.0 }
 0x311   : > { %v1335_v19 = vsel %vm1311_vm9, %v1646_v63, 0.0  ;;  %v1345_v14 = vadd.f32 %v1344_v17, %v1343_v0  ;;  %1284 = vst.msk [vmem:[%s2427_s19 + $0x1c] sm:$0xf] %vm1276_vm3, %v1621_v18  ;;  %1282 = vst.msk [vmem:[%s2427_s19 + $0x14] sm:$0xf] %vm1276_vm3, %v1619_v12  ;;  %v1374_v25 = vadd.f32 %v1373_v15, %v1372_v22  ;;  %vm1389_vm0 = vcmask 9216  }
 0x312   : > { %v1365_v26 = vmul.f32 %v1335_v19, %v1335_v19  ;;  %v1350_v31 = vsel %vm1336_vm5, %v1335_v19, 0.0  ;;  %v1375_v32 = vsel %vm1336_vm5, %v1363_v27, 0.0  ;;  %v1709_v0 = vld [vmem:[%s1897_s16 + $0x20] sm:$0xff] }
 0x313   : > { %v1347_v29 = vadd.f32 %v1346_v16, %v1345_v14  ;;  %v1376_v34 = vadd.f32 %v1375_v32, %v1374_v25  ;;  %v1710_v25 = vld [vmem:[%s1897_s16 + $0x38] sm:$0xff]  ;;  %v1711_v16 = vld [vmem:[%s1897_s16 + $0x30] sm:$0xff]  ;;  %s267_s16 = sand.u32 1, %s1766_s22  }
 0x314   : > { %v1379_v36 = vsel %vm1336_vm5, %v1365_v26, 0.0  ;;  %vm1097_vm5 = vcmask 64512   ;;  %s1582_s10 = sshll.u32 %s267_s16, 6  ;;  %s2573_s25 = scalar_lea.sflag [#allocation3], %s267_s16 }
 0x315   : > { %v1349_v33 = vadd.f32 %v1348_v23, %v1347_v29  ;;  %v1378_v38 = vadd.f32 %v1377_v30, %v1376_v34  ;;  %s269_s15 = scalar_lea.vmem [#allocation2], %s1582_s10 }
 0x316   : > { %s1423_s19 = sshll.u32 %s269_s15, 4  ;;  %s2566_s19 = int_to_ptr.vmem [resolvable:$true] %s1423_s19 }
 0x317   : > { %v1351_v37 = vadd.f32 %v1350_v31, %v1349_v33  ;;  %v1380_v2 = vadd.f32 %v1379_v36, %v1378_v38  ;;  %s1712_s28 = scalar_lea.vmem %s2566_s19, 1024 }
 0x318   : > { %p1713_p12 = scmp.ne.s32.totalorder %s2566_s19, %s1712_s28 }
 0x319   : > { %v1352_v39 = vrot.slane %v1351_v37, 4  ;;  %v1381_v3 = vrot.slane %v1380_v2, 4 }
 0x31a   : > { %p1714_p13 = pnand %p1713_p12, %p1854_p5 }
 0x31b   : > { %v1353_v40 = vadd.f32 %v1352_v39, %v1351_v37  ;;  %v1382_v44 = vadd.f32 %v1381_v3, %v1380_v2 }
 0x31c   : > { %p1715_p0 = pneg %p1714_p13 }
 0x31d   : > { %v1354_v43 = vrot.slane %v1353_v40, 2  ;;  %v1383_v8 = vrot.slane %v1382_v44, 2 }
 0x31e   : > { %v2433_v41 = vpop.permute.xlu1 %1021  ;;  %v2446_v48 = vpop.permute.xlu0 %1018 }
 0x31f   : > { %v1355_v7 = vadd.f32 %v1354_v43, %v1353_v40  ;;  %v1384_v50 = vadd.f32 %v1383_v8, %v1382_v44 }
 0x321   : > { %v1356_v49 = vrot.slane %v1355_v7, 1  ;;  %v1385_v55 = vrot.slane %v1384_v50, 1 }
 0x322   : > { %v2451_v58 = vpop.permute.xlu1 %1027  ;;  %v2460_v13 = vpop.permute.xlu0 %1024 }
 0x323   : > { %v1357_v54 = vadd.f32 %v1356_v49, %v1355_v7  ;;  %v1386_v60 = vadd.f32 %v1385_v55, %v1384_v50 }
 0x325   : > { %v1388_v9 = vsel %vm1387_vm14, %v1357_v54, %v1386_v60 }
 0x326   : > { %v2470_v28 = vpop.permute.xlu1 %1033  ;;  %v2475_v35 = vpop.permute.xlu0 %1030  ;;  %1390 = vst.msk [vmem:[%s311_s11] sm:$0x3] %vm1389_vm0, %v1388_v9  ;;  %s1716_s11 = sshll.u32 %s1779_s29, 4  ;;  %s1717_s11 = int_to_ptr.vmem [resolvable:$false] %s1716_s11 }
 0x327   : > { %s1718_s12 = scalar_lea.vmem %s1717_s11, 2048  ;;  %p1719_p1 = scmp.lt.s32.totalorder %s2566_s19, %s1717_s11 }
 0x328   : > { %p1720_p2 = scmp.lt.s32.totalorder %s1718_s12, %s1712_s28 }
 0x32a   : > { %v2478_v4 = vpop.permute.xlu1 %1039  ;;  %v2481_v42 = vpop.permute.xlu0 %1036  ;;  %p1721_p3 = por %p1720_p2, %p1719_p1 }
 0x32c   : > { %p1722_p4 = pnand %p1721_p3, %p1715_p0 }
 0x366   : > { %v972_v1 = vpop.permute.xlu1 %971  ;;  %v970_v45 = vpop.permute.xlu0 %969 }
 0x367   : > { %vm994_vm11 = vcmp.gt.f32.partialorder %v1704_v5, %v972_v1  ;;  %vm993_vm12 = vcmp.gt.f32.partialorder %v1705_v46, %v970_v45 }
 0x368   : > { %v1002_v6 = vsel %vm994_vm11, %v1704_v5, %v972_v1  ;;  %v1001_v51 = vsel %vm993_vm12, %v1705_v46, %v970_v45 }
 0x369   : > { %1075 = vrot.lane.b32.xlu1 %v1002_v6, %s1778_s20  ;;  %1073 = vrot.lane.b32.xlu0 %v1001_v51, %s1778_s20 }
 0x36a   : > { %v976_v47 = vpop.permute.xlu1 %975  ;;  %v974_v56 = vpop.permute.xlu0 %973 }
 0x36b   : > { %vm996_vm13 = vcmp.gt.f32.partialorder %v1706_v52, %v976_v47  ;;  %vm995_vm15 = vcmp.gt.f32.partialorder %v1707_v57, %v974_v56 }
 0x36c   : > { %v1004_v53 = vsel %vm996_vm13, %v1706_v52, %v976_v47  ;;  %v1003_v61 = vsel %vm995_vm15, %v1707_v57, %v974_v56 }
 0x36d   : > { %1079 = vrot.lane.b32.xlu1 %v1004_v53, %s1778_s20  ;;  %1077 = vrot.lane.b32.xlu0 %v1003_v61, %s1778_s20 }
 0x36e   : > { %v980_v59 = vpop.permute.xlu1 %979  ;;  %v978_v21 = vpop.permute.xlu0 %977 }
 0x36f   : > { %vm998_vm1 = vcmp.gt.f32.partialorder %v1708_v62, %v980_v59  ;;  %vm997_vm2 = vcmp.gt.f32.partialorder %v1709_v0, %v978_v21 }
 0x370   : > { %v1006_v63 = vsel %vm998_vm1, %v1708_v62, %v980_v59  ;;  %v1005_v10 = vsel %vm997_vm2, %v1709_v0, %v978_v21 }
 0x371   : > { %1083 = vrot.lane.b32.xlu1 %v1006_v63, %s1778_s20  ;;  %1081 = vrot.lane.b32.xlu0 %v1005_v10, %s1778_s20 }
 0x372   : > { %v984_v17 = vpop.permute.xlu1 %983  ;;  %v982_v11 = vpop.permute.xlu0 %981 }
 0x373   : > { %vm1000_vm3 = vcmp.gt.f32.partialorder %v1710_v25, %v984_v17  ;;  %vm999_vm4 = vcmp.gt.f32.partialorder %v1711_v16, %v982_v11 }
 0x374   : > { %v1008_v29 = vsel %vm1000_vm3, %v1710_v25, %v984_v17  ;;  %v1007_v30 = vsel %vm999_vm4, %v1711_v16, %v982_v11 }
 0x376   : > { %v1044_v18 = vpop.permute.xlu1 %1043  ;;  %v1042_v12 = vpop.permute.xlu0 %1041 }
 0x377   : > { %v1058_v19 = vsel %vm994_vm11, %v2433_v41, %v1044_v18  ;;  %v1057_v20 = vsel %vm993_vm12, %v2446_v48, %v1042_v12 }
 0x378   : > { %1108 = vrot.lane.b32.xlu1 %v1058_v19, %s1778_s20  ;;  %1106 = vrot.lane.b32.xlu0 %v1057_v20, %s1778_s20 }
 0x37a   : > { %v1048_v14 = vpop.permute.xlu1 %1047  ;;  %v1046_v15 = vpop.permute.xlu0 %1045 }
 0x37b   : > { %v1060_v22 = vsel %vm996_vm13, %v2451_v58, %v1048_v14  ;;  %v1059_v23 = vsel %vm995_vm15, %v2460_v13, %v1046_v15 }
 0x37c   : > { %1112 = vrot.lane.b32.xlu1 %v1060_v22, %s1778_s20  ;;  %1110 = vrot.lane.b32.xlu0 %v1059_v23, %s1778_s20 }
 0x37e   : > { %v1052_v41 = vpop.permute.xlu1 %1051  ;;  %v1050_v48 = vpop.permute.xlu0 %1049 }
 0x37f   : > { %v1062_v24 = vsel %vm998_vm1, %v2470_v28, %v1052_v41  ;;  %v1061_v58 = vsel %vm997_vm2, %v2475_v35, %v1050_v48 }
 0x380   : > { %1116 = vrot.lane.b32.xlu1 %v1062_v24, %s1778_s20  ;;  %1114 = vrot.lane.b32.xlu0 %v1061_v58, %s1778_s20 }
 0x382   : > { %v1056_v26 = vpop.permute.xlu1 %1055  ;;  %v1054_v27 = vpop.permute.xlu0 %1053 }
 0x383   : > { %v1064_v13 = vsel %vm1000_vm3, %v2478_v4, %v1056_v26  ;;  %v1063_v28 = vsel %vm999_vm4, %v2481_v42, %v1054_v27 }
 0x384   : > { %1120 = vrot.lane.b32.xlu1 %v1064_v13, %s1778_s20  ;;  %1118 = vrot.lane.b32.xlu0 %v1063_v28, %s1778_s20 }
 0x388   : > { %1087 = vrot.lane.b32.xlu1 %v1008_v29, %s1778_s20  ;;  %1085 = vrot.lane.b32.xlu0 %v1007_v30, %s1778_s20 }
 0x3db   : > { %v1076_v31 = vpop.permute.xlu1 %1075  ;;  %v1074_v32 = vpop.permute.xlu0 %1073 }
 0x3dc   : > { %1099 = vst.msk [vmem:[%s2536_s14 + $0x8] sm:$0xff] %vm1097_vm5, %v1076_v31  ;;  %1098 = vst.msk [vmem:[%s2536_s14] sm:$0xff] %vm1097_vm5, %v1074_v32 }
 0x3df   : > { %v1080_v33 = vpop.permute.xlu1 %1079  ;;  %v1078_v34 = vpop.permute.xlu0 %1077 }
 0x3e0   : > { %1101 = vst.msk [vmem:[%s2536_s14 + $0x18] sm:$0xff] %vm1097_vm5, %v1080_v33  ;;  %1100 = vst.msk [vmem:[%s2536_s14 + $0x10] sm:$0xff] %vm1097_vm5, %v1078_v34 }
 0x3e3   : > { %v1084_v35 = vpop.permute.xlu1 %1083  ;;  %v1082_v36 = vpop.permute.xlu0 %1081 }
 0x3e4   : > { %1103 = vst.msk [vmem:[%s2536_s14 + $0x28] sm:$0xff] %vm1097_vm5, %v1084_v35  ;;  %1102 = vst.msk [vmem:[%s2536_s14 + $0x20] sm:$0xff] %vm1097_vm5, %v1082_v36 }
 0x3ea   : > { %v1109_v37 = vpop.permute.xlu1 %1108  ;;  %v1107_v38 = vpop.permute.xlu0 %1106 }
 0x3eb   : > { %1123 = vst.msk [vmem:[%s269_s15 + $0x8] sm:$0xff] %vm1097_vm5, %v1109_v37  ;;  %1122 = vst.msk [vmem:[%s269_s15] sm:$0xff] %vm1097_vm5, %v1107_v38 }
 0x3ee   : > { %v1113_v4 = vpop.permute.xlu1 %1112  ;;  %v1111_v39 = vpop.permute.xlu0 %1110 }
 0x3ef   : > { %1125 = vst.msk [vmem:[%s269_s15 + $0x18] sm:$0xff] %vm1097_vm5, %v1113_v4  ;;  %1124 = vst.msk [vmem:[%s269_s15 + $0x10] sm:$0xff] %vm1097_vm5, %v1111_v39 }
 0x3f2   : > { %v1117_v2 = vpop.permute.xlu1 %1116  ;;  %v1115_v40 = vpop.permute.xlu0 %1114 }
 0x3f3   : > { %1127 = vst.msk [vmem:[%s269_s15 + $0x28] sm:$0xff] %vm1097_vm5, %v1117_v2  ;;  %1126 = vst.msk [vmem:[%s269_s15 + $0x20] sm:$0xff] %vm1097_vm5, %v1115_v40 }
 0x3f6   : > { %v1121_v3 = vpop.permute.xlu1 %1120  ;;  %v1119_v42 = vpop.permute.xlu0 %1118 }
 0x3f7   : > { %1129 = vst.msk [vmem:[%s269_s15 + $0x38] sm:$0xff] %vm1097_vm5, %v1121_v3  ;;  %1128 = vst.msk [vmem:[%s269_s15 + $0x30] sm:$0xff] %vm1097_vm5, %v1119_v42 }
 0x3fa   : > { %v1088_v1 = vpop.permute.xlu1 %1087 }
 0x3fb   : > { %1105 = vst.msk [vmem:[%s2536_s14 + $0x38] sm:$0xff] %vm1097_vm5, %v1088_v1 }
 0x3fc   : > { %1725 = shalt.err (!%p1722_p4)
}
 0x3fd   : > { %s1726_s13 = scalar_lea.hbm %s2564_s26, 1024  ;;  %s1730_s15 = scalar_lea.hbm %s2621_s4, 2048 }
 0x3fe   : > { %p1727_p7 = scmp.ne.s32.totalorder %s2564_s26, %s1726_s13  ;;  %p1731_p10 = scmp.lt.u32.totalorder %s2564_s26, %s2621_s4 }
 0x3ff   : > { %p1732_p11 = scmp.lt.u32.totalorder %s1730_s15, %s1726_s13  ;;  %p1734_p13 = scmp.lt.u32.totalorder %s1726_s13, %s2564_s26 }
 0x400   : > { %p1728_p8 = pnand %p1727_p7, %p1854_p5 }
 0x401   : > { %p1733_p12 = por %p1732_p11, %p1731_p10 }
 0x402   : > { %p1729_p9 = pneg %p1728_p8 }
 0x403   : > { %p1735_p0 = por %p1734_p13, %p1733_p12 }
 0x405   : > { %p1736_p1 = pnand %p1735_p0, %p1729_p9 }
 0x407   : > { %1739 = shalt.err (!%p1736_p1)
}
 0x408   : > { %s1780_s20 = smov 128   ;;  %v1086_v43 = vpop.permute.xlu0 %1085 }
 0x409   : > { %1655 = dma.vmem_to_hbm [thread:$0]  (%p1854_p5), %s2566_s19, 1024, %s2564_s26, %s2573_s25, %s1780_s20, %s1780_s20, %s1777_s17  }
 0x40a   : > { %1104 = vst.msk [vmem:[%s2536_s14 + $0x30] sm:$0xff] %vm1097_vm5, %v1086_v43 }
 0x40b PF: > { %p1661_p2 = scmp.ge.s32.totalorder %s1774_s24, 2  ;;  %s1453_s28 = sand.u32 1, %s1762_s21  }
 0x40c   : > { %s1454_s29 = scalar_lea.sflag [#allocation3], %s1453_s28 }
 0x40d   : > { %p1658_p3 = pnand %p1661_p2, %p1858_p6 }
 0x40f   : > { %1757 = dma.done.wait (!%p1658_p3), %s1454_s29, 1024  }
 0x410   : > { %1759 = vsyncadd (!%p1658_p3), %s1454_s29, 4294966272  ;;  %p17_p5 = scmp.ge.s32.totalorder %s1841_s27, 4   ;;  %s2626_s21 = smov %s1766_s22 }
 0x411   : > { %s2627_s22 = smov %s1770_s23  ;;  %s2628_s23 = smov %s1852_s30 }
 0x412   : > { %s2629_s24 = smov %s1841_s27  ;;  %19 = sbr.rel (!%p17_p5) target bundleno = 3 (0x3), region = 106 }
 0x419   :  { %1474 = vsyncpa [#allocation3], 1 }
 0x41a   :  { %1476 = vsyncpa [#allocation3 + $0x1], 1 }

// kernel: _lambda_.5
= control target key start
LH: loop header
LB: loop body
LE: loop exit
PB: predicated region body
PF: predicated region fallthrough
CT: control target
= control target key end

     0   :  { %s2094_s24 = smov 0   ;;  %s2096_s25 = smov 0   ;;  %s2608_s0 = inlined_call_operand.vmem [shape: bf16[2,4,4,4,2], index: 0, kind: input, shape index: {}, may-alias: {0,1,2}]   ;;  %s2609_s1 = inlined_call_operand.vmem [shape: bf16[2,4,4,4,2], index: 1, kind: input, shape index: {}, may-alias: {0,1,2}]   ;;  %s2610_s2 = inlined_call_operand.vmem [shape: bf16[2,4,4,4,2], index: 2, kind: input, shape index: {}, may-alias: {0,1,2}]   ;;  %s2611_s3 = inlined_call_operand.vmem [shape: f32[1,2], index: 3, kind: input, shape index: {}]   ;;  %s2612_s4 = inlined_call_operand.vmem [shape: f32[1,2], index: 4, kind: input, shape index: {}]   ;;  %s2613_s5 = inlined_call_operand.vmem [shape: bf16[54,2], index: 5, kind: input, shape index: {}]   ;;  %s2614_s6 = inlined_call_operand.vmem [shape: f32[2,4,4,4,2], index: 6, kind: output, shape index: {0}]   ;;  %s2615_s7 = inlined_call_operand.vmem [shape: f32[2,4,2,2], index: 7, kind: output, shape index: {1}]  }
   0x1   :  { %s2098_s26 = smov 0   ;;  %s2100_s27 = smov 0  }
   0x2   :  { %s2102_s28 = smov 0  }
   0x3 LB: > { %s27_s29 = sadd.s32 1, %s2016_s26  ;;  %s30_s30 = sadd.s32 1, %s2020_s27  ;;  %s2024_s28 = sphi %s2102_s28, %s18_s28   ;;  %s2020_s27 = sphi %s2100_s27, %s2666_s27   ;;  %s2016_s26 = sphi %s2098_s26, %s2665_s26   ;;  %s2012_s25 = sphi %s2096_s25, %s2664_s25   ;;  %s2008_s24 = sphi %s2094_s24, %s2663_s24  }
   0x4   : > { %p28_p0 = scmp.ge.s32.totalorder %s27_s29, 4  ;;  %p1783_p1 = scmp.ge.s32.totalorder %s2024_s28, 1 }
   0x5   : > { %p350_p2 = scmp.lt.s32.totalorder %s2024_s28, 9 }
   0x6   : > { %s2668_s29 = smov (%p28_p0, %s27_s29), 0  ;;  %s2670_s30 = smov (!%p28_p0, %s30_s30), %s2020_s27 }
   0x7   : > { %p351_p3 = pnand %p1783_p1, %p350_p2  ;;  %p32_p4 = scmp.ge.s32.totalorder %s2670_s30, 2 }
   0x8   : > { %vm505_vm0 = vcmask (!%p351_p3), 13312   ;;  %v2026_v0 = vmov (!%p351_p3), 0.0   ;;  %s430_s8 = sadd.s32 (!%p351_p3), 4294967295, %s2008_s24  ;;  %p435_p5 = scmp.lt.s32.totalorder (!%p351_p3), %s2012_s25, 1  ;;  %vm2628_vm1 = vcmask (!%p351_p3), 11264   ;;  %vm675_vm5 = vcmask (!%p351_p3), 27664  }
   0x9   : > { %s2672_s30 = smov (%p32_p4, %s2670_s30), 0  ;;  %354 = sbr.rel (%p351_p3) target bundleno = 598 (0x256), region = 44 }
   0xa   : > { %512 = vst.msk [vmem:[#allocation2 + $0x30] sm:$0x3f] (!%p351_p3), %vm505_vm0, %v2026_v0  ;;  %506 = vst.msk [vmem:[#allocation2] sm:$0x3f] (!%p351_p3), %vm505_vm0, %v2026_v0  ;;  %1866 = vmatprep.subr.bf16.mxu0 (!%p351_p3), %v2026_v0  ;;  %1878 = vmatprep.subr.bf16.mxu1 (!%p351_p3), %v2026_v0  ;;  %p431_p6 = scmp.lt.s32.totalorder (!%p351_p3), %s430_s8, 3  ;;  %p1784_p7 = scmp.gt.s32.totalorder (!%p351_p3), %s430_s8, 0 }
   0xb   : > { %507 = vst.msk [vmem:[#allocation2 + $0x8] sm:$0x3f] (!%p351_p3), %vm505_vm0, %v2026_v0  ;;  %508 = vst.msk [vmem:[#allocation2 + $0x10] sm:$0x3f] (!%p351_p3), %vm505_vm0, %v2026_v0  ;;  %p557_p8 = scmp.ge.s32.totalorder (!%p351_p3), %s430_s8, 0  ;;  %s2027_s10 = smov (!%p351_p3), 18  }
   0xc   : > { %509 = vst.msk [vmem:[#allocation2 + $0x18] sm:$0x3f] (!%p351_p3), %vm505_vm0, %v2026_v0  ;;  %510 = vst.msk [vmem:[#allocation2 + $0x20] sm:$0x3f] (!%p351_p3), %vm505_vm0, %v2026_v0  ;;  %s2028_s11 = smov (!%p351_p3), 2   ;;  %p558_p10 = scmp.lt.s32.totalorder (!%p351_p3), %s430_s8, 4 }
   0xd   : > { %511 = vst.msk [vmem:[#allocation2 + $0x28] sm:$0x3f] (!%p351_p3), %vm505_vm0, %v2026_v0  ;;  %513 = vst.msk [vmem:[#allocation2 + $0x38] sm:$0x3f] (!%p351_p3), %vm505_vm0, %v2026_v0  ;;  %s2029_s13 = smov (!%p351_p3), 20   ;;  %s2030_s14 = smov (!%p351_p3), 4  }
   0xe   : > { %514 = vst.msk [vmem:[#allocation2 + $0x40] sm:$0x3f] (!%p351_p3), %vm505_vm0, %v2026_v0  ;;  %515 = vst.msk [vmem:[#allocation2 + $0x48] sm:$0x3f] (!%p351_p3), %vm505_vm0, %v2026_v0  ;;  %p2179_p11 = pnand (!%p351_p3), %p558_p10, %p557_p8  ;;  %v2191_v6 = vld [vmem:[%s2611_s3] ss:$0 sm:$0xff] (!%p351_p3) }
   0xf   : > { %516 = vst.msk [vmem:[#allocation2 + $0x50] sm:$0x3f] (!%p351_p3), %vm505_vm0, %v2026_v0  ;;  %517 = vst.msk [vmem:[#allocation2 + $0x58] sm:$0x3f] (!%p351_p3), %vm505_vm0, %v2026_v0  ;;  %p449_p12 = scmp.lt.s32.totalorder (!%p351_p3), %s2008_s24, 3  ;;  %p1792_p13 = scmp.gt.s32.totalorder (!%p351_p3), %s2008_s24, 0 }
  0x10   : > { %518 = vst.msk [vmem:[#allocation2 + $0x60] sm:$0x3f] %vm505_vm0, %v2026_v0  ;;  %519 = vst.msk [vmem:[#allocation2 + $0x68] sm:$0x3f] %vm505_vm0, %v2026_v0  ;;  %s432_s9 = scalar_select %p431_p6, %s430_s8, 3  ;;  %vm700_vm6 = vcmask 44064  }
  0x11   : > { %520 = vst.msk [vmem:[#allocation2 + $0x70] sm:$0x3f] %vm505_vm0, %v2026_v0  ;;  %521 = vst.msk [vmem:[#allocation2 + $0x78] sm:$0x3f] %vm505_vm0, %v2026_v0  ;;  %s2674_s25 = smov (!%p435_p5, %s2012_s25), 1  ;;  %p594_p0 = scmp.ge.s32.totalorder %s2008_s24, 0 }
  0x12   : > { %522 = vst.msk [vmem:[#allocation2 + $0x80] sm:$0x3f] %vm505_vm0, %v2026_v0  ;;  %523 = vst.msk [vmem:[#allocation2 + $0x88] sm:$0x3f] %vm505_vm0, %v2026_v0  ;;  %s2676_s9 = smov (!%p1784_p7, %s432_s9), 0  ;;  %s2174_s12 = sshll.u32 %s2674_s25, 4 }
  0x13   : > { %v857_v1 = vld [vmem:[#allocation2 + $0x30] sm:$0xf]  ;;  %v655_v2 = vld [vmem:[#allocation2 + $0x1] sm:$0xf]  ;;  %p437_p9 = scmp.lt.s32.totalorder %s2676_s9, 3  ;;  %p595_p1 = scmp.lt.s32.totalorder %s2008_s24, 4 }
  0x14   : > { %865 = vrot.lane.b32.xlu1 %v857_v1, %s2027_s10  ;;  %663 = vrot.lane.b32.xlu0 %v655_v2, %s2028_s11  ;;  %v882_v3 = vld [vmem:[#allocation2 + $0x31] sm:$0xf]  ;;  %v680_v4 = vld [vmem:[#allocation2 + $0x2] sm:$0xf]  ;;  %s1815_s8 = scalar_select %p2179_p11, 0, 1 }
  0x15   : > { %s2678_s9 = smov (!%p437_p9, %s2676_s9), 3  ;;  %v647_v5 = vld [vmem:[#allocation2] sm:$0xf]  ;;  %p2214_p2 = pnand %p595_p1, %p594_p0  ;;  %vm725_vm7 = vcmask 60464   ;;  %vm1350_vm8 = vcmask 1042432   ;;  %vm750_vm9 = vcmask 76864  }
  0x16   : > { %s1789_s15 = sshll.u32 %s2678_s9, 2  ;;  %651 = vst.msk [vmem:[#allocation3] sm:$0xf] %vm2628_vm1, %v647_v5  ;;  %v2202_v13 = vld [vmem:[%s2612_s4] ss:$0 sm:$0xff]  ;;  %v562_v17 = vstv %s1815_s8  ;;  %s2034_s23 = smov 12  }
  0x17   : > { %s441_s17 = sadd.s32 %s2174_s12, %s1789_s15  ;;  %vm563_vm2 = vcmp.eq.s32.totalorder %v562_v17, 1  ;;  %vm775_vm10 = vcmask 93264   ;;  %vm2629_vm11 = vmmov 0   ;;  %vm801_vm12 = vcmask 109664  }
  0x18   : > { %890 = vrot.lane.b32.xlu1 %v882_v3, %s2029_s13  ;;  %688 = vrot.lane.b32.xlu0 %v680_v4, %s2030_s14  ;;  %s1791_s18 = sshll.u32 %s441_s17, 1  ;;  %s2235_s17 = sadd.s32 1, %s2008_s24  ;;  %vm826_vm13 = vcmask 126064   ;;  %vm851_vm14 = vcmask 142464   ;;  %vm877_vm15 = vcmask 158864   ;;  %vm902_vm0 = vcmask 175264  }
  0x19   : > { %s443_s21 = scalar_lea.vmem %s2608_s0, %s1791_s18  ;;  %p467_p4 = scmp.lt.s32.totalorder %s2235_s17, 3  ;;  %1874 = vmatprep.mubr.msk.bf16.mxu0 %vm2629_vm11, %v2026_v0  ;;  %1886 = vmatprep.mubr.msk.bf16.mxu1 %vm2629_vm11, %v2026_v0  ;;  %vm1053_vm11 = vcmask 273664  }
  0x1a   : > { %v525_v7 = vld [vmem:[%s443_s21] sm:$0x3]  ;;  %v526_v8 = vld [vmem:[%s443_s21 + $0x2] sm:$0x3]  ;;  %v527_v11 = vld [vmem:[%s443_s21 + $0x4] sm:$0x3] }
  0x1b   : > { %v529_v9 = vunpack.c.l.bf16 %v525_v7  ;;  %v530_v10 = vunpack.c.l.bf16 %v526_v8  ;;  %s2197_s9 = scalar_select %p449_p12, %s2008_s24, 3  ;;  %v528_v12 = vld [vmem:[%s443_s21 + $0x6] sm:$0x3]  ;;  %v531_v14 = vunpack.c.l.bf16 %v527_v11 }
  0x1c   : > { %v532_v15 = vunpack.c.l.bf16 %v528_v12  ;;  %s1816_s19 = scalar_select %p2214_p2, 0, 1 }
  0x1d   : > { %v539_v16 = vmul.f32 %v2191_v6, %v529_v9  ;;  %v540_v18 = vmul.f32 %v2191_v6, %v530_v10  ;;  %v541_v19 = vmul.f32 %v2191_v6, %v531_v14  ;;  %s1843_s16 = scalar_select %p1792_p13, %s2197_s9, 0 }
  0x1e   : > { %v542_v20 = vmul.f32 %v2191_v6, %v532_v15  ;;  %v599_v42 = vstv %s1816_s19  ;;  %p1800_p5 = scmp.gt.s32.totalorder %s2235_s17, 0  ;;  %s2031_s24 = smov 6  }
  0x1f   : > { %v549_v21 = vadd.f32 %v2202_v13, %v539_v16  ;;  %v550_v22 = vadd.f32 %v2202_v13, %v540_v18  ;;  %v551_v23 = vadd.f32 %v2202_v13, %v541_v19  ;;  %p455_p3 = scmp.lt.s32.totalorder %s1843_s16, 3  ;;  %vm600_vm3 = vcmp.eq.s32.totalorder %v599_v42, 1  ;;  %s2032_s18 = smov 8  }
  0x20   : > { %v552_v24 = vadd.f32 %v2202_v13, %v542_v20  ;;  %p631_p7 = scmp.ge.s32.totalorder %s2235_s17, 0  ;;  %p632_p8 = scmp.lt.s32.totalorder %s2235_s17, 4 }
  0x21   : > { %v553_v25 = vmax.f32 %v549_v21, 0.0  ;;  %v554_v26 = vmax.f32 %v550_v22, 0.0  ;;  %v555_v27 = vmax.f32 %v551_v23, 0.0  ;;  %s2680_s16 = smov (!%p455_p3, %s1843_s16), 3  ;;  %s2616_s19 = smov 10  }
  0x22   : > { %v556_v28 = vmax.f32 %v552_v24, 0.0  ;;  %s1797_s20 = sshll.u32 %s2680_s16, 2  ;;  %p2269_p9 = pnand %p632_p8, %p631_p7  ;;  %v907_v23 = vld [vmem:[#allocation2 + $0x32] sm:$0xf] }
  0x23   : > { %v564_v29 = vsel %vm563_vm2, %v553_v25, 0.0  ;;  %v565_v30 = vsel %vm563_vm2, %v554_v26, 0.0  ;;  %v566_v31 = vsel %vm563_vm2, %v555_v27, 0.0  ;;  %s459_s21 = sadd.s32 %s1797_s20, %s2174_s12 }
  0x24   : > { %570 = vst.msk [vmem:[#allocation2 + $0x9] sm:$0xf] %vm2628_vm1, %v564_v29  ;;  %571 = vst.msk [vmem:[#allocation2 + $0x11] sm:$0xf] %vm2628_vm1, %v565_v30  ;;  %v567_v32 = vsel %vm563_vm2, %v556_v28, 0.0  ;;  %s1799_s22 = sshll.u32 %s459_s21, 1 }
  0x25   : > { %572 = vst.msk [vmem:[#allocation2 + $0x19] sm:$0xf] %vm2628_vm1, %v566_v31  ;;  %573 = vst.msk [vmem:[#allocation2 + $0x21] sm:$0xf] %vm2628_vm1, %v567_v32  ;;  %s461_s15 = scalar_lea.vmem %s2609_s1, %s1799_s22  ;;  %s2036_s21 = smov 16   ;;  %vm927_vm2 = vcmask 191664  }
  0x26   : > { %v574_v33 = vld [vmem:[%s461_s15] sm:$0x3]  ;;  %v575_v34 = vld [vmem:[%s461_s15 + $0x2] sm:$0x3]  ;;  %v576_v35 = vld [vmem:[%s461_s15 + $0x4] sm:$0x3] }
  0x27   : > { %v578_v36 = vunpack.c.l.bf16 %v574_v33  ;;  %v579_v37 = vunpack.c.l.bf16 %v575_v34  ;;  %v580_v38 = vunpack.c.l.bf16 %v576_v35  ;;  %v577_v45 = vld [vmem:[%s461_s15 + $0x6] sm:$0x3]  ;;  %s468_s16 = scalar_select %p467_p4, %s2235_s17, 3 }
  0x28   : > { %v581_v53 = vunpack.c.l.bf16 %v577_v45  ;;  %s1817_s8 = scalar_select %p2269_p9, 0, 1 }
  0x29   : > { %v582_v41 = vmul.f32 %v2191_v6, %v578_v36  ;;  %v583_v43 = vmul.f32 %v2191_v6, %v579_v37  ;;  %v584_v44 = vmul.f32 %v2191_v6, %v580_v38  ;;  %s2682_s16 = smov (!%p1800_p5, %s468_s16), 0  ;;  %s2620_s17 = smov 28  }
  0x2a   : > { %v585_v60 = vmul.f32 %v2191_v6, %v581_v53  ;;  %p473_p6 = scmp.lt.s32.totalorder %s2682_s16, 3  ;;  %v636_v19 = vstv %s1817_s8  ;;  %s2038_s8 = smov 24  }
  0x2b   : > { %v681_v39 = vld [vmem:[#allocation2 + $0xa] sm:$0xf]  ;;  %v706_v46 = vld [vmem:[#allocation2 + $0x10] sm:$0xf]  ;;  %v586_v48 = vadd.f32 %v2202_v13, %v582_v41  ;;  %v587_v49 = vadd.f32 %v2202_v13, %v583_v43  ;;  %v588_v50 = vadd.f32 %v2202_v13, %v584_v44  ;;  %vm637_vm4 = vcmp.eq.s32.totalorder %v636_v19, 1 }
  0x2c   : > { %v656_v40 = vld [vmem:[#allocation2 + $0x9] sm:$0xf]  ;;  %690 = vrot.lane.b32.xlu0 %v681_v39, %s2030_s14  ;;  %v731_v55 = vld [vmem:[#allocation2 + $0x11] sm:$0xf]  ;;  %s2684_s16 = smov (!%p473_p6, %s2682_s16), 3  ;;  %v589_v1 = vadd.f32 %v2202_v13, %v585_v60 }
  0x2d   : > { %665 = vrot.lane.b32.xlu1 %v656_v40, %s2028_s11  ;;  %v705_v47 = vld [vmem:[#allocation2 + $0x8] sm:$0xf]  ;;  %v590_v51 = vmax.f32 %v586_v48, 0.0  ;;  %v591_v52 = vmax.f32 %v587_v49, 0.0  ;;  %v592_v54 = vmax.f32 %v588_v50, 0.0  ;;  %s1805_s20 = sshll.u32 %s2684_s16, 2 }
  0x2e   : > { %v730_v56 = vld [vmem:[#allocation2 + $0x9] sm:$0xf]  ;;  %v756_v61 = vld [vmem:[#allocation2 + $0x12] sm:$0xf]  ;;  %v782_v2 = vld [vmem:[#allocation2 + $0x18] sm:$0xf]  ;;  %s477_s22 = sadd.s32 %s1805_s20, %s2174_s12 }
  0x2f   : > { %v601_v57 = vsel %vm600_vm3, %v590_v51, 0.0  ;;  %v602_v58 = vsel %vm600_vm3, %v591_v52, 0.0  ;;  %v603_v59 = vsel %vm600_vm3, %v592_v54, 0.0  ;;  %v755_v62 = vld [vmem:[#allocation2 + $0xa] sm:$0xf]  ;;  %v593_v4 = vmax.f32 %v589_v1, 0.0 }
  0x30   : > { %715 = vrot.lane.b32.xlu0 %v706_v46, %s2031_s24  ;;  %606 = vst.msk [vmem:[#allocation2 + $0x39] sm:$0xf] %vm2628_vm1, %v601_v57  ;;  %607 = vst.msk [vmem:[#allocation2 + $0x41] sm:$0xf] %vm2628_vm1, %v602_v58  ;;  %v648_v63 = vld [vmem:[#allocation2 + $0x8] sm:$0xf] }
  0x31   : > { %713 = vrot.lane.b32.xlu1 %v705_v47, %s2031_s24  ;;  %608 = vst.msk [vmem:[#allocation2 + $0x49] sm:$0xf] %vm2628_vm1, %v603_v59  ;;  %652 = vst.msk [vmem:[#allocation3 + $0x4] sm:$0xf] %vm2628_vm1, %v648_v63  ;;  %v781_v3 = vld [vmem:[#allocation2 + $0x10] sm:$0xf] }
  0x32   : > { %v807_v5 = vld [vmem:[#allocation2 + $0x19] sm:$0xf]  ;;  %v806_v7 = vld [vmem:[#allocation2 + $0x11] sm:$0xf]  ;;  %s1807_s15 = sshll.u32 %s477_s22, 1  ;;  %v604_v8 = vsel %vm600_vm3, %v593_v4, 0.0 }
  0x33   : > { %s2035_s20 = smov 14   ;;  %609 = vst.msk [vmem:[#allocation2 + $0x51] sm:$0xf] %vm2628_vm1, %v604_v8  ;;  %v832_v11 = vld [vmem:[#allocation2 + $0x1a] sm:$0xf]  ;;  %s2037_s22 = smov 22  }
  0x34   : > { %740 = vrot.lane.b32.xlu0 %v731_v55, %s2032_s18  ;;  %v831_v12 = vld [vmem:[#allocation2 + $0x12] sm:$0xf]  ;;  %v650_v47 = vld [vmem:[#allocation2 + $0x18] sm:$0xf]  ;;  %s2622_s16 = smov 32   ;;  %vm952_vm3 = vcmask 208064  }
  0x35   : > { %738 = vrot.lane.b32.xlu1 %v730_v56, %s2032_s18  ;;  %v649_v35 = vld [vmem:[#allocation2 + $0x10] sm:$0xf]  ;;  %654 = vst.msk [vmem:[#allocation3 + $0xc] sm:$0xf] %vm2628_vm1, %v650_v47  ;;  %v658_v53 = vld [vmem:[#allocation2 + $0x19] sm:$0xf] }
  0x36   : > { %653 = vst.msk [vmem:[#allocation3 + $0x8] sm:$0xf] %vm2628_vm1, %v649_v35  ;;  %v657_v48 = vld [vmem:[#allocation2 + $0x11] sm:$0xf]  ;;  %v707_v54 = vld [vmem:[#allocation2 + $0x18] sm:$0xf] }
  0x37   : > { %v858_v22 = vld [vmem:[#allocation2 + $0x38] sm:$0xf]  ;;  %v933_v40 = vld [vmem:[#allocation2 + $0x40] sm:$0xf]  ;;  %v682_v50 = vld [vmem:[#allocation2 + $0x12] sm:$0xf] }
  0x38   : > { %765 = vrot.lane.b32.xlu0 %v756_v61, %s2616_s19  ;;  %v883_v30 = vld [vmem:[#allocation2 + $0x39] sm:$0xf]  ;;  %v958_v44 = vld [vmem:[#allocation2 + $0x41] sm:$0xf]  ;;  %v1009_v51 = vld [vmem:[#allocation2 + $0x48] sm:$0xf] }
  0x39   : > { %763 = vrot.lane.b32.xlu1 %v755_v62, %s2616_s19  ;;  %s2281_s19 = scalar_lea.vmem %s2610_s2, %s1807_s15  ;;  %v932_v31 = vld [vmem:[#allocation2 + $0x38] sm:$0xf]  ;;  %s2618_s15 = smov 26   ;;  %v1008_v45 = vld [vmem:[#allocation2 + $0x40] sm:$0xf] }
  0x3a   : > { %v611_v9 = vld [vmem:[%s2281_s19] sm:$0x3]  ;;  %v612_v10 = vld [vmem:[%s2281_s19 + $0x2] sm:$0x3]  ;;  %v613_v16 = vld [vmem:[%s2281_s19 + $0x4] sm:$0x3] }
  0x3b   : > { %v615_v14 = vunpack.c.l.bf16 %v611_v9  ;;  %v616_v15 = vunpack.c.l.bf16 %v612_v10  ;;  %v617_v17 = vunpack.c.l.bf16 %v613_v16  ;;  %v908_v36 = vld [vmem:[#allocation2 + $0x3a] sm:$0xf]  ;;  %v614_v38 = vld [vmem:[%s2281_s19 + $0x6] sm:$0x3]  ;;  %s2041_s19 = smov 30  }
  0x3c   : > { %791 = vrot.lane.b32.xlu0 %v782_v2, %s2034_s23  ;;  %v957_v37 = vld [vmem:[#allocation2 + $0x39] sm:$0xf]  ;;  %v618_v39 = vunpack.c.l.bf16 %v614_v38  ;;  %v983_v49 = vld [vmem:[#allocation2 + $0x42] sm:$0xf]  ;;  %v1034_v55 = vld [vmem:[#allocation2 + $0x49] sm:$0xf] }
  0x3d   : > { %789 = vrot.lane.b32.xlu1 %v781_v3, %s2034_s23  ;;  %v619_v18 = vmul.f32 %v2191_v6, %v615_v14  ;;  %v620_v20 = vmul.f32 %v2191_v6, %v616_v15  ;;  %v621_v21 = vmul.f32 %v2191_v6, %v617_v17  ;;  %v982_v41 = vld [vmem:[#allocation2 + $0x3a] sm:$0xf]  ;;  %v1058_v52 = vld [vmem:[#allocation2 + $0x42] sm:$0xf]  ;;  %v1059_v59 = vld [vmem:[#allocation2 + $0x4a] sm:$0xf] }
  0x3e   : > { %v622_v42 = vmul.f32 %v2191_v6, %v618_v39  ;;  %v1084_v56 = vld [vmem:[#allocation2 + $0x60] sm:$0xf]  ;;  %v683_v57 = vld [vmem:[#allocation2 + $0x1a] sm:$0xf]  ;;  %v784_v14 = vld [vmem:[#allocation2 + $0x28] sm:$0xf] }
  0x3f   : > { %v623_v24 = vadd.f32 %v2202_v13, %v619_v18  ;;  %v624_v25 = vadd.f32 %v2202_v13, %v620_v20  ;;  %v625_v26 = vadd.f32 %v2202_v13, %v621_v21  ;;  %v732_v58 = vld [vmem:[#allocation2 + $0x19] sm:$0xf]  ;;  %v1109_v60 = vld [vmem:[#allocation2 + $0x61] sm:$0xf]  ;;  %v809_v19 = vld [vmem:[#allocation2 + $0x29] sm:$0xf] }
  0x40   : > { %816 = vrot.lane.b32.xlu0 %v807_v5, %s2035_s20  ;;  %v626_v43 = vadd.f32 %v2202_v13, %v622_v42  ;;  %v1033_v13 = vld [vmem:[#allocation2 + $0x41] sm:$0xf]  ;;  %v757_v62 = vld [vmem:[#allocation2 + $0x1a] sm:$0xf] }
  0x41   : > { %814 = vrot.lane.b32.xlu1 %v806_v7, %s2035_s20  ;;  %v627_v27 = vmax.f32 %v623_v24, 0.0  ;;  %v628_v28 = vmax.f32 %v624_v25, 0.0  ;;  %v629_v29 = vmax.f32 %v625_v26, 0.0  ;;  %v708_v61 = vld [vmem:[#allocation2 + $0x20] sm:$0xf]  ;;  %v2371_v25 = vld [vmem:[%s2613_s5 + $0x8] sm:$0xff]  }
  0x42   : > { %v630_v46 = vmax.f32 %v626_v43, 0.0  ;;  %v1134_v1 = vld [vmem:[#allocation2 + $0x62] sm:$0xf]  ;;  %v834_v26 = vld [vmem:[#allocation2 + $0x2a] sm:$0xf] }
  0x43   : > { %v638_v32 = vsel %vm637_vm4, %v627_v27, 0.0  ;;  %v639_v33 = vsel %vm637_vm4, %v628_v28, 0.0  ;;  %v640_v34 = vsel %vm637_vm4, %v629_v29, 0.0  ;;  %v733_v2 = vld [vmem:[#allocation2 + $0x21] sm:$0xf] }
  0x44   : > { %841 = vrot.lane.b32.xlu0 %v832_v11, %s2036_s21  ;;  %643 = vst.msk [vmem:[#allocation2 + $0x69] sm:$0xf] %vm2628_vm1, %v638_v32  ;;  %644 = vst.msk [vmem:[#allocation2 + $0x71] sm:$0xf] %vm2628_vm1, %v639_v33  ;;  %v641_v6 = vsel %vm637_vm4, %v630_v46, 0.0  ;;  %v2358_v21 = vld [vmem:[%s2613_s5] sm:$0xff]  }
  0x45   : > { %839 = vrot.lane.b32.xlu1 %v831_v12, %s2036_s21  ;;  %645 = vst.msk [vmem:[#allocation2 + $0x79] sm:$0xf] %vm2628_vm1, %v640_v34  ;;  %646 = vst.msk [vmem:[#allocation2 + $0x81] sm:$0xf] %vm2628_vm1, %v641_v6  ;;  %v783_v3 = vld [vmem:[#allocation2 + $0x20] sm:$0xf]  ;;  %1867 = vmatpush3.bf16.msra.mxu0 %v2358_v21 }
  0x46   : > { %v758_v8 = vld [vmem:[#allocation2 + $0x22] sm:$0xf]  ;;  %1879 = vmatpush3.bf16.msra.mxu1 %v2358_v21  ;;  %1868 = vmatprep.subr.bf16.mxu0 %v2026_v0  ;;  %v1985_v35 = vld [vmem:[%s2613_s5 + $0x18] ss:$0 sps:$4 sm:$0x77]   ;;  %vm2631_vm4 = vcmask 224464  }
  0x47   : > { %v808_v9 = vld [vmem:[#allocation2 + $0x21] sm:$0xf]  ;;  %1880 = vmatprep.subr.bf16.mxu1 %v2026_v0  ;;  %v2399_v38 = vsel %vm1350_vm8, %v1985_v35, 0  ;;  %v934_v46 = vld [vmem:[#allocation2 + $0x48] sm:$0xf]  ;;  %vm2632_vm8 = vcmask 240864  }
  0x48   : > { %867 = vrot.lane.b32.xlu0 %v858_v22, %s2027_s10  ;;  %v833_v15 = vld [vmem:[#allocation2 + $0x22] sm:$0xf]  ;;  %v910_v6 = vld [vmem:[#allocation2 + $0x4a] sm:$0xf]  ;;  %vm1028_vm1 = vcmask 257264  }
  0x49   : > { %915 = vrot.lane.b32.xlu1 %v907_v23, %s2037_s22  ;;  %v859_v20 = vld [vmem:[#allocation2 + $0x40] sm:$0xf]  ;;  %1869 = vmatpush3.bf16.msra.mxu0 %v2371_v25 }
  0x4a   : > { %v884_v27 = vld [vmem:[#allocation2 + $0x41] sm:$0xf]  ;;  %1881 = vmatpush3.bf16.msra.mxu1 %v2371_v25  ;;  %1870 = vmatprep.subr.bf16.mxu0 %v2026_v0 }
  0x4b   : > { %v1085_v63 = vld [vmem:[#allocation2 + $0x68] sm:$0xf]  ;;  %v1160_v16 = vld [vmem:[#allocation2 + $0x70] sm:$0xf]  ;;  %1882 = vmatprep.subr.bf16.mxu1 %v2026_v0 }
  0x4c   : > { %892 = vrot.lane.b32.xlu0 %v883_v30, %s2029_s13  ;;  %v1110_v4 = vld [vmem:[#allocation2 + $0x69] sm:$0xf]  ;;  %v1185_v23 = vld [vmem:[#allocation2 + $0x71] sm:$0xf] }
  0x4d   : > { %940 = vrot.lane.b32.xlu1 %v932_v31, %s2038_s8  ;;  %v1159_v5 = vld [vmem:[#allocation2 + $0x68] sm:$0xf]  ;;  %v1235_v24 = vld [vmem:[#allocation2 + $0x70] sm:$0xf] }
  0x4e   : > { %v1135_v11 = vld [vmem:[#allocation2 + $0x6a] sm:$0xf]  ;;  %v2383_v30 = vld [vmem:[%s2613_s5 + $0x10] sm:$0xff]  }
  0x4f   : > { %v1184_v12 = vld [vmem:[#allocation2 + $0x69] sm:$0xf]  ;;  %v1210_v31 = vld [vmem:[#allocation2 + $0x72] sm:$0xf]  ;;  %1871 = vmatpush3.bf16.msra.mxu0 %v2383_v30  ;;  %1883 = vmatpush3.bf16.msra.mxu1 %v2383_v30 }
  0x50   : > { %917 = vrot.lane.b32.xlu0 %v908_v36, %s2037_s22  ;;  %v1209_v17 = vld [vmem:[#allocation2 + $0x6a] sm:$0xf]  ;;  %v1260_v32 = vld [vmem:[#allocation2 + $0x71] sm:$0xf]  ;;  %1872 = vmatprep.subr.bf16.mxu0 %v2026_v0 }
  0x51   : > { %965 = vrot.lane.b32.xlu1 %v957_v37, %s2618_s15  ;;  %1884 = vmatprep.subr.bf16.mxu1 %v2026_v0  ;;  %v860_v36 = vld [vmem:[#allocation2 + $0x48] sm:$0xf]  ;;  %v909_v37 = vld [vmem:[#allocation2 + $0x42] sm:$0xf]  ;;  %v1285_v42 = vld [vmem:[#allocation2 + $0x72] sm:$0xf] }
  0x53   : > { %1873 = vmatpush3.bf16.msra.mxu0 %v2399_v38  ;;  %1885 = vmatpush3.bf16.msra.mxu1 %v2399_v38 }
  0x54   : > { %942 = vrot.lane.b32.xlu0 %v933_v40, %s2038_s8  ;;  %1890 = vmatprep.subr.bf16.mxu0 %v2026_v0 }
  0x55   : > { %990 = vrot.lane.b32.xlu1 %v982_v41, %s2620_s17  ;;  %1902 = vmatprep.subr.bf16.mxu1 %v2026_v0  ;;  %v1236_v41 = vld [vmem:[#allocation2 + $0x78] sm:$0xf] }
  0x58   : > { %967 = vrot.lane.b32.xlu0 %v958_v44, %s2618_s15  ;;  %s2043_s15 = smov 34  }
  0x59   : > { %1016 = vrot.lane.b32.xlu1 %v1008_v45, %s2041_s19  ;;  %v885_v45 = vld [vmem:[#allocation2 + $0x49] sm:$0xf] }
  0x5c   : > { %667 = vrot.lane.b32.xlu0 %v657_v48, %s2028_s11 }
  0x5d   : > { %992 = vrot.lane.b32.xlu1 %v983_v49, %s2620_s17  ;;  %s2044_s17 = smov 36   ;;  %v1261_v49 = vld [vmem:[#allocation2 + $0x79] sm:$0xf] }
  0x60   : > { %1041 = vrot.lane.b32.xlu0 %v1033_v13, %s2622_s16 }
  0x61   : > { %692 = vrot.lane.b32.xlu1 %v682_v50, %s2030_s14 }
  0x64   : > { %1018 = vrot.lane.b32.xlu0 %v1009_v51, %s2041_s19  ;;  %v959_v51 = vld [vmem:[#allocation2 + $0x49] sm:$0xf] }
  0x65   : > { %1066 = vrot.lane.b32.xlu1 %v1058_v52, %s2043_s15  ;;  %v1286_v52 = vld [vmem:[#allocation2 + $0x7a] sm:$0xf] }
  0x68   : > { %669 = vrot.lane.b32.xlu0 %v658_v53, %s2028_s11  ;;  %s2626_s11 = smov 38  }
  0x69   : > { %717 = vrot.lane.b32.xlu1 %v707_v54, %s2031_s24 }
  0x6c   : > { %1043 = vrot.lane.b32.xlu0 %v1034_v55, %s2622_s16  ;;  %s2637_s16 = smov 10   ;;  %v935_v55 = vld [vmem:[#allocation2 + $0x50] sm:$0xf] }
  0x6d   : > { %1092 = vrot.lane.b32.xlu1 %v1084_v56, %s2044_s17  ;;  %v984_v56 = vld [vmem:[#allocation2 + $0x4a] sm:$0xf] }
  0x70   : > { %694 = vrot.lane.b32.xlu0 %v683_v57, %s2030_s14  ;;  %s2624_s14 = smov 40  }
  0x71   : > { %742 = vrot.lane.b32.xlu1 %v732_v58, %s2032_s18 }
  0x74   : > { %1068 = vrot.lane.b32.xlu0 %v1059_v59, %s2043_s15  ;;  %v960_v59 = vld [vmem:[#allocation2 + $0x51] sm:$0xf] }
  0x75   : > { %1117 = vrot.lane.b32.xlu1 %v1109_v60, %s2626_s11  ;;  %v1010_v60 = vld [vmem:[#allocation2 + $0x50] sm:$0xf] }
  0x78   : > { %719 = vrot.lane.b32.xlu0 %v708_v61, %s2031_s24  ;;  %s2047_s24 = smov 42  }
  0x79   : > { %767 = vrot.lane.b32.xlu1 %v757_v62, %s2637_s16 }
  0x7c   : > { %1094 = vrot.lane.b32.xlu0 %v1085_v63, %s2044_s17  ;;  %v985_v63 = vld [vmem:[#allocation2 + $0x52] sm:$0xf] }
  0x7d   : > { %1142 = vrot.lane.b32.xlu1 %v1134_v1, %s2624_s14  ;;  %v1035_v1 = vld [vmem:[#allocation2 + $0x51] sm:$0xf] }
  0x80   : > { %744 = vrot.lane.b32.xlu0 %v733_v2, %s2032_s18  ;;  %s2048_s18 = smov 44  }
  0x81   : > { %793 = vrot.lane.b32.xlu1 %v783_v3, %s2034_s23 }
  0x84   : > { %1119 = vrot.lane.b32.xlu0 %v1110_v4, %s2626_s11  ;;  %v1011_v4 = vld [vmem:[#allocation2 + $0x58] sm:$0xf] }
  0x85   : > { %1167 = vrot.lane.b32.xlu1 %v1159_v5, %s2047_s24  ;;  %v1060_v5 = vld [vmem:[#allocation2 + $0x52] sm:$0xf] }
  0x86   : > { %v664_v7 = vpop.permute.xlu0 %663  ;;  %v2351_v18 = vpop.permute.xlu1 %865 }
  0x87   : > { %676 = vst.msk [vmem:[#allocation3] sm:$0xf] %vm675_vm5, %v664_v7 }
  0x88   : > { %769 = vrot.lane.b32.xlu0 %v758_v8, %s2637_s16  ;;  %s2049_s16 = smov 46  }
  0x89   : > { %818 = vrot.lane.b32.xlu1 %v808_v9, %s2035_s20  ;;  %v1036_v9 = vld [vmem:[#allocation2 + $0x59] sm:$0xf] }
  0x8a   : > { %v689_v10 = vpop.permute.xlu0 %688  ;;  %v2362_v22 = vpop.permute.xlu1 %890 }
  0x8b   : > { %701 = vst.msk [vmem:[#allocation3] sm:$0xf] %vm700_vm6, %v689_v10  ;;  %v1086_v10 = vld [vmem:[#allocation2 + $0x70] sm:$0xf] }
  0x8c   : > { %1144 = vrot.lane.b32.xlu0 %v1135_v11, %s2624_s14  ;;  %s2051_s14 = smov 50  }
  0x8d   : > { %1192 = vrot.lane.b32.xlu1 %v1184_v12, %s2048_s18 }
  0x90   : > { %795 = vrot.lane.b32.xlu0 %v784_v14, %s2034_s23  ;;  %v1061_v14 = vld [vmem:[#allocation2 + $0x5a] sm:$0xf]  ;;  %s2642_s23 = smov 40  }
  0x91   : > { %843 = vrot.lane.b32.xlu1 %v833_v15, %s2036_s21  ;;  %v1111_v15 = vld [vmem:[#allocation2 + $0x71] sm:$0xf] }
  0x94   : > { %1169 = vrot.lane.b32.xlu0 %v1160_v16, %s2047_s24 }
  0x95   : > { %1217 = vrot.lane.b32.xlu1 %v1209_v17, %s2049_s16 }
  0x98   : > { %820 = vrot.lane.b32.xlu0 %v809_v19, %s2035_s20  ;;  %s2050_s20 = smov 48   ;;  %v1136_v19 = vld [vmem:[#allocation2 + $0x72] sm:$0xf] }
  0x99   : > { %869 = vrot.lane.b32.xlu1 %v859_v20, %s2027_s10 }
  0x9c   : > { %1194 = vrot.lane.b32.xlu0 %v1185_v23, %s2048_s18  ;;  %v1112_v23 = vld [vmem:[#allocation2 + $0x79] sm:$0xf] }
  0x9d   : > { %1243 = vrot.lane.b32.xlu1 %v1235_v24, %s2050_s20  ;;  %v1161_v24 = vld [vmem:[#allocation2 + $0x78] sm:$0xf] }
  0x9e   : > { %v691_v28 = vpop.permute.xlu0 %690 }
  0x9f   : > { %v666_v29 = vpop.permute.xlu1 %665 }
  0xa0   : > { %677 = vst.msk [vmem:[#allocation3 + $0x4] sm:$0xf] %vm675_vm5, %v666_v29  ;;  %845 = vrot.lane.b32.xlu0 %v834_v26, %s2036_s21  ;;  %v1186_v29 = vld [vmem:[#allocation2 + $0x79] sm:$0xf] }
  0xa1   : > { %702 = vst.msk [vmem:[#allocation3 + $0x4] sm:$0xf] %vm700_vm6, %v691_v28  ;;  %894 = vrot.lane.b32.xlu1 %v884_v27, %s2029_s13  ;;  %v1137_v28 = vld [vmem:[#allocation2 + $0x7a] sm:$0xf] }
  0xa2   : > { %v716_v33 = vpop.permute.xlu0 %715 }
  0xa3   : > { %v714_v34 = vpop.permute.xlu1 %713  ;;  %727 = vst.msk [vmem:[#allocation3 + $0x4] sm:$0xf] %vm725_vm7, %v716_v33  ;;  %v1162_v33 = vld [vmem:[#allocation2 + $0x80] sm:$0xf] }
  0xa4   : > { %726 = vst.msk [vmem:[#allocation3] sm:$0xf] %vm725_vm7, %v714_v34  ;;  %1219 = vrot.lane.b32.xlu0 %v1210_v31, %s2049_s16  ;;  %v1211_v34 = vld [vmem:[#allocation2 + $0x7a] sm:$0xf] }
  0xa5   : > { %1268 = vrot.lane.b32.xlu1 %v1260_v32, %s2051_s14 }
  0xa6   : > { %v741_v39 = vpop.permute.xlu0 %740 }
  0xa7   : > { %v739_v40 = vpop.permute.xlu1 %738  ;;  %752 = vst.msk [vmem:[#allocation3 + $0x4] sm:$0xf] %vm750_vm9, %v741_v39  ;;  %v1237_v39 = vld [vmem:[#allocation2 + $0x80] sm:$0xf] }
  0xa8   : > { %751 = vst.msk [vmem:[#allocation3] sm:$0xf] %vm750_vm9, %v739_v40  ;;  %871 = vrot.lane.b32.xlu0 %v860_v36, %s2027_s10  ;;  %s2053_s10 = smov 52  }
  0xa9   : > { %919 = vrot.lane.b32.xlu1 %v909_v37, %s2037_s22  ;;  %v1187_v37 = vld [vmem:[#allocation2 + $0x81] sm:$0xf] }
  0xaa   : > { %v766_v43 = vpop.permute.xlu0 %765 }
  0xab   : > { %v764_v44 = vpop.permute.xlu1 %763  ;;  %777 = vst.msk [vmem:[#allocation3 + $0x4] sm:$0xf] %vm775_vm10, %v766_v43  ;;  %v1262_v43 = vld [vmem:[#allocation2 + $0x81] sm:$0xf] }
  0xac   : > { %776 = vst.msk [vmem:[#allocation3] sm:$0xf] %vm775_vm10, %v764_v44  ;;  %1245 = vrot.lane.b32.xlu0 %v1236_v41, %s2050_s20 }
  0xad   : > { %1293 = vrot.lane.b32.xlu1 %v1285_v42, %s2053_s10  ;;  %v1212_v42 = vld [vmem:[#allocation2 + $0x82] sm:$0xf] }
  0xae   : > { %v792_v47 = vpop.permute.xlu0 %791 }
  0xaf   : > { %v790_v48 = vpop.permute.xlu1 %789  ;;  %803 = vst.msk [vmem:[#allocation3 + $0x4] sm:$0xf] %vm801_vm12, %v792_v47  ;;  %v1287_v47 = vld [vmem:[#allocation2 + $0x82] sm:$0xf] }
  0xb0   : > { %802 = vst.msk [vmem:[#allocation3] sm:$0xf] %vm801_vm12, %v790_v48  ;;  %896 = vrot.lane.b32.xlu0 %v885_v45, %s2029_s13  ;;  %s2638_s13 = smov 26  }
  0xb1   : > { %944 = vrot.lane.b32.xlu1 %v934_v46, %s2038_s8  ;;  %v1238_v46 = vld [vmem:[#allocation2 + $0x88] sm:$0xf] }
  0xb2   : > { %v817_v13 = vpop.permute.xlu0 %816 }
  0xb3   : > { %v815_v50 = vpop.permute.xlu1 %814  ;;  %828 = vst.msk [vmem:[#allocation3 + $0x4] sm:$0xf] %vm826_vm13, %v817_v13  ;;  %v1288_v13 = vld [vmem:[#allocation2 + $0x8a] sm:$0xf] }
  0xb4   : > { %827 = vst.msk [vmem:[#allocation3] sm:$0xf] %vm826_vm13, %v815_v50  ;;  %1270 = vrot.lane.b32.xlu0 %v1261_v49, %s2051_s14 }
  0xb5   : > { %921 = vrot.lane.b32.xlu1 %v910_v6, %s2037_s22  ;;  %s2639_s22 = smov 28   ;;  %v1263_v6 = vld [vmem:[#allocation2 + $0x89] sm:$0xf] }
  0xb6   : > { %v842_v53 = vpop.permute.xlu0 %841 }
  0xb7   : > { %v840_v54 = vpop.permute.xlu1 %839  ;;  %853 = vst.msk [vmem:[#allocation3 + $0x4] sm:$0xf] %vm851_vm14, %v842_v53 }
  0xb8   : > { %852 = vst.msk [vmem:[#allocation3] sm:$0xf] %vm851_vm14, %v840_v54  ;;  %969 = vrot.lane.b32.xlu0 %v959_v51, %s2638_s13 }
  0xb9   : > { %878 = vst.msk [vmem:[#allocation3] sm:$0xf] %vm877_vm15, %v2351_v18  ;;  %1295 = vrot.lane.b32.xlu1 %v1286_v52, %s2053_s10  ;;  %v1087_v18 = vld [vmem:[#allocation2 + $0x78] sm:$0xf] }
  0xba   : > { %903 = vst.msk [vmem:[#allocation3] sm:$0xf] %vm902_vm0, %v2362_v22  ;;  %v868_v57 = vpop.permute.xlu0 %867 }
  0xbb   : > { %v916_v58 = vpop.permute.xlu1 %915  ;;  %879 = vst.msk [vmem:[#allocation3 + $0x4] sm:$0xf] %vm877_vm15, %v868_v57 }
  0xbc   : > { %928 = vst.msk [vmem:[#allocation3] sm:$0xf] %vm927_vm2, %v916_v58  ;;  %946 = vrot.lane.b32.xlu0 %v935_v55, %s2038_s8  ;;  %s2640_s8 = smov 32  }
  0xbd   : > { %994 = vrot.lane.b32.xlu1 %v984_v56, %s2639_s22 }
  0xbe   : > { %v893_v61 = vpop.permute.xlu0 %892 }
  0xbf   : > { %v941_v62 = vpop.permute.xlu1 %940  ;;  %904 = vst.msk [vmem:[#allocation3 + $0x4] sm:$0xf] %vm902_vm0, %v893_v61 }
  0xc0   : > { %953 = vst.msk [vmem:[#allocation3] sm:$0xf] %vm952_vm3, %v941_v62  ;;  %971 = vrot.lane.b32.xlu0 %v960_v59, %s2638_s13 }
  0xc1   : > { %1020 = vrot.lane.b32.xlu1 %v1010_v60, %s2041_s19 }
  0xc2   : > { %v918_v2 = vpop.permute.xlu0 %917 }
  0xc3   : > { %v966_v3 = vpop.permute.xlu1 %965  ;;  %929 = vst.msk [vmem:[#allocation3 + $0x4] sm:$0xf] %vm927_vm2, %v918_v2 }
  0xc4   : > { %978 = vst.msk [vmem:[#allocation3] sm:$0xf] %vm2631_vm4, %v966_v3  ;;  %996 = vrot.lane.b32.xlu0 %v985_v63, %s2639_s22 }
  0xc5   : > { %1045 = vrot.lane.b32.xlu1 %v1035_v1, %s2640_s8 }
  0xc6   : > { %v943_v7 = vpop.permute.xlu0 %942 }
  0xc7   : > { %v991_v8 = vpop.permute.xlu1 %990  ;;  %954 = vst.msk [vmem:[#allocation3 + $0x4] sm:$0xf] %vm952_vm3, %v943_v7 }
  0xc8   : > { %1003 = vst.msk [vmem:[#allocation3] sm:$0xf] %vm2632_vm8, %v991_v8  ;;  %1022 = vrot.lane.b32.xlu0 %v1011_v4, %s2041_s19  ;;  %s2641_s19 = smov 38  }
  0xc9   : > { %1070 = vrot.lane.b32.xlu1 %v1060_v5, %s2043_s15 }
  0xca   : > { %v968_v11 = vpop.permute.xlu0 %967 }
  0xcb   : > { %v1017_v12 = vpop.permute.xlu1 %1016  ;;  %979 = vst.msk [vmem:[#allocation3 + $0x4] sm:$0xf] %vm2631_vm4, %v968_v11  ;;  %vm1078_vm4 = vcmask 290064  }
  0xcc   : > { %1029 = vst.msk [vmem:[#allocation3] sm:$0xf] %vm1028_vm1, %v1017_v12  ;;  %1047 = vrot.lane.b32.xlu0 %v1036_v9, %s2640_s8 }
  0xcd   : > { %1096 = vrot.lane.b32.xlu1 %v1086_v10, %s2044_s17 }
  0xce   : > { %v668_v16 = vpop.permute.xlu0 %667 }
  0xcf   : > { %v993_v17 = vpop.permute.xlu1 %992  ;;  %678 = vst.msk [vmem:[#allocation3 + $0x8] sm:$0xf] %vm675_vm5, %v668_v16 }
  0xd0   : > { %1004 = vst.msk [vmem:[#allocation3 + $0x4] sm:$0xf] %vm2632_vm8, %v993_v17  ;;  %1072 = vrot.lane.b32.xlu0 %v1061_v14, %s2043_s15  ;;  %vm2633_vm8 = vcmask 306464   ;;  %s1808_s15 = sshll.u32 %s2197_s9, 2 }
  0xd1   : > { %1121 = vrot.lane.b32.xlu1 %v1111_v15, %s2641_s19 }
  0xd2   : > { %v1042_v20 = vpop.permute.xlu0 %1041 }
  0xd3   : > { %v693_v22 = vpop.permute.xlu1 %692  ;;  %1054 = vst.msk [vmem:[#allocation3] sm:$0xf] %vm1053_vm11, %v1042_v20 }
  0xd4   : > { %703 = vst.msk [vmem:[#allocation3 + $0x8] sm:$0xf] %vm700_vm6, %v693_v22  ;;  %1098 = vrot.lane.b32.xlu0 %v1087_v18, %s2044_s17  ;;  %s491_s17 = sadd.s32 %s1808_s15, %s2174_s12  ;;  %s1811_s12 = sshll.u32 %s2674_s25, 2 }
  0xd5   : > { %1146 = vrot.lane.b32.xlu1 %v1136_v19, %s2642_s23  ;;  %s499_s21 = sadd.s32 %s1811_s12, %s2197_s9 }
  0xd6   : > { %v1019_v26 = vpop.permute.xlu0 %1018  ;;  %s1812_s11 = sshll.u32 %s499_s21, 1 }
  0xd7   : > { %v1067_v27 = vpop.permute.xlu1 %1066  ;;  %1030 = vst.msk [vmem:[#allocation3 + $0x4] sm:$0xf] %vm1028_vm1, %v1019_v26  ;;  %s501_s13 = scalar_lea.vmem %s2615_s7, %s1812_s11 }
  0xd8   : > { %1079 = vst.msk [vmem:[#allocation3] sm:$0xf] %vm1078_vm4, %v1067_v27  ;;  %1123 = vrot.lane.b32.xlu0 %v1112_v23, %s2641_s19 }
  0xd9   : > { %1171 = vrot.lane.b32.xlu1 %v1161_v24, %s2047_s24 }
  0xda   : > { %v670_v31 = vpop.permute.xlu0 %669 }
  0xdb   : > { %v718_v32 = vpop.permute.xlu1 %717  ;;  %679 = vst.msk [vmem:[#allocation3 + $0xc] sm:$0xf] %vm675_vm5, %v670_v31  ;;  %vm1129_vm5 = vcmask 322864  }
  0xdc   : > { %728 = vst.msk [vmem:[#allocation3 + $0x8] sm:$0xf] %vm725_vm7, %v718_v32  ;;  %1148 = vrot.lane.b32.xlu0 %v1137_v28, %s2642_s23 }
  0xdd   : > { %1196 = vrot.lane.b32.xlu1 %v1186_v29, %s2048_s18 }
  0xde   : > { %v1044_v35 = vpop.permute.xlu0 %1043 }
  0xdf   : > { %v1093_v36 = vpop.permute.xlu1 %1092  ;;  %1055 = vst.msk [vmem:[#allocation3 + $0x4] sm:$0xf] %vm1053_vm11, %v1044_v35 }
  0xe0   : > { %1105 = vst.msk [vmem:[#allocation3] sm:$0xf] %vm2633_vm8, %v1093_v36  ;;  %1173 = vrot.lane.b32.xlu0 %v1162_v33, %s2047_s24  ;;  %s1810_s24 = sshll.u32 %s491_s17, 2 }
  0xe1   : > { %1221 = vrot.lane.b32.xlu1 %v1211_v34, %s2049_s16 }
  0xe2   : > { %v695_v40 = vpop.permute.xlu0 %694 }
  0xe3   : > { %v743_v41 = vpop.permute.xlu1 %742  ;;  %704 = vst.msk [vmem:[#allocation3 + $0xc] sm:$0xf] %vm700_vm6, %v695_v40  ;;  %vm1154_vm6 = vcmask 339264  }
  0xe4   : > { %753 = vst.msk [vmem:[#allocation3 + $0x8] sm:$0xf] %vm750_vm9, %v743_v41  ;;  %1198 = vrot.lane.b32.xlu0 %v1187_v37, %s2048_s18 }
  0xe5   : > { %1247 = vrot.lane.b32.xlu1 %v1237_v39, %s2050_s20 }
  0xe6   : > { %v1069_v44 = vpop.permute.xlu0 %1068 }
  0xe7   : > { %v1118_v45 = vpop.permute.xlu1 %1117  ;;  %1080 = vst.msk [vmem:[#allocation3 + $0x4] sm:$0xf] %vm1078_vm4, %v1069_v44 }
  0xe8   : > { %1130 = vst.msk [vmem:[#allocation3] sm:$0xf] %vm1129_vm5, %v1118_v45  ;;  %1223 = vrot.lane.b32.xlu0 %v1212_v42, %s2049_s16 }
  0xe9   : > { %1272 = vrot.lane.b32.xlu1 %v1262_v43, %s2051_s14 }
  0xea   : > { %v720_v48 = vpop.permute.xlu0 %719 }
  0xeb   : > { %v768_v49 = vpop.permute.xlu1 %767  ;;  %729 = vst.msk [vmem:[#allocation3 + $0xc] sm:$0xf] %vm725_vm7, %v720_v48  ;;  %vm1179_vm7 = vcmask 355664  }
  0xec   : > { %778 = vst.msk [vmem:[#allocation3 + $0x8] sm:$0xf] %vm775_vm10, %v768_v49  ;;  %1249 = vrot.lane.b32.xlu0 %v1238_v46, %s2050_s20  ;;  %s493_s20 = scalar_lea.vmem %s2614_s6, %s1810_s24 }
  0xed   : > { %1297 = vrot.lane.b32.xlu1 %v1287_v47, %s2053_s10 }
  0xee   : > { %v1095_v50 = vpop.permute.xlu0 %1094 }
  0xef   : > { %v1143_v51 = vpop.permute.xlu1 %1142  ;;  %1106 = vst.msk [vmem:[#allocation3 + $0x4] sm:$0xf] %vm2633_vm8, %v1095_v50  ;;  %vm1204_vm8 = vcmask 372064  }
  0xf0   : > { %1155 = vst.msk [vmem:[#allocation3] sm:$0xf] %vm1154_vm6, %v1143_v51  ;;  %1274 = vrot.lane.b32.xlu0 %v1263_v6, %s2051_s14 }
  0xf1   : > { %1299 = vrot.lane.b32.xlu1 %v1288_v13, %s2053_s10 }
  0xf2   : > { %v745_v52 = vpop.permute.xlu0 %744 }
  0xf3   : > { %v794_v53 = vpop.permute.xlu1 %793  ;;  %754 = vst.msk [vmem:[#allocation3 + $0xc] sm:$0xf] %vm750_vm9, %v745_v52  ;;  %vm1229_vm9 = vcmask 388464  }
  0xf4   : > { %804 = vst.msk [vmem:[#allocation3 + $0x8] sm:$0xf] %vm801_vm12, %v794_v53 }
  0xf6   : > { %v1120_v54 = vpop.permute.xlu0 %1119 }
  0xf7   : > { %v1168_v55 = vpop.permute.xlu1 %1167  ;;  %1131 = vst.msk [vmem:[#allocation3 + $0x4] sm:$0xf] %vm1129_vm5, %v1120_v54 }
  0xf8   : > { %1180 = vst.msk [vmem:[#allocation3] sm:$0xf] %vm1179_vm7, %v1168_v55 }
  0xfa   : > { %v770_v56 = vpop.permute.xlu0 %769 }
  0xfb   : > { %v819_v57 = vpop.permute.xlu1 %818  ;;  %779 = vst.msk [vmem:[#allocation3 + $0xc] sm:$0xf] %vm775_vm10, %v770_v56  ;;  %vm1255_vm10 = vcmask 404864  }
  0xfc   : > { %829 = vst.msk [vmem:[#allocation3 + $0x8] sm:$0xf] %vm826_vm13, %v819_v57 }
  0xfe   : > { %v1145_v58 = vpop.permute.xlu0 %1144 }
  0xff   : > { %v1193_v59 = vpop.permute.xlu1 %1192  ;;  %1156 = vst.msk [vmem:[#allocation3 + $0x4] sm:$0xf] %vm1154_vm6, %v1145_v58 }
 0x100   : > { %1205 = vst.msk [vmem:[#allocation3] sm:$0xf] %vm1204_vm8, %v1193_v59 }
 0x102   : > { %v796_v60 = vpop.permute.xlu0 %795 }
 0x103   : > { %v844_v61 = vpop.permute.xlu1 %843  ;;  %805 = vst.msk [vmem:[#allocation3 + $0xc] sm:$0xf] %vm801_vm12, %v796_v60  ;;  %vm1280_vm12 = vcmask 421264  }
 0x104   : > { %854 = vst.msk [vmem:[#allocation3 + $0x8] sm:$0xf] %vm851_vm14, %v844_v61 }
 0x106   : > { %v1170_v62 = vpop.permute.xlu0 %1169 }
 0x107   : > { %v1218_v63 = vpop.permute.xlu1 %1217  ;;  %1181 = vst.msk [vmem:[#allocation3 + $0x4] sm:$0xf] %vm1179_vm7, %v1170_v62 }
 0x108   : > { %1230 = vst.msk [vmem:[#allocation3] sm:$0xf] %vm1229_vm9, %v1218_v63 }
 0x10a   : > { %v821_v1 = vpop.permute.xlu0 %820 }
 0x10b   : > { %v870_v2 = vpop.permute.xlu1 %869  ;;  %830 = vst.msk [vmem:[#allocation3 + $0xc] sm:$0xf] %vm826_vm13, %v821_v1  ;;  %vm1305_vm13 = vcmask 437664  }
 0x10c   : > { %880 = vst.msk [vmem:[#allocation3 + $0x8] sm:$0xf] %vm877_vm15, %v870_v2 }
 0x10e   : > { %v1195_v3 = vpop.permute.xlu0 %1194 }
 0x10f   : > { %v1244_v4 = vpop.permute.xlu1 %1243  ;;  %1206 = vst.msk [vmem:[#allocation3 + $0x4] sm:$0xf] %vm1204_vm8, %v1195_v3 }
 0x110   : > { %1256 = vst.msk [vmem:[#allocation3] sm:$0xf] %vm1255_vm10, %v1244_v4 }
 0x112   : > { %v846_v5 = vpop.permute.xlu0 %845 }
 0x113   : > { %v895_v7 = vpop.permute.xlu1 %894  ;;  %855 = vst.msk [vmem:[#allocation3 + $0xc] sm:$0xf] %vm851_vm14, %v846_v5  ;;  %vm1346_vm14 = vcmask 441344  }
 0x114   : > { %905 = vst.msk [vmem:[#allocation3 + $0x8] sm:$0xf] %vm902_vm0, %v895_v7 }
 0x116   : > { %v1220_v8 = vpop.permute.xlu0 %1219 }
 0x117   : > { %v1269_v9 = vpop.permute.xlu1 %1268  ;;  %1231 = vst.msk [vmem:[#allocation3 + $0x4] sm:$0xf] %vm1229_vm9, %v1220_v8 }
 0x118   : > { %1281 = vst.msk [vmem:[#allocation3] sm:$0xf] %vm1280_vm12, %v1269_v9 }
 0x11a   : > { %v872_v10 = vpop.permute.xlu0 %871 }
 0x11b   : > { %v920_v11 = vpop.permute.xlu1 %919  ;;  %881 = vst.msk [vmem:[#allocation3 + $0xc] sm:$0xf] %vm877_vm15, %v872_v10  ;;  %vm2643_vm15 = vmmov 0  }
 0x11c   : > { %930 = vst.msk [vmem:[#allocation3 + $0x8] sm:$0xf] %vm927_vm2, %v920_v11 }
 0x11e   : > { %v1246_v12 = vpop.permute.xlu0 %1245 }
 0x11f   : > { %v1294_v14 = vpop.permute.xlu1 %1293  ;;  %1257 = vst.msk [vmem:[#allocation3 + $0x4] sm:$0xf] %vm1255_vm10, %v1246_v12 }
 0x120   : > { %1306 = vst.msk [vmem:[#allocation3] sm:$0xf] %vm1305_vm13, %v1294_v14 }
 0x122   : > { %v897_v15 = vpop.permute.xlu0 %896 }
 0x123   : > { %v945_v16 = vpop.permute.xlu1 %944  ;;  %906 = vst.msk [vmem:[#allocation3 + $0xc] sm:$0xf] %vm902_vm0, %v897_v15  ;;  %vm2644_vm0 = vcmask 224464  }
 0x124   : > { %955 = vst.msk [vmem:[#allocation3 + $0x8] sm:$0xf] %vm952_vm3, %v945_v16 }
 0x126   : > { %v1271_v17 = vpop.permute.xlu0 %1270 }
 0x127   : > { %v922_v18 = vpop.permute.xlu1 %921  ;;  %v1310_v19 = vld [vmem:[#allocation3] sm:$0xf]  ;;  %1282 = vst.msk [vmem:[#allocation3 + $0x4] sm:$0xf] %vm1280_vm12, %v1271_v17 }
 0x128   : > { %931 = vst.msk [vmem:[#allocation3 + $0xc] sm:$0xf] %vm927_vm2, %v922_v18  ;;  %v1314_v20 = vpack.c.bf16 %v1310_v19, %v1310_v19  ;;  %vm2645_vm2 = vcmask 240864  }
 0x12a   : > { %1875 = vmatmul.mubr.msk.bf16.vlgmr.msra.gmra.mrb[0].mxu0 %vm1346_vm14, %v1314_v20  ;;  %v970_v22 = vpop.permute.xlu0 %969 }
 0x12b   : > { %v1296_v23 = vpop.permute.xlu1 %1295  ;;  %1891 = vmatpush3.bf16.msra.mxu0 %v2358_v21  ;;  %1898 = vmatprep.mubr.msk.bf16.mxu0 %vm2643_vm15, %v2026_v0  ;;  %980 = vst.msk [vmem:[#allocation3 + $0x8] sm:$0xf] %vm2644_vm0, %v970_v22 }
 0x12c   : > { %1307 = vst.msk [vmem:[#allocation3 + $0x4] sm:$0xf] %vm1305_vm13, %v1296_v23  ;;  %1892 = vmatprep.subr.bf16.mxu0 %v2026_v0 }
 0x12e   : > { %v947_v24 = vpop.permute.xlu0 %946 }
 0x12f   : > { %v995_v26 = vpop.permute.xlu1 %994  ;;  %1893 = vmatpush3.bf16.msra.mxu0 %v2371_v25  ;;  %956 = vst.msk [vmem:[#allocation3 + $0xc] sm:$0xf] %vm952_vm3, %v947_v24  ;;  %vm2646_vm3 = vmmov %vm2645_vm2 }
 0x130   : > { %1005 = vst.msk [vmem:[#allocation3 + $0x8] sm:$0xf] %vm2645_vm2, %v995_v26  ;;  %1894 = vmatprep.subr.bf16.mxu0 %v2026_v0  ;;  %vm2647_vm2 = vcmask 306464  }
 0x132   : > { %v972_v27 = vpop.permute.xlu0 %971 }
 0x133   : > { %v1021_v28 = vpop.permute.xlu1 %1020  ;;  %v1311_v29 = vld [vmem:[#allocation3 + $0x4] sm:$0xf]  ;;  %1895 = vmatpush3.bf16.msra.mxu0 %v2383_v30  ;;  %981 = vst.msk [vmem:[#allocation3 + $0xc] sm:$0xf] %vm2644_vm0, %v972_v27 }
 0x134   : > { %1031 = vst.msk [vmem:[#allocation3 + $0x8] sm:$0xf] %vm1028_vm1, %v1021_v28  ;;  %v1315_v31 = vpack.c.bf16 %v1311_v29, %v1311_v29  ;;  %1896 = vmatprep.subr.bf16.mxu0 %v2026_v0 }
 0x136   : > { %1887 = vmatmul.mubr.msk.bf16.vlgmr.msra.gmra.mrb[0].mxu1 %vm1346_vm14, %v1315_v31  ;;  %v997_v32 = vpop.permute.xlu0 %996 }
 0x137   : > { %v1046_v33 = vpop.permute.xlu1 %1045  ;;  %1903 = vmatpush3.bf16.msra.mxu1 %v2358_v21  ;;  %1897 = vmatpush3.bf16.msra.mxu0 %v2399_v38  ;;  %1006 = vst.msk [vmem:[#allocation3 + $0xc] sm:$0xf] %vm2646_vm3, %v997_v32 }
 0x138   : > { %1056 = vst.msk [vmem:[#allocation3 + $0x8] sm:$0xf] %vm1053_vm11, %v1046_v33  ;;  %1904 = vmatprep.subr.bf16.mxu1 %v2026_v0  ;;  %1910 = vmatprep.mubr.msk.bf16.mxu1 %vm2643_vm15, %v2026_v0 }
 0x13a   : > { %v1023_v34 = vpop.permute.xlu0 %1022 }
 0x13b   : > { %v1071_v35 = vpop.permute.xlu1 %1070  ;;  %1905 = vmatpush3.bf16.msra.mxu1 %v2371_v25  ;;  %1032 = vst.msk [vmem:[#allocation3 + $0xc] sm:$0xf] %vm1028_vm1, %v1023_v34  ;;  %vm2648_vm1 = vmmov %vm2647_vm2 }
 0x13c   : > { %1081 = vst.msk [vmem:[#allocation3 + $0x8] sm:$0xf] %vm1078_vm4, %v1071_v35  ;;  %1906 = vmatprep.subr.bf16.mxu1 %v2026_v0  ;;  %v1559_v35 = vlaneseq }
 0x13e   : > { %v1048_v21 = vpop.permute.xlu0 %1047 }
 0x13f   : > { %v1097_v36 = vpop.permute.xlu1 %1096  ;;  %1907 = vmatpush3.bf16.msra.mxu1 %v2383_v30  ;;  %1057 = vst.msk [vmem:[#allocation3 + $0xc] sm:$0xf] %vm1053_vm11, %v1048_v21  ;;  %vm2649_vm11 = vcmask 11264  }
 0x140   : > { %1107 = vst.msk [vmem:[#allocation3 + $0x8] sm:$0xf] %vm2647_vm2, %v1097_v36  ;;  %1908 = vmatprep.subr.bf16.mxu1 %v2026_v0 }
 0x142   : > { %v1073_v37 = vpop.permute.xlu0 %1072 }
 0x143   : > { %v1122_v39 = vpop.permute.xlu1 %1121  ;;  %1909 = vmatpush3.bf16.msra.mxu1 %v2399_v38  ;;  %1082 = vst.msk [vmem:[#allocation3 + $0xc] sm:$0xf] %vm1078_vm4, %v1073_v37  ;;  %vm2650_vm4 = vmmov %vm2649_vm11 }
 0x144   : > { %1132 = vst.msk [vmem:[#allocation3 + $0x8] sm:$0xf] %vm1129_vm5, %v1122_v39  ;;  %vm2660_vm15 = vmmov %vm2650_vm4 }
 0x145   : > { %vm2661_vm0 = vmmov %vm2650_vm4 }
 0x146   : > { %v1099_v25 = vpop.permute.xlu0 %1098  ;;  %vm2662_vm3 = vmmov %vm2661_vm0 }
 0x147   : > { %v1147_v40 = vpop.permute.xlu1 %1146  ;;  %1108 = vst.msk [vmem:[#allocation3 + $0xc] sm:$0xf] %vm2648_vm1, %v1099_v25  ;;  %v1560_v25 = vshrl.u32 %v1559_v35, 7  ;;  %vm1563_vm1 = vcmask 9216  }
 0x148   : > { %1157 = vst.msk [vmem:[#allocation3 + $0x8] sm:$0xf] %vm1154_vm6, %v1147_v40 }
 0x149   : > { %vm1561_vm2 = vcmp.eq.s32.totalorder %v1560_v25, 0 }
 0x14a   : > { %v1124_v30 = vpop.permute.xlu0 %1123 }
 0x14b   : > { %v1172_v41 = vpop.permute.xlu1 %1171  ;;  %1133 = vst.msk [vmem:[#allocation3 + $0xc] sm:$0xf] %vm1129_vm5, %v1124_v30  ;;  %vm2652_vm5 = vmmov %vm2650_vm4 }
 0x14c   : > { %1182 = vst.msk [vmem:[#allocation3 + $0x8] sm:$0xf] %vm1179_vm7, %v1172_v41 }
 0x14e   : > { %v1149_v0 = vpop.permute.xlu0 %1148 }
 0x14f   : > { %v1197_v42 = vpop.permute.xlu1 %1196  ;;  %1158 = vst.msk [vmem:[#allocation3 + $0xc] sm:$0xf] %vm1154_vm6, %v1149_v0  ;;  %vm2653_vm6 = vmmov %vm2650_vm4 }
 0x150   : > { %1207 = vst.msk [vmem:[#allocation3 + $0x8] sm:$0xf] %vm1204_vm8, %v1197_v42 }
 0x152   : > { %v1174_v38 = vpop.permute.xlu0 %1173 }
 0x153   : > { %v1222_v43 = vpop.permute.xlu1 %1221  ;;  %1183 = vst.msk [vmem:[#allocation3 + $0xc] sm:$0xf] %vm1179_vm7, %v1174_v38  ;;  %vm2654_vm7 = vmmov %vm2650_vm4 }
 0x154   : > { %1232 = vst.msk [vmem:[#allocation3 + $0x8] sm:$0xf] %vm1229_vm9, %v1222_v43 }
 0x156   : > { %v1199_v44 = vpop.permute.xlu0 %1198 }
 0x157   : > { %v1248_v45 = vpop.permute.xlu1 %1247  ;;  %1208 = vst.msk [vmem:[#allocation3 + $0xc] sm:$0xf] %vm1204_vm8, %v1199_v44  ;;  %vm2651_vm8 = vmmov %vm2650_vm4 }
 0x158   : > { %1258 = vst.msk [vmem:[#allocation3 + $0x8] sm:$0xf] %vm1255_vm10, %v1248_v45 }
 0x15a   : > { %v1224_v46 = vpop.permute.xlu0 %1223 }
 0x15b   : > { %v1273_v47 = vpop.permute.xlu1 %1272  ;;  %1233 = vst.msk [vmem:[#allocation3 + $0xc] sm:$0xf] %vm1229_vm9, %v1224_v46  ;;  %vm2655_vm9 = vmmov %vm2650_vm4 }
 0x15c   : > { %1283 = vst.msk [vmem:[#allocation3 + $0x8] sm:$0xf] %vm1280_vm12, %v1273_v47 }
 0x15e   : > { %v1250_v48 = vpop.permute.xlu0 %1249 }
 0x15f   : > { %v1298_v49 = vpop.permute.xlu1 %1297  ;;  %1259 = vst.msk [vmem:[#allocation3 + $0xc] sm:$0xf] %vm1255_vm10, %v1250_v48  ;;  %vm2656_vm10 = vmmov %vm2650_vm4 }
 0x160   : > { %1308 = vst.msk [vmem:[#allocation3 + $0x8] sm:$0xf] %vm1305_vm13, %v1298_v49 }
 0x162   : > { %v1275_v6 = vpop.permute.xlu0 %1274 }
 0x163   : > { %v1300_v13 = vpop.permute.xlu1 %1299  ;;  %1284 = vst.msk [vmem:[#allocation3 + $0xc] sm:$0xf] %vm1280_vm12, %v1275_v6  ;;  %vm2657_vm12 = vmmov %vm2650_vm4 }
 0x164   : > { %1309 = vst.msk [vmem:[#allocation3 + $0xc] sm:$0xf] %vm1305_vm13, %v1300_v13  ;;  %vm2658_vm13 = vmmov %vm2650_vm4 }
 0x167   : > { %v1312_v50 = vld [vmem:[#allocation3 + $0x8] sm:$0xf] }
 0x168   : > { %v1316_v51 = vpack.c.bf16 %v1312_v50, %v1312_v50 }
 0x16a   : > { %1899 = vmatmul.mubr.msk.bf16.vlgmr.msra.gmra.mrb[4].mxu0 %vm1346_vm14, %v1316_v51 }
 0x16b   : > { %v1313_v52 = vld [vmem:[#allocation3 + $0xc] sm:$0xf] }
 0x16c   : > { %v1317_v53 = vpack.c.bf16 %v1313_v52, %v1313_v52 }
 0x16e   : > { %1911 = vmatmul.mubr.msk.bf16.vlgmr.msra.gmra.mrb[4].mxu1 %vm1346_vm14, %v1317_v53  ;;  %vm2659_vm14 = vmmov %vm2650_vm4 }
 0x1fd   : > { %v1388_v54 = vpop.f32.mrb[0].mxu0 }
 0x1fe   : > { %1523 = vst.msk [vmem:[%s493_s20] sm:$0xf] %vm2649_vm11, %v1388_v54  ;;  %v1876_v55 = vpop.f32.mrb[1].mxu0  ;;  %v1534_v58 = vmul.f32 %v1388_v54, %v1388_v54  ;;  %v1527_v60 = vsel %vm2650_vm4, %v1388_v54, 0.0 }
 0x1ff   : > { %v1391_v56 = vpop.f32.mrb[2].mxu0 }
 0x200   : > { %v1877_v57 = vpop.f32.mrb[3].mxu0  ;;  %v1538_v3 = vsel %vm2653_vm6, %v1534_v58, 0.0 }
 0x209   : > { %v1431_v59 = vpop.f32.mrb[0].mxu1 }
 0x20a   : > { %1524 = vst.msk [vmem:[%s493_s20 + $0x4] sm:$0xf] %vm2651_vm8, %v1431_v59  ;;  %v1528_v61 = vsel %vm2652_vm5, %v1431_v59, 0.0  ;;  %v1535_v62 = vmul.f32 %v1431_v59, %v1431_v59  ;;  %v1888_v63 = vpop.f32.mrb[1].mxu1 }
 0x20b   : > { %v1529_v1 = vadd.f32 %v1528_v61, %v1527_v60  ;;  %v1434_v2 = vpop.f32.mrb[2].mxu1 }
 0x20c   : > { %v1539_v4 = vsel %vm2654_vm7, %v1535_v62, 0.0  ;;  %v1889_v5 = vpop.f32.mrb[3].mxu1 }
 0x20d   : > { %v1540_v7 = vadd.f32 %v1539_v4, %v1538_v3 }
 0x23d   : > { %v1474_v8 = vpop.f32.mrb[4].mxu0 }
 0x23e   : > { %1525 = vst.msk [vmem:[%s493_s20 + $0x8] sm:$0xf] %vm2655_vm9, %v1474_v8  ;;  %v1530_v9 = vsel %vm2656_vm10, %v1474_v8, 0.0  ;;  %v1536_v10 = vmul.f32 %v1474_v8, %v1474_v8  ;;  %v1900_v11 = vpop.f32.mrb[5].mxu0 }
 0x23f   : > { %v1531_v12 = vadd.f32 %v1530_v9, %v1529_v1  ;;  %v1477_v14 = vpop.f32.mrb[6].mxu0 }
 0x240   : > { %v1541_v15 = vsel %vm2657_vm12, %v1536_v10, 0.0  ;;  %v1901_v16 = vpop.f32.mrb[7].mxu0 }
 0x241   : > { %v1542_v17 = vadd.f32 %v1541_v15, %v1540_v7  ;;  %v1517_v18 = vpop.f32.mrb[4].mxu1 }
 0x242   : > { %1526 = vst.msk [vmem:[%s493_s20 + $0xc] sm:$0xf] %vm2658_vm13, %v1517_v18  ;;  %v1532_v19 = vsel %vm2659_vm14, %v1517_v18, 0.0  ;;  %v1537_v20 = vmul.f32 %v1517_v18, %v1517_v18  ;;  %v1912_v22 = vpop.f32.mrb[5].mxu1 }
 0x243   : > { %v1533_v23 = vadd.f32 %v1532_v19, %v1531_v12  ;;  %v1520_v24 = vpop.f32.mrb[6].mxu1 }
 0x244   : > { %v1543_v26 = vsel %vm2660_vm15, %v1537_v20, 0.0  ;;  %v1913_v27 = vpop.f32.mrb[7].mxu1 }
 0x245   : > { %v1544_v28 = vadd.f32 %v1543_v26, %v1542_v17  ;;  %v1545_v29 = vsel %vm2661_vm0, %v1533_v23, 0.0 }
 0x246   : > { %v1546_v31 = vrot.slane %v1545_v29, 4 }
 0x247   : > { %v1552_v32 = vsel %vm2662_vm3, %v1544_v28, 0.0 }
 0x248   : > { %v1547_v33 = vadd.f32 %v1546_v31, %v1545_v29  ;;  %v1553_v34 = vrot.slane %v1552_v32, 4 }
 0x24a   : > { %v1548_v21 = vrot.slane %v1547_v33, 2  ;;  %v1554_v36 = vadd.f32 %v1553_v34, %v1552_v32 }
 0x24c   : > { %v1549_v37 = vadd.f32 %v1548_v21, %v1547_v33  ;;  %v1555_v39 = vrot.slane %v1554_v36, 2 }
 0x24e   : > { %v1550_v40 = vrot.slane %v1549_v37, 1  ;;  %v1556_v30 = vadd.f32 %v1555_v39, %v1554_v36 }
 0x250   : > { %v1557_v41 = vrot.slane %v1556_v30, 1  ;;  %v1551_v0 = vadd.f32 %v1550_v40, %v1549_v37 }
 0x252   : > { %v1558_v42 = vadd.f32 %v1557_v41, %v1556_v30 }
 0x254   : > { %v1562_v38 = vsel %vm1561_vm2, %v1551_v0, %v1558_v42 }
 0x255   : > { %1564 = vst.msk [vmem:[%s501_s13] sm:$0x3] %vm1563_vm1, %v1562_v38 }
 0x256 PF: > { %s18_s28 = sadd.s32 1, %s2024_s28   ;;  %s2663_s24 = smov %s2016_s26 }
 0x257   : > { %p15_p10 = scmp.ge.s32.totalorder %s18_s28, 10   ;;  %s2664_s25 = smov %s2020_s27 }
 0x258   : > { %s2665_s26 = smov %s2668_s29  ;;  %s2666_s27 = smov %s2672_s30 }
 0x259   :  { %17 = sbr.rel (!%p15_p10) target bundleno = 3 (0x3), region = 100 }

// kernel: _lambda_.6
= control target key start
LH: loop header
LB: loop body
LE: loop exit
PB: predicated region body
PF: predicated region fallthrough
CT: control target
= control target key end

     0   :  { %s658_s18 = smov 0   ;;  %s751_s0 = inlined_call_operand.vmem [shape: f32[128,2], index: 0, kind: input, shape index: {}]   ;;  %s752_s1 = inlined_call_operand.vmem [shape: f32[1,2], index: 1, kind: input, shape index: {}]   ;;  %s753_s2 = inlined_call_operand.vmem [shape: f32[1,2], index: 2, kind: input, shape index: {}]   ;;  %s754_s3 = inlined_call_operand.vmem [shape: bf16[2,16], index: 3, kind: input, shape index: {}]   ;;  %s755_s4 = inlined_call_operand.vmem [shape: f32[128,16], index: 4, kind: output, shape index: {0}]   ;;  %s756_s5 = inlined_call_operand.vmem [shape: f32[2,2,16], index: 5, kind: output, shape index: {1}]  }
   0x1 LB: > { %s664_s19 = sadd.s32 4294967295, %s626_s18   ;;  %p578_p0 = scmp.ge.s32.totalorder %s626_s18, 1  ;;  %s626_s18 = sphi %s658_s18, %s16_s18  }
   0x2   : > { %p191_p1 = scmp.lt.s32.totalorder %s626_s18, 3 }
   0x4   : > { %p192_p2 = pnand %p578_p0, %p191_p1 }
   0x5   : > { %v290_v0 = vld [vmem:[%s754_s3] sm:$0x1] (!%p192_p2)  ;;  %vm304_vm0 = vcmask (!%p192_p2), 1040384   ;;  %s579_s22 = sshll.u32 (!%p192_p2), %s664_s19, 3  ;;  %vm291_vm1 = vcmask (!%p192_p2), 15360   ;;  %v383_v40 = vlaneseq (!%p192_p2)  ;;  %s590_s6 = sshll.u32 (!%p192_p2), %s664_s19, 6 }
   0x6   : > { %195 = sbr.rel (%p192_p2) target bundleno = 273 (0x111), region = 36  ;;  %610 = vmatprep.subr.msk.bf16.mxu0 (!%p192_p2), %vm304_vm0, %v290_v0  ;;  %v306_v1 = vsel (!%p192_p2), %vm304_vm0, %v290_v0, 0  ;;  %p224_p3 = scmp.lt.s32.totalorder (!%p192_p2), %s579_s22, 15  ;;  %611 = vmatprep.subr.msk.bf16.mxu1 (!%p192_p2), %vm304_vm0, %v290_v0  ;;  %v584_v2 = vld [vmem:[%s752_s1] ss:$0 sm:$0xff] (!%p192_p2)  ;;  %v392_v43 = vstv (!%p192_p2), %s590_s6  ;;  %vm373_vm2 = vcmask (!%p192_p2), 130048  }
   0x7   : > { %599 = vmatpush3.bf16.msra.mxu0 (!%p192_p2), %v306_v1  ;;  %609 = vmatpush3.bf16.msra.mxu1 (!%p192_p2), %v306_v1  ;;  %v585_v3 = vld [vmem:[%s753_s2] ss:$0 sm:$0xff] (!%p192_p2)  ;;  %v690_v41 = vshrl.u32 (!%p192_p2), %v383_v40, 7  ;;  %p235_p4 = scmp.lt.s32.totalorder (!%p192_p2), %s664_s19, 1  ;;  %vm485_vm12 = vcmask (!%p192_p2), 123904  }
   0x9   : > { %v386_v42 = vadd.s32 (!%p192_p2), 16, %v690_v41  ;;  %v387_v44 = vadd.s32 (!%p192_p2), 24, %v690_v41  ;;  %v385_v45 = vadd.s32 (!%p192_p2), 8, %v690_v41  ;;  %v393_v47 = vadd.s32 (!%p192_p2), %v392_v43, %v690_v41 }
   0xa   : > { %v388_v48 = vadd.s32 (!%p192_p2), 32, %v690_v41  ;;  %v390_v49 = vadd.s32 (!%p192_p2), 48, %v690_v41  ;;  %v389_v52 = vadd.s32 (!%p192_p2), 40, %v690_v41  ;;  %v391_v56 = vadd.s32 (!%p192_p2), 56, %v690_v41 }
   0xb   : > { %v395_v46 = vadd.s32 (!%p192_p2), %v392_v43, %v386_v42  ;;  %v396_v50 = vadd.s32 (!%p192_p2), %v392_v43, %v387_v44  ;;  %v394_v51 = vadd.s32 (!%p192_p2), %v392_v43, %v385_v45  ;;  %vm401_vm4 = vcmp.lt.s32.totalorder (!%p192_p2), %v393_v47, 128 }
   0xc   : > { %v397_v53 = vadd.s32 (!%p192_p2), %v392_v43, %v388_v48  ;;  %v399_v55 = vadd.s32 (!%p192_p2), %v392_v43, %v390_v49  ;;  %v398_v62 = vadd.s32 (!%p192_p2), %v392_v43, %v389_v52  ;;  %vm483_vm11 = vcmp.eq.s32.totalorder (!%p192_p2), %v690_v41, 0 }
   0xd   : > { %s758_s22 = smov (!%p224_p3, %s579_s22), 15  ;;  %vm403_vm3 = vcmp.lt.s32.totalorder %v395_v46, 128  ;;  %vm404_vm5 = vcmp.lt.s32.totalorder %v396_v50, 128  ;;  %vm402_vm6 = vcmp.lt.s32.totalorder %v394_v51, 128  ;;  %s760_s19 = smov (!%p235_p4, %s664_s19), 1 }
   0xe   : > { %s580_s23 = sshll.u32 %s758_s22, 3  ;;  %vm405_vm7 = vcmp.lt.s32.totalorder %v397_v53, 128  ;;  %vm407_vm8 = vcmp.lt.s32.totalorder %v399_v55, 128  ;;  %vm406_vm9 = vcmp.lt.s32.totalorder %v398_v62, 128  ;;  %s583_s10 = sshll.u32 %s760_s19, 1 }
   0xf   : > { %s227_s28 = scalar_lea.vmem %s751_s0, %s580_s23  ;;  %s704_s9 = scalar_lea.vmem %s755_s4, %s580_s23 }
  0x10   : > { %v240_v4 = vld [vmem:[%s227_s28] sm:$0xff]  ;;  %v241_v5 = vld [vmem:[%s227_s28 + $0x8] sm:$0xff]  ;;  %v242_v6 = vld [vmem:[%s227_s28 + $0x10] sm:$0xff]  ;;  %s238_s13 = scalar_lea.vmem %s756_s5, %s583_s10 }
  0x11   : > { %v255_v7 = vmul.f32 %v584_v2, %v240_v4  ;;  %v256_v8 = vmul.f32 %v584_v2, %v241_v5  ;;  %v243_v9 = vld [vmem:[%s227_s28 + $0x18] sm:$0xff]  ;;  %v257_v10 = vmul.f32 %v584_v2, %v242_v6  ;;  %v244_v11 = vld [vmem:[%s227_s28 + $0x20] sm:$0xff]  ;;  %v245_v12 = vld [vmem:[%s227_s28 + $0x28] sm:$0xff]  ;;  %v400_v5 = vadd.s32 %v392_v43, %v391_v56 }
  0x12   : > { %v258_v13 = vmul.f32 %v584_v2, %v243_v9  ;;  %v259_v14 = vmul.f32 %v584_v2, %v244_v11  ;;  %v260_v15 = vmul.f32 %v584_v2, %v245_v12  ;;  %v246_v16 = vld [vmem:[%s227_s28 + $0x30] sm:$0xff]  ;;  %v247_v17 = vld [vmem:[%s227_s28 + $0x38] sm:$0xff] }
  0x13   : > { %v270_v18 = vadd.f32 %v585_v3, %v255_v7  ;;  %v271_v19 = vadd.f32 %v585_v3, %v256_v8  ;;  %v272_v20 = vadd.f32 %v585_v3, %v257_v10  ;;  %v261_v21 = vmul.f32 %v584_v2, %v246_v16 }
  0x14   : > { %v273_v22 = vadd.f32 %v585_v3, %v258_v13  ;;  %v274_v23 = vadd.f32 %v585_v3, %v259_v14  ;;  %v275_v24 = vadd.f32 %v585_v3, %v260_v15  ;;  %v262_v25 = vmul.f32 %v584_v2, %v247_v17 }
  0x15   : > { %v278_v26 = vmax.f32 %v270_v18, 0.0  ;;  %v279_v27 = vmax.f32 %v271_v19, 0.0  ;;  %v280_v28 = vmax.f32 %v272_v20, 0.0  ;;  %v276_v29 = vadd.f32 %v585_v3, %v261_v21 }
  0x16   : > { %v281_v30 = vmax.f32 %v273_v22, 0.0  ;;  %v282_v31 = vmax.f32 %v274_v23, 0.0  ;;  %v283_v32 = vmax.f32 %v275_v24, 0.0  ;;  %v277_v33 = vadd.f32 %v585_v3, %v262_v25 }
  0x17   : > { %v286_v34 = vpack.c.bf16 %v279_v27, %v278_v26  ;;  %v284_v35 = vmax.f32 %v276_v29, 0.0  ;;  %vm408_vm10 = vcmp.lt.s32.totalorder %v400_v5, 128 }
  0x18   : > { %v287_v36 = vpack.c.bf16 %v281_v30, %v280_v28  ;;  %v288_v37 = vpack.c.bf16 %v283_v32, %v282_v31  ;;  %v285_v38 = vmax.f32 %v277_v33, 0.0 }
  0x19   : > { %600 = vmatprep.mubr.msk.bf16.mxu0 %vm291_vm1, %v286_v34 }
  0x1a   : > { %601 = vmatmul.mubr.msk.bf16.vlgmr.msra.gmra.mrb[0].mxu0 %vm291_vm1, %v287_v36  ;;  %604 = vmatprep.mubr.msk.bf16.mxu1 %vm291_vm1, %v288_v37  ;;  %v289_v39 = vpack.c.bf16 %v285_v38, %v284_v35 }
  0x1c   : > { %605 = vmatmul.mubr.msk.bf16.vlgmr.msra.gmra.mrb[0].mxu1 %vm291_vm1, %v289_v39 }
  0xed   : > { %v602_v54 = vpop.f32.mrb[0].mxu0 }
  0xee   : > { %376 = vst.msk [vmem:[%s704_s9 + $0x10] sm:$0xff] %vm373_vm2, %v602_v54  ;;  %v342_v57 = vpop.f32.mrb[1].mxu0  ;;  %v427_v58 = vsel %vm403_vm3, %v602_v54, 0.0 }
  0xef   : > { %374 = vst.msk [vmem:[%s704_s9] sm:$0xff] %vm373_vm2, %v342_v57  ;;  %v425_v59 = vsel %vm401_vm4, %v342_v57, 0.0  ;;  %v603_v60 = vpop.f32.mrb[2].mxu0  ;;  %v606_v61 = vpop.f32.mrb[0].mxu1  ;;  %v456_v6 = vmul.f32 %v427_v58, %v427_v58  ;;  %v436_v11 = vsel %vm373_vm2, %v427_v58, 0.0 }
  0xf0   : > { %v454_v63 = vmul.f32 %v425_v59, %v425_v59  ;;  %377 = vst.msk [vmem:[%s704_s9 + $0x18] sm:$0xff] %vm373_vm2, %v603_v60  ;;  %v345_v0 = vpop.f32.mrb[3].mxu0  ;;  %380 = vst.msk [vmem:[%s704_s9 + $0x30] sm:$0xff] %vm373_vm2, %v606_v61  ;;  %v358_v1 = vpop.f32.mrb[1].mxu1  ;;  %v428_v2 = vsel %vm404_vm5, %v603_v60, 0.0  ;;  %v433_v7 = vsel %vm373_vm2, %v425_v59, 0.0 }
  0xf1   : > { %375 = vst.msk [vmem:[%s704_s9 + $0x8] sm:$0xff] %vm373_vm2, %v345_v0  ;;  %v426_v3 = vsel %vm402_vm6, %v345_v0, 0.0  ;;  %378 = vst.msk [vmem:[%s704_s9 + $0x20] sm:$0xff] %vm373_vm2, %v358_v1  ;;  %v607_v4 = vpop.f32.mrb[2].mxu1  ;;  %v429_v13 = vsel %vm405_vm7, %v358_v1, 0.0  ;;  %v457_v15 = vmul.f32 %v428_v2, %v428_v2  ;;  %v465_v20 = vsel %vm373_vm2, %v456_v6, 0.0 }
  0xf2   : > { %v434_v8 = vsel %vm373_vm2, %v426_v3, 0.0  ;;  %v455_v9 = vmul.f32 %v426_v3, %v426_v3  ;;  %381 = vst.msk [vmem:[%s704_s9 + $0x38] sm:$0xff] %vm373_vm2, %v607_v4  ;;  %v361_v10 = vpop.f32.mrb[3].mxu1  ;;  %v462_v14 = vsel %vm373_vm2, %v454_v63, 0.0  ;;  %v458_v17 = vmul.f32 %v429_v13, %v429_v13 }
  0xf3   : > { %v435_v12 = vadd.f32 %v434_v8, %v433_v7  ;;  %379 = vst.msk [vmem:[%s704_s9 + $0x28] sm:$0xff] %vm373_vm2, %v361_v10  ;;  %v438_v21 = vsel %vm373_vm2, %v428_v2, 0.0  ;;  %v440_v22 = vsel %vm373_vm2, %v429_v13, 0.0  ;;  %v430_v23 = vsel %vm406_vm9, %v361_v10, 0.0 }
  0xf4   : > { %v463_v16 = vsel %vm373_vm2, %v455_v9, 0.0  ;;  %v431_v25 = vsel %vm407_vm8, %v606_v61, 0.0  ;;  %v467_v27 = vsel %vm373_vm2, %v457_v15, 0.0  ;;  %v469_v28 = vsel %vm373_vm2, %v458_v17, 0.0 }
  0xf5   : > { %v437_v18 = vadd.f32 %v436_v11, %v435_v12  ;;  %v464_v19 = vadd.f32 %v463_v16, %v462_v14  ;;  %v459_v29 = vmul.f32 %v430_v23, %v430_v23  ;;  %v432_v32 = vsel %vm408_vm10, %v607_v4, 0.0 }
  0xf6   : > { %v460_v33 = vmul.f32 %v431_v25, %v431_v25  ;;  %v442_v34 = vsel %vm373_vm2, %v430_v23, 0.0  ;;  %v444_v37 = vsel %vm373_vm2, %v431_v25, 0.0  ;;  %v461_v38 = vmul.f32 %v432_v32, %v432_v32 }
  0xf7   : > { %v466_v24 = vadd.f32 %v465_v20, %v464_v19  ;;  %v439_v26 = vadd.f32 %v438_v21, %v437_v18  ;;  %v471_v39 = vsel %vm373_vm2, %v459_v29, 0.0  ;;  %v446_v44 = vsel %vm373_vm2, %v432_v32, 0.0 }
  0xf8   : > { %v473_v43 = vsel %vm373_vm2, %v460_v33, 0.0  ;;  %v475_v47 = vsel %vm373_vm2, %v461_v38, 0.0 }
  0xf9   : > { %v441_v30 = vadd.f32 %v440_v22, %v439_v26  ;;  %v468_v31 = vadd.f32 %v467_v27, %v466_v24 }
  0xfb   : > { %v470_v35 = vadd.f32 %v469_v28, %v468_v31  ;;  %v443_v36 = vadd.f32 %v442_v34, %v441_v30 }
  0xfd   : > { %v445_v40 = vadd.f32 %v444_v37, %v443_v36  ;;  %v472_v42 = vadd.f32 %v471_v39, %v470_v35 }
  0xff   : > { %v447_v45 = vadd.f32 %v446_v44, %v445_v40  ;;  %v474_v46 = vadd.f32 %v473_v43, %v472_v42 }
 0x101   : > { %v448_v48 = vrot.slane %v447_v45, 4  ;;  %v476_v49 = vadd.f32 %v475_v47, %v474_v46 }
 0x103   : > { %v449_v50 = vadd.f32 %v448_v48, %v447_v45  ;;  %v477_v51 = vrot.slane %v476_v49, 4 }
 0x105   : > { %v450_v52 = vrot.slane %v449_v50, 2  ;;  %v478_v53 = vadd.f32 %v477_v51, %v476_v49 }
 0x107   : > { %v451_v54 = vadd.f32 %v450_v52, %v449_v50  ;;  %v479_v55 = vrot.slane %v478_v53, 2 }
 0x109   : > { %v452_v56 = vrot.slane %v451_v54, 1  ;;  %v480_v57 = vadd.f32 %v479_v55, %v478_v53 }
 0x10b   : > { %v481_v58 = vrot.slane %v480_v57, 1  ;;  %v453_v59 = vadd.f32 %v452_v56, %v451_v54 }
 0x10d   : > { %v482_v60 = vadd.f32 %v481_v58, %v480_v57 }
 0x10f   : > { %v484_v61 = vsel %vm483_vm11, %v453_v59, %v482_v60 }
 0x110   : > { %486 = vst.msk [vmem:[%s238_s13] sm:$0x3] %vm485_vm12, %v484_v61 }
 0x111 PF: > { %s16_s18 = sadd.s32 1, %s626_s18  }
 0x112   : > { %p13_p5 = scmp.ge.s32.totalorder %s16_s18, 4  }
 0x114   :  { %15 = sbr.rel (!%p13_p5) target bundleno = 1 (0x1), region = 78 }

// kernel: _lambda_.7
= control target key start
LH: loop header
LB: loop body
LE: loop exit
PB: predicated region body
PF: predicated region fallthrough
CT: control target
= control target key end

     0   :  { %9 = vsyncpa [#allocation3], 0  ;;  %s708_s0 = inlined_call_operand.vmem [shape: f32[128,16], index: 0, kind: input, shape index: {}]   ;;  %s709_s1 = inlined_call_operand.vmem [shape: f32[128,8], index: 1, kind: input, shape index: {}]   ;;  %s710_s2 = inlined_call_operand.vmem [shape: f32[1,16], index: 2, kind: input, shape index: {}]   ;;  %s711_s3 = inlined_call_operand.vmem [shape: f32[1,16], index: 3, kind: input, shape index: {}]   ;;  %s712_s4 = inlined_call_operand.hbm [shape: f32[128,16], index: 4, kind: output, shape index: {}]  }
   0x1   :  { %11 = vsyncpa [#allocation3 + $0x1], 0  ;;  %s547_s15 = smov 0   ;;  %s549_s16 = smov 0  }
   0x2   :  { %s551_s17 = smov 0   ;;  %s553_s18 = smov 0  }
   0x3 LB: > { %s568_s19 = sadd.s32 4294967295, %s517_s18   ;;  %s397_s20 = sadd.s32 4294967294, %s517_s18   ;;  %s517_s18 = sphi %s553_s18, %s718_s18   ;;  %s513_s17 = sphi %s551_s17, %s717_s17   ;;  %s509_s16 = sphi %s549_s16, %s716_s16   ;;  %s505_s15 = sphi %s547_s15, %s715_s15  }
   0x4   : > { %s572_s21 = sadd.s32 1, %s517_s18   ;;  %s118_s22 = sadd.s32 1, %s513_s17 }
   0x5   : > { %s115_s23 = ssub.s32 %s517_s18, %s572_s21  ;;  %p128_p0 = scmp.ne.s32.totalorder %s513_s17, %s509_s16 }
   0x6   : > { %p116_p1 = scmp.eq.s32.totalorder %s115_s23, 0  ;;  %p129_p2 = scmp.eq.s32.totalorder %s568_s19, 1 }
   0x7   : > { %p134_p3 = scmp.ne.s32.totalorder %s509_s16, %s505_s15  ;;  %p135_p4 = scmp.eq.s32.totalorder %s397_s20, 1 }
   0x8   : > { %s583_s24 = scalar_select %p116_p1, %s513_s17, %s118_s22  }
   0x9   : > { %p585_p5 = por %p129_p2, %p128_p0  ;;  %p589_p6 = por %p135_p4, %p134_p3 }
   0xa   : > { %p400_p7 = scmp.ge.s32.totalorder %s517_s18, 1  ;;  %p177_p8 = scmp.lt.s32.totalorder %s517_s18, 3 }
   0xc   : > { %p178_p9 = pnand %p400_p7, %p177_p8 }
   0xd   : > { %s402_s27 = sshll.u32 (!%p178_p9), %s568_s19, 3  ;;  %v406_v0 = vld [vmem:[%s710_s2] ss:$0 sm:$0xff] (!%p178_p9)  ;;  %vm275_vm0 = vcmask (!%p178_p9), 64512   ;;  %s205_s13 = sand.u32 (!%p178_p9), 1, %s509_s16   ;;  %vm300_vm1 = vcmask (!%p178_p9), 130048  }
   0xe   : > { %181 = sbr.rel (%p178_p9) target bundleno = 58 (0x3a), region = 36  ;;  %p209_p10 = scmp.lt.s32.totalorder (!%p178_p9), %s402_s27, 15  ;;  %v612_v1 = vld [vmem:[%s711_s3] ss:$0 sm:$0xff] (!%p178_p9) }
   0xf   : > { %s401_s14 = sshll.u32 (!%p178_p9), %s205_s13, 6  ;;  %s413_s23 = sshll.u32 (!%p178_p9), %s568_s19, 10 }
  0x10   : > { %s207_s20 = scalar_lea.vmem (!%p178_p9), [#allocation2], %s401_s14  ;;  %s662_s29 = scalar_lea.hbm (!%p178_p9), %s712_s4, %s413_s23 }
  0x11   : > { %s323_s22 = sshll.u32 (!%p178_p9), %s207_s20, 4  ;;  %s667_s19 = scalar_lea.sflag (!%p178_p9), [#allocation3], %s205_s13  ;;  %s656_s22 = int_to_ptr.vmem [resolvable:$true] %s323_s22 }
  0x12   : > { %s455_s30 = scalar_lea.vmem (!%p178_p9), %s656_s22, 1024  ;;  %s519_s5 = smov (!%p178_p9), [#allocation2]  }
  0x13   : > { %p456_p11 = scmp.ne.s32.totalorder (!%p178_p9), %s656_s22, %s455_s30  ;;  %s459_s6 = sshll.u32 (!%p178_p9), %s519_s5, 4  ;;  %s460_s6 = int_to_ptr.vmem [resolvable:$false] %s459_s6 }
  0x14   : > { %p462_p0 = scmp.lt.s32.totalorder (!%p178_p9), %s656_s22, %s460_s6 }
  0x15   : > { %s720_s27 = smov (!%p209_p10, %s402_s27), 15  ;;  %p457_p12 = pnand %p456_p11, %p585_p5 }
  0x16   : > { %s403_s28 = sshll.u32 %s720_s27, 3 }
  0x17   : > { %s602_s7 = scalar_lea.vmem %s708_s0, %s403_s28  ;;  %s607_s10 = scalar_lea.vmem %s709_s1, %s403_s28 }
  0x18   : > { %v221_v2 = vld [vmem:[%s602_s7] sm:$0xff]  ;;  %v222_v4 = vld [vmem:[%s602_s7 + $0x8] sm:$0xff]  ;;  %v223_v8 = vld [vmem:[%s602_s7 + $0x10] sm:$0xff]  ;;  %p458_p13 = pneg %p457_p12 }
  0x19   : > { %v267_v3 = vld [vmem:[%s607_s10] sm:$0xff]  ;;  %v236_v5 = vmul.f32 %v406_v0, %v221_v2  ;;  %v237_v6 = vmul.f32 %v406_v0, %v222_v4  ;;  %v268_v7 = vld [vmem:[%s607_s10 + $0x8] sm:$0xff]  ;;  %v269_v9 = vld [vmem:[%s607_s10 + $0x10] sm:$0xff]  ;;  %v238_v12 = vmul.f32 %v406_v0, %v223_v8 }
  0x1a   : > { %v276_v10 = vsel %vm275_vm0, %v267_v3, 0.0  ;;  %v277_v11 = vsel %vm275_vm0, %v268_v7, 0.0  ;;  %v278_v13 = vsel %vm275_vm0, %v269_v9, 0.0  ;;  %v224_v14 = vld [vmem:[%s602_s7 + $0x18] sm:$0xff]  ;;  %v225_v16 = vld [vmem:[%s602_s7 + $0x20] sm:$0xff]  ;;  %v226_v22 = vld [vmem:[%s602_s7 + $0x28] sm:$0xff] }
  0x1b   : > { %v270_v15 = vld [vmem:[%s607_s10 + $0x18] sm:$0xff]  ;;  %v251_v17 = vadd.f32 %v612_v1, %v236_v5  ;;  %v252_v18 = vadd.f32 %v612_v1, %v237_v6  ;;  %v239_v19 = vmul.f32 %v406_v0, %v224_v14  ;;  %v271_v21 = vld [vmem:[%s607_s10 + $0x20] sm:$0xff]  ;;  %v272_v23 = vld [vmem:[%s607_s10 + $0x28] sm:$0xff]  ;;  %v253_v24 = vadd.f32 %v612_v1, %v238_v12 }
  0x1c   : > { %v279_v20 = vsel %vm275_vm0, %v270_v15, 0.0  ;;  %v240_v25 = vmul.f32 %v406_v0, %v225_v16  ;;  %v280_v26 = vsel %vm275_vm0, %v271_v21, 0.0  ;;  %v241_v27 = vmul.f32 %v406_v0, %v226_v22  ;;  %v227_v28 = vld [vmem:[%s602_s7 + $0x30] sm:$0xff]  ;;  %v228_v38 = vld [vmem:[%s602_s7 + $0x38] sm:$0xff]  ;;  %s461_s7 = scalar_lea.vmem %s460_s6, 2048 }
  0x1d   : > { %v273_v29 = vld [vmem:[%s607_s10 + $0x30] sm:$0xff]  ;;  %v259_v30 = vmax.f32 %v251_v17, 0.0  ;;  %v260_v31 = vmax.f32 %v252_v18, 0.0  ;;  %v254_v32 = vadd.f32 %v612_v1, %v239_v19  ;;  %v281_v33 = vsel %vm275_vm0, %v272_v23, 0.0  ;;  %v274_v51 = vld [vmem:[%s607_s10 + $0x38] sm:$0xff]  ;;  %p463_p1 = scmp.lt.s32.totalorder %s461_s7, %s455_s30 }
  0x1e   : > { %v261_v34 = vmax.f32 %v253_v24, 0.0  ;;  %v255_v35 = vadd.f32 %v612_v1, %v240_v25  ;;  %v256_v36 = vadd.f32 %v612_v1, %v241_v27  ;;  %v242_v37 = vmul.f32 %v406_v0, %v227_v28 }
  0x1f   : > { %v284_v39 = vadd.f32 %v276_v10, %v259_v30  ;;  %v285_v40 = vadd.f32 %v277_v11, %v260_v31  ;;  %v262_v41 = vmax.f32 %v254_v32, 0.0  ;;  %v282_v42 = vsel %vm275_vm0, %v273_v29, 0.0  ;;  %p464_p2 = por %p463_p1, %p462_p0 }
  0x20   : > { %v286_v43 = vadd.f32 %v278_v13, %v261_v34  ;;  %v263_v44 = vmax.f32 %v255_v35, 0.0  ;;  %v264_v45 = vmax.f32 %v256_v36, 0.0  ;;  %v257_v46 = vadd.f32 %v612_v1, %v242_v37 }
  0x21   : > { %v292_v47 = vmax.f32 %v284_v39, 0.0  ;;  %v293_v48 = vmax.f32 %v285_v40, 0.0  ;;  %v287_v49 = vadd.f32 %v279_v20, %v262_v41  ;;  %v243_v50 = vmul.f32 %v406_v0, %v228_v38  ;;  %p465_p3 = pnand %p464_p2, %p458_p13 }
  0x22   : > { %v294_v52 = vmax.f32 %v286_v43, 0.0  ;;  %v288_v53 = vadd.f32 %v280_v26, %v263_v44  ;;  %v289_v54 = vadd.f32 %v281_v33, %v264_v45  ;;  %v265_v55 = vmax.f32 %v257_v46, 0.0 }
  0x23   : > { %301 = vst.msk [vmem:[%s207_s20] sm:$0xff] %vm300_vm1, %v292_v47  ;;  %302 = vst.msk [vmem:[%s207_s20 + $0x8] sm:$0xff] %vm300_vm1, %v293_v48  ;;  %v295_v56 = vmax.f32 %v287_v49, 0.0  ;;  %v258_v57 = vadd.f32 %v612_v1, %v243_v50  ;;  %v283_v61 = vsel %vm275_vm0, %v274_v51, 0.0 }
  0x24   : > { %303 = vst.msk [vmem:[%s207_s20 + $0x10] sm:$0xff] %vm300_vm1, %v294_v52  ;;  %v296_v58 = vmax.f32 %v288_v53, 0.0  ;;  %v297_v59 = vmax.f32 %v289_v54, 0.0  ;;  %v290_v60 = vadd.f32 %v282_v42, %v265_v55 }
  0x25   : > { %304 = vst.msk [vmem:[%s207_s20 + $0x18] sm:$0xff] %vm300_vm1, %v295_v56  ;;  %v266_v62 = vmax.f32 %v258_v57, 0.0 }
  0x26   : > { %305 = vst.msk [vmem:[%s207_s20 + $0x20] sm:$0xff] %vm300_vm1, %v296_v58  ;;  %306 = vst.msk [vmem:[%s207_s20 + $0x28] sm:$0xff] %vm300_vm1, %v297_v59  ;;  %v298_v63 = vmax.f32 %v290_v60, 0.0 }
  0x27   : > { %v291_v0 = vadd.f32 %v283_v61, %v266_v62 }
  0x28   : > { %307 = vst.msk [vmem:[%s207_s20 + $0x30] sm:$0xff] %vm300_vm1, %v298_v63 }
  0x29   : > { %v299_v1 = vmax.f32 %v291_v0, 0.0 }
  0x2b   : > { %308 = vst.msk [vmem:[%s207_s20 + $0x38] sm:$0xff] %vm300_vm1, %v299_v1 }
  0x2c   : > { %468 = shalt.err (!%p465_p3)
}
  0x2d   : > { %s469_s8 = scalar_lea.hbm %s662_s29, 1024  ;;  %s473_s11 = scalar_lea.hbm %s712_s4, 2048 }
  0x2e   : > { %p470_p4 = scmp.ne.s32.totalorder %s662_s29, %s469_s8  ;;  %p474_p9 = scmp.lt.u32.totalorder %s662_s29, %s712_s4 }
  0x2f   : > { %p475_p10 = scmp.lt.u32.totalorder %s473_s11, %s469_s8  ;;  %p477_p12 = scmp.lt.u32.totalorder %s469_s8, %s662_s29 }
  0x30   : > { %p471_p7 = pnand %p470_p4, %p585_p5 }
  0x31   : > { %p476_p11 = por %p475_p10, %p474_p9 }
  0x32   : > { %p472_p8 = pneg %p471_p7 }
  0x33   : > { %p478_p13 = por %p477_p12, %p476_p11 }
  0x35   : > { %p479_p0 = pnand %p478_p13, %p472_p8 }
  0x37   : > { %482 = shalt.err (!%p479_p0)
}
  0x38   : > { %s520_s14 = smov 128   ;;  %s521_s20 = smov 8  }
  0x39   : > { %414 = dma.vmem_to_hbm [thread:$0]  (%p585_p5), %s656_s22, 1024, %s662_s29, %s667_s19, %s520_s14, %s520_s14, %s521_s20  }
  0x3a PF: > { %p420_p1 = scmp.ge.s32.totalorder %s517_s18, 2  ;;  %s338_s23 = sand.u32 1, %s505_s15  }
  0x3b   : > { %s339_s27 = scalar_lea.sflag [#allocation3], %s338_s23 }
  0x3c   : > { %p417_p2 = pnand %p420_p1, %p589_p6 }
  0x3e   : > { %500 = dma.done.wait (!%p417_p2), %s339_s27, 1024  }
  0x3f   : > { %502 = vsyncadd (!%p417_p2), %s339_s27, 4294966272  ;;  %p14_p3 = scmp.ge.s32.totalorder %s572_s21, 4   ;;  %s715_s15 = smov %s509_s16 }
  0x40   : > { %s716_s16 = smov %s513_s17  ;;  %s717_s17 = smov %s583_s24 }
  0x41   : > { %s718_s18 = smov %s572_s21  ;;  %16 = sbr.rel (!%p14_p3) target bundleno = 3 (0x3), region = 74 }
  0x48   :  { %344 = vsyncpa [#allocation3], 1 }
  0x49   :  { %346 = vsyncpa [#allocation3 + $0x1], 1 }

</bundles_post_ra>
